<compile_context>
chip_gen: v6e
topology: v6e:2x2x1
jax: 0.10.0
libtpu: 0.0.40
codegen_flags: <defaults>
</compile_context>

<pallas_src>
import functools
import inspect

import jax
import jax.numpy as jnp
from jax.experimental import pallas as pl
from jax.experimental.pallas import tpu as pltpu

LEAKY_SLOPE = 0.2
BN_EPS = 1e-5

TILE_VMEM_BUDGET = 20 * 1024 * 1024   # double-buffered operand budget per call
VMEM_LIMIT_BYTES = 40 * 1024 * 1024   # scoped VMEM limit (>16MiB v5e default,
                                      # << 64MiB v7x physical)


def _supports_buffered():
    try:
        return (hasattr(pl, "Buffered")
                and "pipeline_mode" in inspect.signature(pl.BlockSpec).parameters)
    except Exception:
        return False


_HAS_BUFFERED = _supports_buffered()


def _round_up(x, m):
    return x + (-x) % m


def _pick_tile(size, candidates):
    for c in candidates:
        if size % c == 0:
            return c
    return size


def _tile_bytes(tm, tn, tk):
    return (2 * tm * tk * 2          # x operand, double-buffered bf16
            + 2 * tk * tn * 2        # w operand, double-buffered bf16
            + 2 * tm * tn * 4        # output, double-buffered (worst-case f32)
            + tm * tn * 4            # f32 accumulator scratch
            + 8 * tk * 4 + 8 * tn * 4)   # scale/shift/bias/stat vectors


def _select_tiles(m_pad, n_pad, k_dim):
    tm = _pick_tile(m_pad, (512, 256, 128, 64, 32, 16))
    tn = _pick_tile(n_pad, (1024, 512, 256, 128))
    tk = None
    for c in (4096, 2048, 1024, 512, 256, 128):
        if k_dim % c == 0 and _tile_bytes(tm, tn, c) <= TILE_VMEM_BUDGET:
            tk = c
            break
    if tk is None:
        tk = k_dim      # small / non-128-multiple K: single unpadded K tile
    return tm, tn, tk


# ---------------------------------------------------------------------------
# Pallas kernel
# ---------------------------------------------------------------------------
def _make_conv_kernel(*, in_affine, bn_stats, bias, act, m_valid, tm):
    """K-tiled matmul with optional fused input-side BN(scale/shift)+leaky,
    optional bias + activation epilogue and optional per-block BN statistics."""

    def kernel(*refs):
        it = iter(refs)
        x_ref = next(it)
        w_ref = next(it)
        sc_ref = next(it) if in_affine else None
        sh_ref = next(it) if in_affine else None
        b_ref = next(it) if bias else None
        y_ref = next(it)
        ps_ref = next(it) if bn_stats else None
        pq_ref = next(it) if bn_stats else None
        acc_ref = next(it)

        k = pl.program_id(2)

        @pl.when(k == 0)
        def _():
            acc_ref[...] = jnp.zeros_like(acc_ref)

        x = x_ref[...]
        if in_affine:
            # Previous layer's BatchNorm scale/shift + leaky_relu, fused onto
            # the raw bf16 patches of this layer's input (per-K-column vectors).
            xa = x.astype(jnp.float32) * sc_ref[...] + sh_ref[...]
            xa = jnp.where(xa > 0, xa, LEAKY_SLOPE * xa)
            x = xa.astype(jnp.bfloat16)
        acc_ref[...] += jnp.dot(x, w_ref[...],
                                preferred_element_type=jnp.float32)

        @pl.when(k == pl.num_programs(2) - 1)
        def _():
            y = acc_ref[...]
            if bias:
                y = y + b_ref[...]
            if act == "leaky":
                y = jnp.where(y > 0, y, LEAKY_SLOPE * y)
            elif act == "sigmoid":
                y = 1.0 / (1.0 + jnp.exp(-y))
            y_ref[...] = y.astype(y_ref.dtype)
            if bn_stats:
                ys = y
                if m_valid % tm != 0:   # static: mask padded rows out of stats
                    rows = (jax.lax.broadcasted_iota(jnp.int32, y.shape, 0)
                            + pl.program_id(1) * tm)
                    ys = jnp.where(rows < m_valid, y, 0.0)
                ps_ref[...] = jnp.sum(ys, axis=0, keepdims=True)[None]
                pq_ref[...] = jnp.sum(ys * ys, axis=0, keepdims=True)[None]

    return kernel


# ---------------------------------------------------------------------------
# pallas_call wrapper
# ---------------------------------------------------------------------------
def _weight_spec(tk, tn, tm, nk):
    # Deeper weight pipelining for tiny-M / multi-K-step layers: the per-step
    # MXU work is too short to hide the weight DMA behind double buffering.
    kwargs = {}
    if _HAS_BUFFERED and tm <= 64 and nk >= 2:
        kwargs["pipeline_mode"] = pl.Buffered(3)
    return pl.BlockSpec((tk, tn), lambda j, i, k: (k, j), **kwargs)


def _conv_mm(patches, wm, *, bias, scale_k, shift_k, act, bn_stats=False,
             out_dtype=jnp.bfloat16, m_valid=None):
    """patches: (M_pad, K) bf16, wm: (K, N_pad) bf16.
    Returns y (M_pad, N_pad) [+ per-M-block (n_i,1,N_pad) sum / sum-of-squares]."""
    m_pad, k_dim = patches.shape
    n_pad = wm.shape[1]
    tm, tn, tk = _select_tiles(m_pad, n_pad, k_dim)
    ni, nj, nk = m_pad // tm, n_pad // tn, k_dim // tk
    in_affine = scale_k is not None
    has_bias = bias is not None

    kernel = _make_conv_kernel(
        in_affine=in_affine, bn_stats=bn_stats, bias=has_bias, act=act,
        m_valid=m_valid if m_valid is not None else m_pad, tm=tm)

    in_specs = [pl.BlockSpec((tm, tk), lambda j, i, k: (i, k)),
                _weight_spec(tk, tn, tm, nk)]
    args = [patches, wm]
    if in_affine:
        in_specs += [pl.BlockSpec((1, tk), lambda j, i, k: (0, k)),
                     pl.BlockSpec((1, tk), lambda j, i, k: (0, k))]
        args += [scale_k, shift_k]
    if has_bias:
        in_specs.append(pl.BlockSpec((1, tn), lambda j, i, k: (0, j)))
        args.append(bias)

    out_shape = [jax.ShapeDtypeStruct((m_pad, n_pad), out_dtype)]
    out_specs = [pl.BlockSpec((tm, tn), lambda j, i, k: (i, j))]
    if bn_stats:
        stat_spec = pl.BlockSpec((1, 1, tn), lambda j, i, k: (i, 0, j))
        out_shape += [jax.ShapeDtypeStruct((ni, 1, n_pad), jnp.float32)] * 2
        out_specs += [stat_spec, stat_spec]

    fn = pl.pallas_call(
        kernel,
        out_shape=tuple(out_shape) if bn_stats else out_shape[0],
        grid=(nj, ni, nk),
        in_specs=in_specs,
        out_specs=tuple(out_specs) if bn_stats else out_specs[0],
        scratch_shapes=[pltpu.VMEM((tm, tn), jnp.float32)],
        compiler_params=pltpu.CompilerParams(
            dimension_semantics=("parallel", "parallel", "arbitrary"),
            vmem_limit_bytes=VMEM_LIMIT_BYTES),
    )
    return fn(*args)


# ---------------------------------------------------------------------------
# Host-side glue: im2col, padding, layer composition
# ---------------------------------------------------------------------------
def _build_patches(x, k, stride, pad, pad_value=None):
    """x: (Nb,H,W,C) bf16 -> (patches (Nb*Ho*Wo, k*k*C) bf16, Ho, Wo).
    Patch column order is (kh, kw, cin).  `pad_value` (per-channel) replaces
    zero padding so a fused downstream scale/shift+leaky maps borders to 0."""
    Nb, H, W, C = x.shape
    if pad == 0:
        xp = x
    elif pad_value is None:
        xp = jnp.pad(x, ((0, 0), (pad, pad), (pad, pad), (0, 0)))
    else:
        Hp, Wp = H + 2 * pad, W + 2 * pad
        xp = jnp.broadcast_to(pad_value.astype(x.dtype).reshape(1, 1, 1, C),
                              (Nb, Hp, Wp, C))
        xp = jax.lax.dynamic_update_slice(xp, x, (0, pad, pad, 0))
    Ho = (H + 2 * pad - k) // stride + 1
    Wo = (W + 2 * pad - k) // stride + 1
    cols = []
    for di in range(k):
        for dj in range(k):
            cols.append(xp[:, di:di + stride * Ho:stride,
                           dj:dj + stride * Wo:stride, :])
    patches = jnp.stack(cols, axis=3)                 # (Nb, Ho, Wo, k*k, C)
    return patches.reshape(Nb * Ho * Wo, k * k * C), Ho, Wo


def _prep_weight(w, n_pad):
    """(Cout, Cin, kH, kW) -> (kH*kW*Cin, N_pad) bf16, matching patch order."""
    Cout, Cin, kH, kW = w.shape
    wm = jnp.transpose(w, (2, 3, 1, 0)).reshape(kH * kW * Cin, Cout)
    wm = wm.astype(jnp.bfloat16)
    if n_pad != Cout:
        wm = jnp.pad(wm, ((0, 0), (0, n_pad - Cout)))
    return wm


def _affine_k_vectors(in_affine, kk):
    if in_affine is None:
        return None, None
    scale, shift = in_affine
    kdim = kk * scale.shape[0]
    return (jnp.tile(scale, kk).reshape(1, kdim).astype(jnp.float32),
            jnp.tile(shift, kk).reshape(1, kdim).astype(jnp.float32))


def _neutral_pad_value(in_affine, pad):
    if in_affine is None or pad == 0:
        return None
    sc, sh = in_affine
    return -sh / jnp.where(sc == 0.0, 1.0, sc)   # scale*v + shift == 0


def conv_act_layer(x, w, b, *, stride, pad, act, in_affine=None,
                   out_dtype=jnp.bfloat16):
    """Conv + bias + activation (leaky / sigmoid).  If `in_affine` is given,
    the previous layer's BN scale/shift + leaky is fused into this kernel."""
    Cout, Cin, kH, kW = w.shape
    Nb = x.shape[0]
    patches, Ho, Wo = _build_patches(x.astype(jnp.bfloat16), kH, stride, pad,
                                     _neutral_pad_value(in_affine, pad))
    M, _ = patches.shape
    M_pad = _round_up(M, 16)
    N_pad = _round_up(Cout, 128)
    if M_pad != M:
        patches = jnp.pad(patches, ((0, M_pad - M), (0, 0)))
    wm = _prep_weight(w, N_pad)
    b_p = jnp.pad(b.astype(jnp.float32), (0, N_pad - Cout)).reshape(1, N_pad)
    scale_k, shift_k = _affine_k_vectors(in_affine, kH * kW)
    y = _conv_mm(patches, wm, bias=b_p, scale_k=scale_k, shift_k=shift_k,
                 act=act, out_dtype=out_dtype)
    return y[:M, :Cout].reshape(Nb, Ho, Wo, Cout)


def conv_bn_layer(x, w, gamma, beta, *, stride, pad, in_affine=None):
    """Conv (no bias; it cancels through BN) + in-kernel BN statistics.
    Returns (raw bf16 conv output NHWC, BN scale, BN shift); the scale/shift +
    leaky_relu are applied by the *next* layer's kernel (no extra HBM pass)."""
    Cout, Cin, kH, kW = w.shape
    Nb = x.shape[0]
    patches, Ho, Wo = _build_patches(x.astype(jnp.bfloat16), kH, stride, pad,
                                     _neutral_pad_value(in_affine, pad))
    M, _ = patches.shape
    M_pad = _round_up(M, 16)
    N_pad = _round_up(Cout, 128)
    if M_pad != M:
        patches = jnp.pad(patches, ((0, M_pad - M), (0, 0)))
    wm = _prep_weight(w, N_pad)
    scale_k, shift_k = _affine_k_vectors(in_affine, kH * kW)

    y_raw, psum, pssq = _conv_mm(patches, wm, bias=None, scale_k=scale_k,
                                 shift_k=shift_k, act=None, bn_stats=True,
                                 out_dtype=jnp.bfloat16, m_valid=M)

    csum = jnp.sum(psum, axis=(0, 1))[:Cout]
    cssq = jnp.sum(pssq, axis=(0, 1))[:Cout]
    mean = csum / M
    var = jnp.maximum(cssq / M - mean * mean, 0.0)     # biased (training mode)
    scale = gamma * jax.lax.rsqrt(var + BN_EPS)
    shift = beta - mean * scale
    return y_raw[:M, :Cout].reshape(Nb, Ho, Wo, Cout), scale, shift


def discriminator_forward(x_nchw, p):
    x = jnp.transpose(x_nchw, (0, 2, 3, 1)).astype(jnp.float32)     # NCHW->NHWC
    a1 = conv_act_layer(x, p["w1"], p["b1"], stride=2, pad=1, act="leaky")
    r2, s2, t2 = conv_bn_layer(a1, p["w2"], p["g2"], p["be2"], stride=2, pad=1)
    r3, s3, t3 = conv_bn_layer(r2, p["w3"], p["g3"], p["be3"], stride=2, pad=1,
                               in_affine=(s2, t2))
    r4, s4, t4 = conv_bn_layer(r3, p["w4"], p["g4"], p["be4"], stride=2, pad=1,
                               in_affine=(s3, t3))
    # b2/b3/b4 are intentionally unused: conv bias cancels exactly through BN.
    y = conv_act_layer(r4, p["w5"], p["b5"], stride=1, pad=0, act="sigmoid",
                       in_affine=(s4, t4), out_dtype=jnp.float32)
    return jnp.transpose(y, (0, 3, 1, 2))                            # NHWC->NCHW


# ---------------------------------------------------------------------------
# Deterministic parameter init (matches normal_init: conv ~ N(0, 0.02), bias 0,
# BN gamma ~ N(1, 0.02), beta 0)
# ---------------------------------------------------------------------------
def init_params(key, d):
    ks = jax.random.split(key, 8)

    def cw(k, cout, cin):
        return 0.02 * jax.random.normal(k, (cout, cin, 4, 4), jnp.float32)

    def bn(k, c):
        return 1.0 + 0.02 * jax.random.normal(k, (c,), jnp.float32)

    return {
        "w1": cw(ks[0], d, 3),         "b1": jnp.zeros((d,), jnp.float32),
        "w2": cw(ks[1], 2 * d, d),     "b2": jnp.zeros((2 * d,), jnp.float32),
        "g2": bn(ks[2], 2 * d),        "be2": jnp.zeros((2 * d,), jnp.float32),
        "w3": cw(ks[3], 4 * d, 2 * d), "b3": jnp.zeros((4 * d,), jnp.float32),
        "g3": bn(ks[4], 4 * d),        "be3": jnp.zeros((4 * d,), jnp.float32),
        "w4": cw(ks[5], 8 * d, 4 * d), "b4": jnp.zeros((8 * d,), jnp.float32),
        "g4": bn(ks[6], 8 * d),        "be4": jnp.zeros((8 * d,), jnp.float32),
        "w5": cw(ks[7], 1, 8 * d),     "b5": jnp.zeros((1,), jnp.float32),
    }


if __name__ == "__main__":
    d = 8                                   # scaled-down width (reference uses 128)
    key = jax.random.PRNGKey(0)
    k_params, k_x = jax.random.split(key)
    params = init_params(k_params, d)
    # Spatial size must be 64 so conv5 (4x4, stride 1, no pad) reduces 4x4 -> 1x1.
    x = jax.random.normal(k_x, (2, 3, 64, 64), jnp.float32)

    out = jax.jit(discriminator_forward)(x, params)
    out = jax.block_until_ready(out)

    assert out.shape == (2, 1, 1, 1), out.shape
    assert bool(jnp.all((out >= 0.0) & (out <= 1.0)))
    print("KERNEL_OK")
</pallas_src>

<mosaic_0001>
module attributes {stable_mosaic.version = 11 : i64} {
  func.func @kernel(%arg0: i32, %arg1: i32, %arg2: i32, %arg3: memref<512x48xbf16, #tpu.memory_space<vmem>>, %arg4: memref<48x128xbf16, #tpu.memory_space<vmem>>, %arg5: memref<1x128xf32, #tpu.memory_space<vmem>>, %arg6: memref<512x128xbf16, #tpu.memory_space<vmem>>, %arg7: memref<512x128xf32, #tpu.memory_space<vmem>>) attributes {dimension_semantics = [#tpu.dimension_semantics<parallel>, #tpu.dimension_semantics<parallel>, #tpu.dimension_semantics<arbitrary>], iteration_bounds = array<i64: 1, 4, 1>, scalar_prefetch = 0 : i64, scratch_operands = 1 : i64, tpu.core_type = #tpu.core_type<tc>, window_params = [{transform_indices = @transform_0, window_bounds = array<i64: 512, 48>}, {transform_indices = @transform_1, window_bounds = array<i64: 48, 128>}, {transform_indices = @transform_2, window_bounds = array<i64: 1, 128>}, {transform_indices = @transform_3, window_bounds = array<i64: 512, 128>}]} {
    %c0_i32 = arith.constant 0 : i32
    %0 = arith.cmpi eq, %arg2, %c0_i32 : i32
    %1 = arith.extui %0 : i1 to i32
    %c0_i32_0 = arith.constant 0 : i32
    %2 = arith.cmpi ne, %1, %c0_i32_0 : i32
    scf.if %2 {
      %cst_10 = arith.constant 0.000000e+00 : f32
      %12 = vector.broadcast %cst_10 : f32 to vector<512x128xf32>
      %c0_11 = arith.constant 0 : index
      %c0_12 = arith.constant 0 : index
      %13 = vector.load %arg7[%c0_11, %c0_12] : memref<512x128xf32, #tpu.memory_space<vmem>>, vector<512x128xf32>
      tpu.vector_store %arg7[%c0_11, %c0_12], %12 {strides = array<i32>} : memref<512x128xf32, #tpu.memory_space<vmem>>, vector<512x128xf32>,
    } else {
    }
    %c0 = arith.constant 0 : index
    %c0_1 = arith.constant 0 : index
    %3 = vector.load %arg3[%c0, %c0_1] : memref<512x48xbf16, #tpu.memory_space<vmem>>, vector<512x48xbf16>
    %c0_2 = arith.constant 0 : index
    %c0_3 = arith.constant 0 : index
    %4 = vector.load %arg7[%c0_2, %c0_3] : memref<512x128xf32, #tpu.memory_space<vmem>>, vector<512x128xf32>
    %c0_4 = arith.constant 0 : index
    %c0_5 = arith.constant 0 : index
    %5 = vector.load %arg4[%c0_4, %c0_5] : memref<48x128xbf16, #tpu.memory_space<vmem>>, vector<48x128xbf16>
    %cst = arith.constant dense<0.000000e+00> : vector<512x128xf32>
    %6 = tpu.matmul %3, %5, %cst {dimension_numbers = #tpu.dot_dimension_numbers<[1], [0], [0], [1], [0, 0, 1, 1], [], []>} : vector<512x48xbf16>, vector<48x128xbf16>, vector<512x128xf32> -> vector<512x128xf32>
    %7 = arith.addf %4, %6 : vector<512x128xf32>
    %c0_6 = arith.constant 0 : index
    %c0_7 = arith.constant 0 : index
    %8 = vector.load %arg7[%c0_6, %c0_7] : memref<512x128xf32, #tpu.memory_space<vmem>>, vector<512x128xf32>
    tpu.vector_store %arg7[%c0_6, %c0_7], %7 {strides = array<i32>} : memref<512x128xf32, #tpu.memory_space<vmem>>, vector<512x128xf32>,
    %c0_i32_8 = arith.constant 0 : i32
    %9 = arith.cmpi eq, %arg2, %c0_i32_8 : i32
    %10 = arith.extui %9 : i1 to i32
    %c0_i32_9 = arith.constant 0 : i32
    %11 = arith.cmpi ne, %10, %c0_i32_9 : i32
    scf.if %11 {
      %c0_10 = arith.constant 0 : index
      %c0_11 = arith.constant 0 : index
      %12 = vector.load %arg7[%c0_10, %c0_11] : memref<512x128xf32, #tpu.memory_space<vmem>>, vector<512x128xf32>
      %c0_12 = arith.constant 0 : index
      %c0_13 = arith.constant 0 : index
      %13 = vector.load %arg5[%c0_12, %c0_13] : memref<1x128xf32, #tpu.memory_space<vmem>>, vector<1x128xf32>
      %14 = vector.broadcast %13 : vector<1x128xf32> to vector<512x128xf32>
      %15 = arith.addf %12, %14 : vector<512x128xf32>
      %cst_14 = arith.constant 0.000000e+00 : f32
      %16 = vector.broadcast %cst_14 : f32 to vector<512x128xf32>
      %17 = arith.cmpf ogt, %15, %16 : vector<512x128xf32>
      %cst_15 = arith.constant 2.000000e-01 : f32
      %18 = vector.broadcast %cst_15 : f32 to vector<512x128xf32>
      %19 = arith.mulf %18, %15 : vector<512x128xf32>
      %20 = arith.select %17, %15, %19 : vector<512x128xi1>, vector<512x128xf32>
      %21 = arith.truncf %20 : vector<512x128xf32> to vector<512x128xbf16>
      %c0_16 = arith.constant 0 : index
      %c0_17 = arith.constant 0 : index
      %22 = vector.load %arg6[%c0_16, %c0_17] : memref<512x128xbf16, #tpu.memory_space<vmem>>, vector<512x128xbf16>
      tpu.vector_store %arg6[%c0_16, %c0_17], %21 {strides = array<i32>} : memref<512x128xbf16, #tpu.memory_space<vmem>>, vector<512x128xbf16>,
    } else {
    }
    return
  }
  func.func @transform_0(%arg0: i32, %arg1: i32, %arg2: i32) -> (i32, i32) {
    %c0_i32 = arith.constant 0 : i32
    return %arg1, %arg2 : i32, i32
  }
  func.func @transform_1(%arg0: i32, %arg1: i32, %arg2: i32) -> (i32, i32) {
    %c0_i32 = arith.constant 0 : i32
    return %arg2, %arg0 : i32, i32
  }
  func.func @transform_2(%arg0: i32, %arg1: i32, %arg2: i32) -> (i32, i32) {
    %c0_i32 = arith.constant 0 : i32
    %c0_i32_0 = arith.constant 0 : i32
    return %c0_i32, %arg0 : i32, i32
  }
  func.func @transform_3(%arg0: i32, %arg1: i32, %arg2: i32) -> (i32, i32) {
    %c0_i32 = arith.constant 0 : i32
    return %arg1, %arg0 : i32, i32
  }
}

module attributes {stable_mosaic.version = 11 : i64} {
  func.func @kernel(%arg0: i32, %arg1: i32, %arg2: i32, %arg3: memref<512x128xbf16, #tpu.memory_space<vmem>>, %arg4: memref<128x128xbf16, #tpu.memory_space<vmem>>, %arg5: memref<512x128xbf16, #tpu.memory_space<vmem>>, %arg6: memref<1x1x128xf32, #tpu.memory_space<vmem>>, %arg7: memref<1x1x128xf32, #tpu.memory_space<vmem>>, %arg8: memref<512x128xf32, #tpu.memory_space<vmem>>) attributes {dimension_semantics = [#tpu.dimension_semantics<parallel>, #tpu.dimension_semantics<parallel>, #tpu.dimension_semantics<arbitrary>], iteration_bounds = array<i64: 1, 1, 1>, scalar_prefetch = 0 : i64, scratch_operands = 1 : i64, tpu.core_type = #tpu.core_type<tc>, window_params = [{transform_indices = @transform_0, window_bounds = array<i64: 512, 128>}, {transform_indices = @transform_1, window_bounds = array<i64: 128, 128>}, {transform_indices = @transform_2, window_bounds = array<i64: 512, 128>}, {transform_indices = @transform_3, window_bounds = array<i64: 1, 1, 128>}, {transform_indices = @transform_4, window_bounds = array<i64: 1, 1, 128>}]} {
    %c0_i32 = arith.constant 0 : i32
    %0 = arith.cmpi eq, %arg2, %c0_i32 : i32
    %1 = arith.extui %0 : i1 to i32
    %c0_i32_0 = arith.constant 0 : i32
    %2 = arith.cmpi ne, %1, %c0_i32_0 : i32
    scf.if %2 {
      %cst_10 = arith.constant 0.000000e+00 : f32
      %12 = vector.broadcast %cst_10 : f32 to vector<512x128xf32>
      %c0_11 = arith.constant 0 : index
      %c0_12 = arith.constant 0 : index
      %13 = vector.load %arg8[%c0_11, %c0_12] : memref<512x128xf32, #tpu.memory_space<vmem>>, vector<512x128xf32>
      tpu.vector_store %arg8[%c0_11, %c0_12], %12 {strides = array<i32>} : memref<512x128xf32, #tpu.memory_space<vmem>>, vector<512x128xf32>,
    } else {
    }
    %c0 = arith.constant 0 : index
    %c0_1 = arith.constant 0 : index
    %3 = vector.load %arg3[%c0, %c0_1] : memref<512x128xbf16, #tpu.memory_space<vmem>>, vector<512x128xbf16>
    %c0_2 = arith.constant 0 : index
    %c0_3 = arith.constant 0 : index
    %4 = vector.load %arg8[%c0_2, %c0_3] : memref<512x128xf32, #tpu.memory_space<vmem>>, vector<512x128xf32>
    %c0_4 = arith.constant 0 : index
    %c0_5 = arith.constant 0 : index
    %5 = vector.load %arg4[%c0_4, %c0_5] : memref<128x128xbf16, #tpu.memory_space<vmem>>, vector<128x128xbf16>
    %cst = arith.constant dense<0.000000e+00> : vector<512x128xf32>
    %6 = tpu.matmul %3, %5, %cst {dimension_numbers = #tpu.dot_dimension_numbers<[1], [0], [0], [1], [0, 0, 1, 1], [], []>} : vector<512x128xbf16>, vector<128x128xbf16>, vector<512x128xf32> -> vector<512x128xf32>
    %7 = arith.addf %4, %6 : vector<512x128xf32>
    %c0_6 = arith.constant 0 : index
    %c0_7 = arith.constant 0 : index
    %8 = vector.load %arg8[%c0_6, %c0_7] : memref<512x128xf32, #tpu.memory_space<vmem>>, vector<512x128xf32>
    tpu.vector_store %arg8[%c0_6, %c0_7], %7 {strides = array<i32>} : memref<512x128xf32, #tpu.memory_space<vmem>>, vector<512x128xf32>,
    %c0_i32_8 = arith.constant 0 : i32
    %9 = arith.cmpi eq, %arg2, %c0_i32_8 : i32
    %10 = arith.extui %9 : i1 to i32
    %c0_i32_9 = arith.constant 0 : i32
    %11 = arith.cmpi ne, %10, %c0_i32_9 : i32
    scf.if %11 {
      %c0_10 = arith.constant 0 : index
      %c0_11 = arith.constant 0 : index
      %12 = vector.load %arg8[%c0_10, %c0_11] : memref<512x128xf32, #tpu.memory_space<vmem>>, vector<512x128xf32>
      %13 = arith.truncf %12 : vector<512x128xf32> to vector<512x128xbf16>
      %c0_12 = arith.constant 0 : index
      %c0_13 = arith.constant 0 : index
      %14 = vector.load %arg5[%c0_12, %c0_13] : memref<512x128xbf16, #tpu.memory_space<vmem>>, vector<512x128xbf16>
      tpu.vector_store %arg5[%c0_12, %c0_13], %13 {strides = array<i32>} : memref<512x128xbf16, #tpu.memory_space<vmem>>, vector<512x128xbf16>,
      %cst_14 = arith.constant dense<0.000000e+00> : vector<128xf32>
      %15 = vector.multi_reduction <add>, %12, %cst_14 [0] : vector<512x128xf32> to vector<128xf32>
      %16 = vector.shape_cast %15 : vector<128xf32> to vector<1x128xf32>
      %17 = vector.shape_cast %16 : vector<1x128xf32> to vector<1x1x128xf32>
      %c0_15 = arith.constant 0 : index
      %c0_16 = arith.constant 0 : index
      %c0_17 = arith.constant 0 : index
      %18 = vector.load %arg6[%c0_15, %c0_16, %c0_17] : memref<1x1x128xf32, #tpu.memory_space<vmem>>, vector<1x1x128xf32>
      tpu.vector_store %arg6[%c0_15, %c0_16, %c0_17], %17 {strides = array<i32>} : memref<1x1x128xf32, #tpu.memory_space<vmem>>, vector<1x1x128xf32>,
      %19 = arith.mulf %12, %12 : vector<512x128xf32>
      %cst_18 = arith.constant dense<0.000000e+00> : vector<128xf32>
      %20 = vector.multi_reduction <add>, %19, %cst_18 [0] : vector<512x128xf32> to vector<128xf32>
      %21 = vector.shape_cast %20 : vector<128xf32> to vector<1x128xf32>
      %22 = vector.shape_cast %21 : vector<1x128xf32> to vector<1x1x128xf32>
      %c0_19 = arith.constant 0 : index
      %c0_20 = arith.constant 0 : index
      %c0_21 = arith.constant 0 : index
      %23 = vector.load %arg7[%c0_19, %c0_20, %c0_21] : memref<1x1x128xf32, #tpu.memory_space<vmem>>, vector<1x1x128xf32>
      tpu.vector_store %arg7[%c0_19, %c0_20, %c0_21], %22 {strides = array<i32>} : memref<1x1x128xf32, #tpu.memory_space<vmem>>, vector<1x1x128xf32>,
    } else {
    }
    return
  }
  func.func @transform_0(%arg0: i32, %arg1: i32, %arg2: i32) -> (i32, i32) {
    %c0_i32 = arith.constant 0 : i32
    return %arg1, %arg2 : i32, i32
  }
  func.func @transform_1(%arg0: i32, %arg1: i32, %arg2: i32) -> (i32, i32) {
    %c0_i32 = arith.constant 0 : i32
    return %arg2, %arg0 : i32, i32
  }
  func.func @transform_2(%arg0: i32, %arg1: i32, %arg2: i32) -> (i32, i32) {
    %c0_i32 = arith.constant 0 : i32
    return %arg1, %arg0 : i32, i32
  }
  func.func @transform_3(%arg0: i32, %arg1: i32, %arg2: i32) -> (i32, i32, i32) {
    %c0_i32 = arith.constant 0 : i32
    %c0_i32_0 = arith.constant 0 : i32
    return %arg1, %c0_i32, %arg0 : i32, i32, i32
  }
  func.func @transform_4(%arg0: i32, %arg1: i32, %arg2: i32) -> (i32, i32, i32) {
    %c0_i32 = arith.constant 0 : i32
    %c0_i32_0 = arith.constant 0 : i32
    return %arg1, %c0_i32, %arg0 : i32, i32, i32
  }
}

module attributes {stable_mosaic.version = 11 : i64} {
  func.func @kernel(%arg0: i32, %arg1: i32, %arg2: i32, %arg3: memref<128x256xbf16, #tpu.memory_space<vmem>>, %arg4: memref<256x128xbf16, #tpu.memory_space<vmem>>, %arg5: memref<1x256xf32, #tpu.memory_space<vmem>>, %arg6: memref<1x256xf32, #tpu.memory_space<vmem>>, %arg7: memref<128x128xbf16, #tpu.memory_space<vmem>>, %arg8: memref<1x1x128xf32, #tpu.memory_space<vmem>>, %arg9: memref<1x1x128xf32, #tpu.memory_space<vmem>>, %arg10: memref<128x128xf32, #tpu.memory_space<vmem>>) attributes {dimension_semantics = [#tpu.dimension_semantics<parallel>, #tpu.dimension_semantics<parallel>, #tpu.dimension_semantics<arbitrary>], iteration_bounds = array<i64: 1, 1, 1>, scalar_prefetch = 0 : i64, scratch_operands = 1 : i64, tpu.core_type = #tpu.core_type<tc>, window_params = [{transform_indices = @transform_0, window_bounds = array<i64: 128, 256>}, {transform_indices = @transform_1, window_bounds = array<i64: 256, 128>}, {transform_indices = @transform_2, window_bounds = array<i64: 1, 256>}, {transform_indices = @transform_3, window_bounds = array<i64: 1, 256>}, {transform_indices = @transform_4, window_bounds = array<i64: 128, 128>}, {transform_indices = @transform_5, window_bounds = array<i64: 1, 1, 128>}, {transform_indices = @transform_6, window_bounds = array<i64: 1, 1, 128>}]} {
    %c0_i32 = arith.constant 0 : i32
    %0 = arith.cmpi eq, %arg2, %c0_i32 : i32
    %1 = arith.extui %0 : i1 to i32
    %c0_i32_0 = arith.constant 0 : i32
    %2 = arith.cmpi ne, %1, %c0_i32_0 : i32
    scf.if %2 {
      %cst_16 = arith.constant 0.000000e+00 : f32
      %25 = vector.broadcast %cst_16 : f32 to vector<128x128xf32>
      %c0_17 = arith.constant 0 : index
      %c0_18 = arith.constant 0 : index
      %26 = vector.load %arg10[%c0_17, %c0_18] : memref<128x128xf32, #tpu.memory_space<vmem>>, vector<128x128xf32>
      tpu.vector_store %arg10[%c0_17, %c0_18], %25 {strides = array<i32>} : memref<128x128xf32, #tpu.memory_space<vmem>>, vector<128x128xf32>,
    } else {
    }
    %c0 = arith.constant 0 : index
    %c0_1 = arith.constant 0 : index
    %3 = vector.load %arg3[%c0, %c0_1] : memref<128x256xbf16, #tpu.memory_space<vmem>>, vector<128x256xbf16>
    %4 = arith.extf %3 : vector<128x256xbf16> to vector<128x256xf32>
    %c0_2 = arith.constant 0 : index
    %c0_3 = arith.constant 0 : index
    %5 = vector.load %arg5[%c0_2, %c0_3] : memref<1x256xf32, #tpu.memory_space<vmem>>, vector<1x256xf32>
    %6 = vector.broadcast %5 : vector<1x256xf32> to vector<128x256xf32>
    %7 = arith.mulf %4, %6 : vector<128x256xf32>
    %c0_4 = arith.constant 0 : index
    %c0_5 = arith.constant 0 : index
    %8 = vector.load %arg6[%c0_4, %c0_5] : memref<1x256xf32, #tpu.memory_space<vmem>>, vector<1x256xf32>
    %9 = vector.broadcast %8 : vector<1x256xf32> to vector<128x256xf32>
    %10 = arith.addf %7, %9 : vector<128x256xf32>
    %cst = arith.constant 0.000000e+00 : f32
    %11 = vector.broadcast %cst : f32 to vector<128x256xf32>
    %12 = arith.cmpf ogt, %10, %11 : vector<128x256xf32>
    %cst_6 = arith.constant 2.000000e-01 : f32
    %13 = vector.broadcast %cst_6 : f32 to vector<128x256xf32>
    %14 = arith.mulf %13, %10 : vector<128x256xf32>
    %15 = arith.select %12, %10, %14 : vector<128x256xi1>, vector<128x256xf32>
    %16 = arith.truncf %15 : vector<128x256xf32> to vector<128x256xbf16>
    %c0_7 = arith.constant 0 : index
    %c0_8 = arith.constant 0 : index
    %17 = vector.load %arg10[%c0_7, %c0_8] : memref<128x128xf32, #tpu.memory_space<vmem>>, vector<128x128xf32>
    %c0_9 = arith.constant 0 : index
    %c0_10 = arith.constant 0 : index
    %18 = vector.load %arg4[%c0_9, %c0_10] : memref<256x128xbf16, #tpu.memory_space<vmem>>, vector<256x128xbf16>
    %cst_11 = arith.constant dense<0.000000e+00> : vector<128x128xf32>
    %19 = tpu.matmul %16, %18, %cst_11 {dimension_numbers = #tpu.dot_dimension_numbers<[1], [0], [0], [1], [0, 0, 1, 1], [], []>} : vector<128x256xbf16>, vector<256x128xbf16>, vector<128x128xf32> -> vector<128x128xf32>
    %20 = arith.addf %17, %19 : vector<128x128xf32>
    %c0_12 = arith.constant 0 : index
    %c0_13 = arith.constant 0 : index
    %21 = vector.load %arg10[%c0_12, %c0_13] : memref<128x128xf32, #tpu.memory_space<vmem>>, vector<128x128xf32>
    tpu.vector_store %arg10[%c0_12, %c0_13], %20 {strides = array<i32>} : memref<128x128xf32, #tpu.memory_space<vmem>>, vector<128x128xf32>,
    %c0_i32_14 = arith.constant 0 : i32
    %22 = arith.cmpi eq, %arg2, %c0_i32_14 : i32
    %23 = arith.extui %22 : i1 to i32
    %c0_i32_15 = arith.constant 0 : i32
    %24 = arith.cmpi ne, %23, %c0_i32_15 : i32
    scf.if %24 {
      %c0_16 = arith.constant 0 : index
      %c0_17 = arith.constant 0 : index
      %25 = vector.load %arg10[%c0_16, %c0_17] : memref<128x128xf32, #tpu.memory_space<vmem>>, vector<128x128xf32>
      %26 = arith.truncf %25 : vector<128x128xf32> to vector<128x128xbf16>
      %c0_18 = arith.constant 0 : index
      %c0_19 = arith.constant 0 : index
      %27 = vector.load %arg7[%c0_18, %c0_19] : memref<128x128xbf16, #tpu.memory_space<vmem>>, vector<128x128xbf16>
      tpu.vector_store %arg7[%c0_18, %c0_19], %26 {strides = array<i32>} : memref<128x128xbf16, #tpu.memory_space<vmem>>, vector<128x128xbf16>,
      %cst_20 = arith.constant dense<0.000000e+00> : vector<128xf32>
      %28 = vector.multi_reduction <add>, %25, %cst_20 [0] : vector<128x128xf32> to vector<128xf32>
      %29 = vector.shape_cast %28 : vector<128xf32> to vector<1x128xf32>
      %30 = vector.shape_cast %29 : vector<1x128xf32> to vector<1x1x128xf32>
      %c0_21 = arith.constant 0 : index
      %c0_22 = arith.constant 0 : index
      %c0_23 = arith.constant 0 : index
      %31 = vector.load %arg8[%c0_21, %c0_22, %c0_23] : memref<1x1x128xf32, #tpu.memory_space<vmem>>, vector<1x1x128xf32>
      tpu.vector_store %arg8[%c0_21, %c0_22, %c0_23], %30 {strides = array<i32>} : memref<1x1x128xf32, #tpu.memory_space<vmem>>, vector<1x1x128xf32>,
      %32 = arith.mulf %25, %25 : vector<128x128xf32>
      %cst_24 = arith.constant dense<0.000000e+00> : vector<128xf32>
      %33 = vector.multi_reduction <add>, %32, %cst_24 [0] : vector<128x128xf32> to vector<128xf32>
      %34 = vector.shape_cast %33 : vector<128xf32> to vector<1x128xf32>
      %35 = vector.shape_cast %34 : vector<1x128xf32> to vector<1x1x128xf32>
      %c0_25 = arith.constant 0 : index
      %c0_26 = arith.constant 0 : index
      %c0_27 = arith.constant 0 : index
      %36 = vector.load %arg9[%c0_25, %c0_26, %c0_27] : memref<1x1x128xf32, #tpu.memory_space<vmem>>, vector<1x1x128xf32>
      tpu.vector_store %arg9[%c0_25, %c0_26, %c0_27], %35 {strides = array<i32>} : memref<1x1x128xf32, #tpu.memory_space<vmem>>, vector<1x1x128xf32>,
    } else {
    }
    return
  }
  func.func @transform_0(%arg0: i32, %arg1: i32, %arg2: i32) -> (i32, i32) {
    %c0_i32 = arith.constant 0 : i32
    return %arg1, %arg2 : i32, i32
  }
  func.func @transform_1(%arg0: i32, %arg1: i32, %arg2: i32) -> (i32, i32) {
    %c0_i32 = arith.constant 0 : i32
    return %arg2, %arg0 : i32, i32
  }
  func.func @transform_2(%arg0: i32, %arg1: i32, %arg2: i32) -> (i32, i32) {
    %c0_i32 = arith.constant 0 : i32
    %c0_i32_0 = arith.constant 0 : i32
    return %c0_i32, %arg2 : i32, i32
  }
  func.func @transform_3(%arg0: i32, %arg1: i32, %arg2: i32) -> (i32, i32) {
    %c0_i32 = arith.constant 0 : i32
    %c0_i32_0 = arith.constant 0 : i32
    return %c0_i32, %arg2 : i32, i32
  }
  func.func @transform_4(%arg0: i32, %arg1: i32, %arg2: i32) -> (i32, i32) {
    %c0_i32 = arith.constant 0 : i32
    return %arg1, %arg0 : i32, i32
  }
  func.func @transform_5(%arg0: i32, %arg1: i32, %arg2: i32) -> (i32, i32, i32) {
    %c0_i32 = arith.constant 0 : i32
    %c0_i32_0 = arith.constant 0 : i32
    return %arg1, %c0_i32, %arg0 : i32, i32, i32
  }
  func.func @transform_6(%arg0: i32, %arg1: i32, %arg2: i32) -> (i32, i32, i32) {
    %c0_i32 = arith.constant 0 : i32
    %c0_i32_0 = arith.constant 0 : i32
    return %arg1, %c0_i32, %arg0 : i32, i32, i32
  }
}

module attributes {stable_mosaic.version = 11 : i64} {
  func.func @kernel(%arg0: i32, %arg1: i32, %arg2: i32, %arg3: memref<32x512xbf16, #tpu.memory_space<vmem>>, %arg4: memref<512x128xbf16, #tpu.memory_space<vmem>>, %arg5: memref<1x512xf32, #tpu.memory_space<vmem>>, %arg6: memref<1x512xf32, #tpu.memory_space<vmem>>, %arg7: memref<32x128xbf16, #tpu.memory_space<vmem>>, %arg8: memref<1x1x128xf32, #tpu.memory_space<vmem>>, %arg9: memref<1x1x128xf32, #tpu.memory_space<vmem>>, %arg10: memref<32x128xf32, #tpu.memory_space<vmem>>) attributes {dimension_semantics = [#tpu.dimension_semantics<parallel>, #tpu.dimension_semantics<parallel>, #tpu.dimension_semantics<arbitrary>], iteration_bounds = array<i64: 1, 1, 1>, scalar_prefetch = 0 : i64, scratch_operands = 1 : i64, tpu.core_type = #tpu.core_type<tc>, window_params = [{transform_indices = @transform_0, window_bounds = array<i64: 32, 512>}, {transform_indices = @transform_1, window_bounds = array<i64: 512, 128>}, {transform_indices = @transform_2, window_bounds = array<i64: 1, 512>}, {transform_indices = @transform_3, window_bounds = array<i64: 1, 512>}, {transform_indices = @transform_4, window_bounds = array<i64: 32, 128>}, {transform_indices = @transform_5, window_bounds = array<i64: 1, 1, 128>}, {transform_indices = @transform_6, window_bounds = array<i64: 1, 1, 128>}]} {
    %c0_i32 = arith.constant 0 : i32
    %0 = arith.cmpi eq, %arg2, %c0_i32 : i32
    %1 = arith.extui %0 : i1 to i32
    %c0_i32_0 = arith.constant 0 : i32
    %2 = arith.cmpi ne, %1, %c0_i32_0 : i32
    scf.if %2 {
      %cst_16 = arith.constant 0.000000e+00 : f32
      %25 = vector.broadcast %cst_16 : f32 to vector<32x128xf32>
      %c0_17 = arith.constant 0 : index
      %c0_18 = arith.constant 0 : index
      %26 = vector.load %arg10[%c0_17, %c0_18] : memref<32x128xf32, #tpu.memory_space<vmem>>, vector<32x128xf32>
      tpu.vector_store %arg10[%c0_17, %c0_18], %25 {strides = array<i32>} : memref<32x128xf32, #tpu.memory_space<vmem>>, vector<32x128xf32>,
    } else {
    }
    %c0 = arith.constant 0 : index
    %c0_1 = arith.constant 0 : index
    %3 = vector.load %arg3[%c0, %c0_1] : memref<32x512xbf16, #tpu.memory_space<vmem>>, vector<32x512xbf16>
    %4 = arith.extf %3 : vector<32x512xbf16> to vector<32x512xf32>
    %c0_2 = arith.constant 0 : index
    %c0_3 = arith.constant 0 : index
    %5 = vector.load %arg5[%c0_2, %c0_3] : memref<1x512xf32, #tpu.memory_space<vmem>>, vector<1x512xf32>
    %6 = vector.broadcast %5 : vector<1x512xf32> to vector<32x512xf32>
    %7 = arith.mulf %4, %6 : vector<32x512xf32>
    %c0_4 = arith.constant 0 : index
    %c0_5 = arith.constant 0 : index
    %8 = vector.load %arg6[%c0_4, %c0_5] : memref<1x512xf32, #tpu.memory_space<vmem>>, vector<1x512xf32>
    %9 = vector.broadcast %8 : vector<1x512xf32> to vector<32x512xf32>
    %10 = arith.addf %7, %9 : vector<32x512xf32>
    %cst = arith.constant 0.000000e+00 : f32
    %11 = vector.broadcast %cst : f32 to vector<32x512xf32>
    %12 = arith.cmpf ogt, %10, %11 : vector<32x512xf32>
    %cst_6 = arith.constant 2.000000e-01 : f32
    %13 = vector.broadcast %cst_6 : f32 to vector<32x512xf32>
    %14 = arith.mulf %13, %10 : vector<32x512xf32>
    %15 = arith.select %12, %10, %14 : vector<32x512xi1>, vector<32x512xf32>
    %16 = arith.truncf %15 : vector<32x512xf32> to vector<32x512xbf16>
    %c0_7 = arith.constant 0 : index
    %c0_8 = arith.constant 0 : index
    %17 = vector.load %arg10[%c0_7, %c0_8] : memref<32x128xf32, #tpu.memory_space<vmem>>, vector<32x128xf32>
    %c0_9 = arith.constant 0 : index
    %c0_10 = arith.constant 0 : index
    %18 = vector.load %arg4[%c0_9, %c0_10] : memref<512x128xbf16, #tpu.memory_space<vmem>>, vector<512x128xbf16>
    %cst_11 = arith.constant dense<0.000000e+00> : vector<32x128xf32>
    %19 = tpu.matmul %16, %18, %cst_11 {dimension_numbers = #tpu.dot_dimension_numbers<[1], [0], [0], [1], [0, 0, 1, 1], [], []>} : vector<32x512xbf16>, vector<512x128xbf16>, vector<32x128xf32> -> vector<32x128xf32>
    %20 = arith.addf %17, %19 : vector<32x128xf32>
    %c0_12 = arith.constant 0 : index
    %c0_13 = arith.constant 0 : index
    %21 = vector.load %arg10[%c0_12, %c0_13] : memref<32x128xf32, #tpu.memory_space<vmem>>, vector<32x128xf32>
    tpu.vector_store %arg10[%c0_12, %c0_13], %20 {strides = array<i32>} : memref<32x128xf32, #tpu.memory_space<vmem>>, vector<32x128xf32>,
    %c0_i32_14 = arith.constant 0 : i32
    %22 = arith.cmpi eq, %arg2, %c0_i32_14 : i32
    %23 = arith.extui %22 : i1 to i32
    %c0_i32_15 = arith.constant 0 : i32
    %24 = arith.cmpi ne, %23, %c0_i32_15 : i32
    scf.if %24 {
      %c0_16 = arith.constant 0 : index
      %c0_17 = arith.constant 0 : index
      %25 = vector.load %arg10[%c0_16, %c0_17] : memref<32x128xf32, #tpu.memory_space<vmem>>, vector<32x128xf32>
      %26 = arith.truncf %25 : vector<32x128xf32> to vector<32x128xbf16>
      %c0_18 = arith.constant 0 : index
      %c0_19 = arith.constant 0 : index
      %27 = vector.load %arg7[%c0_18, %c0_19] : memref<32x128xbf16, #tpu.memory_space<vmem>>, vector<32x128xbf16>
      tpu.vector_store %arg7[%c0_18, %c0_19], %26 {strides = array<i32>} : memref<32x128xbf16, #tpu.memory_space<vmem>>, vector<32x128xbf16>,
      %cst_20 = arith.constant dense<0.000000e+00> : vector<128xf32>
      %28 = vector.multi_reduction <add>, %25, %cst_20 [0] : vector<32x128xf32> to vector<128xf32>
      %29 = vector.shape_cast %28 : vector<128xf32> to vector<1x128xf32>
      %30 = vector.shape_cast %29 : vector<1x128xf32> to vector<1x1x128xf32>
      %c0_21 = arith.constant 0 : index
      %c0_22 = arith.constant 0 : index
      %c0_23 = arith.constant 0 : index
      %31 = vector.load %arg8[%c0_21, %c0_22, %c0_23] : memref<1x1x128xf32, #tpu.memory_space<vmem>>, vector<1x1x128xf32>
      tpu.vector_store %arg8[%c0_21, %c0_22, %c0_23], %30 {strides = array<i32>} : memref<1x1x128xf32, #tpu.memory_space<vmem>>, vector<1x1x128xf32>,
      %32 = arith.mulf %25, %25 : vector<32x128xf32>
      %cst_24 = arith.constant dense<0.000000e+00> : vector<128xf32>
      %33 = vector.multi_reduction <add>, %32, %cst_24 [0] : vector<32x128xf32> to vector<128xf32>
      %34 = vector.shape_cast %33 : vector<128xf32> to vector<1x128xf32>
      %35 = vector.shape_cast %34 : vector<1x128xf32> to vector<1x1x128xf32>
      %c0_25 = arith.constant 0 : index
      %c0_26 = arith.constant 0 : index
      %c0_27 = arith.constant 0 : index
      %36 = vector.load %arg9[%c0_25, %c0_26, %c0_27] : memref<1x1x128xf32, #tpu.memory_space<vmem>>, vector<1x1x128xf32>
      tpu.vector_store %arg9[%c0_25, %c0_26, %c0_27], %35 {strides = array<i32>} : memref<1x1x128xf32, #tpu.memory_space<vmem>>, vector<1x1x128xf32>,
    } else {
    }
    return
  }
  func.func @transform_0(%arg0: i32, %arg1: i32, %arg2: i32) -> (i32, i32) {
    %c0_i32 = arith.constant 0 : i32
    return %arg1, %arg2 : i32, i32
  }
  func.func @transform_1(%arg0: i32, %arg1: i32, %arg2: i32) -> (i32, i32) {
    %c0_i32 = arith.constant 0 : i32
    return %arg2, %arg0 : i32, i32
  }
  func.func @transform_2(%arg0: i32, %arg1: i32, %arg2: i32) -> (i32, i32) {
    %c0_i32 = arith.constant 0 : i32
    %c0_i32_0 = arith.constant 0 : i32
    return %c0_i32, %arg2 : i32, i32
  }
  func.func @transform_3(%arg0: i32, %arg1: i32, %arg2: i32) -> (i32, i32) {
    %c0_i32 = arith.constant 0 : i32
    %c0_i32_0 = arith.constant 0 : i32
    return %c0_i32, %arg2 : i32, i32
  }
  func.func @transform_4(%arg0: i32, %arg1: i32, %arg2: i32) -> (i32, i32) {
    %c0_i32 = arith.constant 0 : i32
    return %arg1, %arg0 : i32, i32
  }
  func.func @transform_5(%arg0: i32, %arg1: i32, %arg2: i32) -> (i32, i32, i32) {
    %c0_i32 = arith.constant 0 : i32
    %c0_i32_0 = arith.constant 0 : i32
    return %arg1, %c0_i32, %arg0 : i32, i32, i32
  }
  func.func @transform_6(%arg0: i32, %arg1: i32, %arg2: i32) -> (i32, i32, i32) {
    %c0_i32 = arith.constant 0 : i32
    %c0_i32_0 = arith.constant 0 : i32
    return %arg1, %c0_i32, %arg0 : i32, i32, i32
  }
}

module attributes {stable_mosaic.version = 11 : i64} {
  func.func @kernel(%arg0: i32, %arg1: i32, %arg2: i32, %arg3: memref<16x1024xbf16, #tpu.memory_space<vmem>>, %arg4: memref<1024x128xbf16, #tpu.memory_space<vmem>>, %arg5: memref<1x1024xf32, #tpu.memory_space<vmem>>, %arg6: memref<1x1024xf32, #tpu.memory_space<vmem>>, %arg7: memref<1x128xf32, #tpu.memory_space<vmem>>, %arg8: memref<16x128xf32, #tpu.memory_space<vmem>>, %arg9: memref<16x128xf32, #tpu.memory_space<vmem>>) attributes {dimension_semantics = [#tpu.dimension_semantics<parallel>, #tpu.dimension_semantics<parallel>, #tpu.dimension_semantics<arbitrary>], iteration_bounds = array<i64: 1, 1, 1>, scalar_prefetch = 0 : i64, scratch_operands = 1 : i64, tpu.core_type = #tpu.core_type<tc>, window_params = [{transform_indices = @transform_0, window_bounds = array<i64: 16, 1024>}, {transform_indices = @transform_1, window_bounds = array<i64: 1024, 128>}, {transform_indices = @transform_2, window_bounds = array<i64: 1, 1024>}, {transform_indices = @transform_3, window_bounds = array<i64: 1, 1024>}, {transform_indices = @transform_4, window_bounds = array<i64: 1, 128>}, {transform_indices = @transform_5, window_bounds = array<i64: 16, 128>}]} {
    %c0_i32 = arith.constant 0 : i32
    %0 = arith.cmpi eq, %arg2, %c0_i32 : i32
    %1 = arith.extui %0 : i1 to i32
    %c0_i32_0 = arith.constant 0 : i32
    %2 = arith.cmpi ne, %1, %c0_i32_0 : i32
    scf.if %2 {
      %cst_16 = arith.constant 0.000000e+00 : f32
      %25 = vector.broadcast %cst_16 : f32 to vector<16x128xf32>
      %c0_17 = arith.constant 0 : index
      %c0_18 = arith.constant 0 : index
      %26 = vector.load %arg9[%c0_17, %c0_18] : memref<16x128xf32, #tpu.memory_space<vmem>>, vector<16x128xf32>
      tpu.vector_store %arg9[%c0_17, %c0_18], %25 {strides = array<i32>} : memref<16x128xf32, #tpu.memory_space<vmem>>, vector<16x128xf32>,
    } else {
    }
    %c0 = arith.constant 0 : index
    %c0_1 = arith.constant 0 : index
    %3 = vector.load %arg3[%c0, %c0_1] : memref<16x1024xbf16, #tpu.memory_space<vmem>>, vector<16x1024xbf16>
    %4 = arith.extf %3 : vector<16x1024xbf16> to vector<16x1024xf32>
    %c0_2 = arith.constant 0 : index
    %c0_3 = arith.constant 0 : index
    %5 = vector.load %arg5[%c0_2, %c0_3] : memref<1x1024xf32, #tpu.memory_space<vmem>>, vector<1x1024xf32>
    %6 = vector.broadcast %5 : vector<1x1024xf32> to vector<16x1024xf32>
    %7 = arith.mulf %4, %6 : vector<16x1024xf32>
    %c0_4 = arith.constant 0 : index
    %c0_5 = arith.constant 0 : index
    %8 = vector.load %arg6[%c0_4, %c0_5] : memref<1x1024xf32, #tpu.memory_space<vmem>>, vector<1x1024xf32>
    %9 = vector.broadcast %8 : vector<1x1024xf32> to vector<16x1024xf32>
    %10 = arith.addf %7, %9 : vector<16x1024xf32>
    %cst = arith.constant 0.000000e+00 : f32
    %11 = vector.broadcast %cst : f32 to vector<16x1024xf32>
    %12 = arith.cmpf ogt, %10, %11 : vector<16x1024xf32>
    %cst_6 = arith.constant 2.000000e-01 : f32
    %13 = vector.broadcast %cst_6 : f32 to vector<16x1024xf32>
    %14 = arith.mulf %13, %10 : vector<16x1024xf32>
    %15 = arith.select %12, %10, %14 : vector<16x1024xi1>, vector<16x1024xf32>
    %16 = arith.truncf %15 : vector<16x1024xf32> to vector<16x1024xbf16>
    %c0_7 = arith.constant 0 : index
    %c0_8 = arith.constant 0 : index
    %17 = vector.load %arg9[%c0_7, %c0_8] : memref<16x128xf32, #tpu.memory_space<vmem>>, vector<16x128xf32>
    %c0_9 = arith.constant 0 : index
    %c0_10 = arith.constant 0 : index
    %18 = vector.load %arg4[%c0_9, %c0_10] : memref<1024x128xbf16, #tpu.memory_space<vmem>>, vector<1024x128xbf16>
    %cst_11 = arith.constant dense<0.000000e+00> : vector<16x128xf32>
    %19 = tpu.matmul %16, %18, %cst_11 {dimension_numbers = #tpu.dot_dimension_numbers<[1], [0], [0], [1], [0, 0, 1, 1], [], []>} : vector<16x1024xbf16>, vector<1024x128xbf16>, vector<16x128xf32> -> vector<16x128xf32>
    %20 = arith.addf %17, %19 : vector<16x128xf32>
    %c0_12 = arith.constant 0 : index
    %c0_13 = arith.constant 0 : index
    %21 = vector.load %arg9[%c0_12, %c0_13] : memref<16x128xf32, #tpu.memory_space<vmem>>, vector<16x128xf32>
    tpu.vector_store %arg9[%c0_12, %c0_13], %20 {strides = array<i32>} : memref<16x128xf32, #tpu.memory_space<vmem>>, vector<16x128xf32>,
    %c0_i32_14 = arith.constant 0 : i32
    %22 = arith.cmpi eq, %arg2, %c0_i32_14 : i32
    %23 = arith.extui %22 : i1 to i32
    %c0_i32_15 = arith.constant 0 : i32
    %24 = arith.cmpi ne, %23, %c0_i32_15 : i32
    scf.if %24 {
      %c0_16 = arith.constant 0 : index
      %c0_17 = arith.constant 0 : index
      %25 = vector.load %arg9[%c0_16, %c0_17] : memref<16x128xf32, #tpu.memory_space<vmem>>, vector<16x128xf32>
      %c0_18 = arith.constant 0 : index
      %c0_19 = arith.constant 0 : index
      %26 = vector.load %arg7[%c0_18, %c0_19] : memref<1x128xf32, #tpu.memory_space<vmem>>, vector<1x128xf32>
      %27 = vector.broadcast %26 : vector<1x128xf32> to vector<16x128xf32>
      %28 = arith.addf %25, %27 : vector<16x128xf32>
      %cst_20 = arith.constant 0.000000e+00 : f32
      %29 = vector.broadcast %cst_20 : f32 to vector<16x128xf32>
      %30 = arith.subf %29, %28 : vector<16x128xf32>
      %31 = math.exp %30 : vector<16x128xf32>
      %cst_21 = arith.constant 1.000000e+00 : f32
      %32 = vector.broadcast %cst_21 : f32 to vector<16x128xf32>
      %33 = arith.addf %32, %31 : vector<16x128xf32>
      %cst_22 = arith.constant 1.000000e+00 : f32
      %34 = vector.broadcast %cst_22 : f32 to vector<16x128xf32>
      %35 = arith.divf %34, %33 : vector<16x128xf32>
      %c0_23 = arith.constant 0 : index
      %c0_24 = arith.constant 0 : index
      %36 = vector.load %arg8[%c0_23, %c0_24] : memref<16x128xf32, #tpu.memory_space<vmem>>, vector<16x128xf32>
      tpu.vector_store %arg8[%c0_23, %c0_24], %35 {strides = array<i32>} : memref<16x128xf32, #tpu.memory_space<vmem>>, vector<16x128xf32>,
    } else {
    }
    return
  }
  func.func @transform_0(%arg0: i32, %arg1: i32, %arg2: i32) -> (i32, i32) {
    %c0_i32 = arith.constant 0 : i32
    return %arg1, %arg2 : i32, i32
  }
  func.func @transform_1(%arg0: i32, %arg1: i32, %arg2: i32) -> (i32, i32) {
    %c0_i32 = arith.constant 0 : i32
    return %arg2, %arg0 : i32, i32
  }
  func.func @transform_2(%arg0: i32, %arg1: i32, %arg2: i32) -> (i32, i32) {
    %c0_i32 = arith.constant 0 : i32
    %c0_i32_0 = arith.constant 0 : i32
    return %c0_i32, %arg2 : i32, i32
  }
  func.func @transform_3(%arg0: i32, %arg1: i32, %arg2: i32) -> (i32, i32) {
    %c0_i32 = arith.constant 0 : i32
    %c0_i32_0 = arith.constant 0 : i32
    return %c0_i32, %arg2 : i32, i32
  }
  func.func @transform_4(%arg0: i32, %arg1: i32, %arg2: i32) -> (i32, i32) {
    %c0_i32 = arith.constant 0 : i32
    %c0_i32_0 = arith.constant 0 : i32
    return %c0_i32, %arg0 : i32, i32
  }
  func.func @transform_5(%arg0: i32, %arg1: i32, %arg2: i32) -> (i32, i32) {
    %c0_i32 = arith.constant 0 : i32
    return %arg1, %arg0 : i32, i32
  }
}

</mosaic_0001>

<bundles_post_ra>
// kernel: discriminator_forward.5
= control target key start
LH: loop header
LB: loop body
LE: loop exit
PB: predicated region body
PF: predicated region fallthrough
CT: control target
= control target key end

     0   :  { %s2529_s12 = smov 0   ;;  %s2531_s13 = smov 0   ;;  %s2750_s0 = inlined_call_operand.vmem [shape: bf16[2048,48], index: 0, kind: input, shape index: {}]   ;;  %s2751_s1 = inlined_call_operand.vmem [shape: bf16[48,128], index: 1, kind: input, shape index: {}]   ;;  %s2752_s2 = inlined_call_operand.vmem [shape: f32[1,128], index: 2, kind: input, shape index: {}]   ;;  %s2753_s3 = inlined_call_operand.vmem [shape: bf16[2048,128], index: 3, kind: output, shape index: {}]  }
   0x1   :  { %s2533_s14 = smov 0  }
   0x2 LB: > { %s28_s15 = sadd.s32 1, %s2503_s13  ;;  %p1921_p0 = scmp.ge.s32.totalorder %s2507_s14, 1  ;;  %s2507_s14 = sphi %s2533_s14, %s13_s14   ;;  %s2503_s13 = sphi %s2531_s13, %s2755_s13   ;;  %s2499_s12 = sphi %s2529_s12, %s2754_s12  }
   0x3   : > { %p30_p1 = scmp.ge.s32.totalorder %s28_s15, 4  ;;  %p188_p2 = scmp.lt.s32.totalorder %s2507_s14, 5 }
   0x5   : > { %s2757_s15 = smov (%p30_p1, %s28_s15), 0  ;;  %p189_p3 = pnand %p1921_p0, %p188_p2 }
   0x6   : > { %s1922_s18 = sshll.u32 (!%p189_p3), %s2499_s12, 6 }
   0x7   : > { %192 = sbr.rel (%p189_p3) target bundleno = 295 (0x127), region = 32  ;;  %p230_p4 = scmp.lt.s32.totalorder (!%p189_p3), %s1922_s18, 255 }
   0xc   : > { %v2450_v0 = vld [vmem:[%s2751_s1 + $0x10] sm:$0xff]   ;;  %v2451_v1 = vld [vmem:[%s2751_s1 + $0x8] sm:$0xff]   ;;  %s2759_s18 = smov (!%p230_p4, %s1922_s18), 255  ;;  %v2452_v2 = vld [vmem:[%s2751_s1] sm:$0xff]   ;;  %vm640_vm0 = vcmask 392192  }
   0xd   : > { %2350 = vmatprep.subr.bf16.mxu0 %v2450_v0  ;;  %2420 = vmatprep.subr.bf16.mxu1 %v2450_v0  ;;  %s1923_s23 = sshll.u32 %s2759_s18, 2  ;;  %v2633_v35 = vld [vmem:[%s2752_s2] ss:$0 sm:$0xff] }
   0xe   : > { %2351 = vmatpush3.bf16.msra.mxu0 %v2450_v0  ;;  %2423 = vmatpush3.bf16.msra.mxu1 %v2450_v0  ;;  %s2564_s26 = scalar_lea.vmem %s2750_s0, %s1923_s23  ;;  %s2648_s4 = scalar_lea.vmem %s2753_s3, %s1923_s23 }
   0xf   : > { %2352 = vmatprep.subr.bf16.mxu0 %v2451_v1  ;;  %2421 = vmatprep.subr.bf16.mxu1 %v2451_v1  ;;  %v2453_v3 = vld [vmem:[%s2564_s26] sm:$0xff]   ;;  %v2455_v5 = vld [vmem:[%s2564_s26 + $0x8] sm:$0xff]   ;;  %v2457_v7 = vld [vmem:[%s2564_s26 + $0x10] sm:$0xff]  }
  0x10   : > { %v2454_v4 = vld [vmem:[%s2564_s26 + $0x80] sm:$0xff]   ;;  %2356 = vmatprep.mubr.msk.bf16.mxu0 %vm640_vm0, %v2453_v3  ;;  %v2456_v6 = vld [vmem:[%s2564_s26 + $0x88] sm:$0xff]   ;;  %v2458_v8 = vld [vmem:[%s2564_s26 + $0x90] sm:$0xff]  }
  0x11   : > { %2388 = vmatprep.mubr.msk.bf16.mxu1 %vm640_vm0, %v2454_v4  ;;  %v2459_v9 = vld [vmem:[%s2564_s26 + $0x18] sm:$0xff]   ;;  %v2461_v11 = vld [vmem:[%s2564_s26 + $0x20] sm:$0xff]   ;;  %v2463_v13 = vld [vmem:[%s2564_s26 + $0x28] sm:$0xff]  }
  0x12   : > { %2353 = vmatpush3.bf16.msra.mxu0 %v2451_v1  ;;  %2424 = vmatpush3.bf16.msra.mxu1 %v2451_v1  ;;  %v2460_v10 = vld [vmem:[%s2564_s26 + $0x98] sm:$0xff]   ;;  %v2462_v12 = vld [vmem:[%s2564_s26 + $0xa0] sm:$0xff]   ;;  %v2464_v14 = vld [vmem:[%s2564_s26 + $0xa8] sm:$0xff]  }
  0x13   : > { %2354 = vmatprep.subr.bf16.mxu0 %v2452_v2  ;;  %2422 = vmatprep.subr.bf16.mxu1 %v2452_v2  ;;  %v2465_v15 = vld [vmem:[%s2564_s26 + $0x30] sm:$0xff]   ;;  %v2467_v17 = vld [vmem:[%s2564_s26 + $0x38] sm:$0xff]   ;;  %v2469_v19 = vld [vmem:[%s2564_s26 + $0x40] sm:$0xff]  }
  0x14   : > { %v2466_v16 = vld [vmem:[%s2564_s26 + $0xb0] sm:$0xff]   ;;  %v2468_v18 = vld [vmem:[%s2564_s26 + $0xb8] sm:$0xff]   ;;  %v2470_v20 = vld [vmem:[%s2564_s26 + $0xc0] sm:$0xff]  }
  0x15   : > { %v2471_v21 = vld [vmem:[%s2564_s26 + $0x48] sm:$0xff]   ;;  %v2473_v23 = vld [vmem:[%s2564_s26 + $0x50] sm:$0xff]   ;;  %v2475_v25 = vld [vmem:[%s2564_s26 + $0x58] sm:$0xff]  }
  0x16   : > { %2355 = vmatpush3.bf16.msra.mxu0 %v2452_v2  ;;  %2425 = vmatpush3.bf16.msra.mxu1 %v2452_v2  ;;  %v2472_v22 = vld [vmem:[%s2564_s26 + $0xc8] sm:$0xff]   ;;  %v2474_v24 = vld [vmem:[%s2564_s26 + $0xd0] sm:$0xff]   ;;  %v2476_v26 = vld [vmem:[%s2564_s26 + $0xd8] sm:$0xff]  }
  0x17   : > { %v2477_v27 = vld [vmem:[%s2564_s26 + $0x60] sm:$0xff]   ;;  %v2479_v29 = vld [vmem:[%s2564_s26 + $0x68] sm:$0xff]   ;;  %v2481_v31 = vld [vmem:[%s2564_s26 + $0x70] sm:$0xff]  }
  0x18   : > { %v2478_v28 = vld [vmem:[%s2564_s26 + $0xe0] sm:$0xff]   ;;  %v2480_v30 = vld [vmem:[%s2564_s26 + $0xe8] sm:$0xff]   ;;  %v2482_v32 = vld [vmem:[%s2564_s26 + $0xf0] sm:$0xff]  }
  0x19   : > { %2357 = vmatmul.mubr.msk.bf16.vlgmr.msra.gmra.mxu0 %vm640_vm0, %v2455_v5  ;;  %2389 = vmatmul.mubr.msk.bf16.vlgmr.msra.gmra.mxu1 %vm640_vm0, %v2456_v6  ;;  %v2483_v33 = vld [vmem:[%s2564_s26 + $0x78] sm:$0xff]  }
  0x1a   : > { %2360 = vmatprep.mubr.msk.bf16.mxu0 %vm640_vm0, %v2457_v7  ;;  %2392 = vmatprep.mubr.msk.bf16.mxu1 %vm640_vm0, %v2458_v8  ;;  %v2484_v34 = vld [vmem:[%s2564_s26 + $0xf8] sm:$0xff]  }
  0x21   : > { %2361 = vmatmul.mubr.msk.bf16.gmra.mxu0 %vm640_vm0, %v2459_v9  ;;  %2393 = vmatmul.mubr.msk.bf16.gmra.mxu1 %vm640_vm0, %v2460_v10 }
  0x22   : > { %2364 = vmatprep.mubr.msk.bf16.mxu0 %vm640_vm0, %v2461_v11  ;;  %2396 = vmatprep.mubr.msk.bf16.mxu1 %vm640_vm0, %v2462_v12 }
  0x29   : > { %2365 = vmatmul.mubr.msk.bf16.gmra.mxu0 %vm640_vm0, %v2463_v13  ;;  %2397 = vmatmul.mubr.msk.bf16.gmra.mxu1 %vm640_vm0, %v2464_v14 }
  0x2a   : > { %2368 = vmatprep.mubr.msk.bf16.mxu0 %vm640_vm0, %v2465_v15  ;;  %2400 = vmatprep.mubr.msk.bf16.mxu1 %vm640_vm0, %v2466_v16 }
  0x31   : > { %2369 = vmatmul.mubr.msk.bf16.gmra.mxu0 %vm640_vm0, %v2467_v17  ;;  %2401 = vmatmul.mubr.msk.bf16.gmra.mxu1 %vm640_vm0, %v2468_v18 }
  0x32   : > { %2372 = vmatprep.mubr.msk.bf16.mxu0 %vm640_vm0, %v2469_v19  ;;  %2404 = vmatprep.mubr.msk.bf16.mxu1 %vm640_vm0, %v2470_v20 }
  0x39   : > { %2373 = vmatmul.mubr.msk.bf16.gmra.mxu0 %vm640_vm0, %v2471_v21  ;;  %2405 = vmatmul.mubr.msk.bf16.gmra.mxu1 %vm640_vm0, %v2472_v22 }
  0x3a   : > { %2376 = vmatprep.mubr.msk.bf16.mxu0 %vm640_vm0, %v2473_v23  ;;  %2408 = vmatprep.mubr.msk.bf16.mxu1 %vm640_vm0, %v2474_v24 }
  0x41   : > { %2377 = vmatmul.mubr.msk.bf16.gmra.mxu0 %vm640_vm0, %v2475_v25  ;;  %2409 = vmatmul.mubr.msk.bf16.gmra.mxu1 %vm640_vm0, %v2476_v26 }
  0x42   : > { %2380 = vmatprep.mubr.msk.bf16.mxu0 %vm640_vm0, %v2477_v27  ;;  %2412 = vmatprep.mubr.msk.bf16.mxu1 %vm640_vm0, %v2478_v28 }
  0x49   : > { %2381 = vmatmul.mubr.msk.bf16.gmra.mxu0 %vm640_vm0, %v2479_v29  ;;  %2413 = vmatmul.mubr.msk.bf16.gmra.mxu1 %vm640_vm0, %v2480_v30 }
  0x4a   : > { %2384 = vmatprep.mubr.msk.bf16.mxu0 %vm640_vm0, %v2481_v31  ;;  %2416 = vmatprep.mubr.msk.bf16.mxu1 %vm640_vm0, %v2482_v32 }
  0x51   : > { %2385 = vmatmul.mubr.msk.bf16.gmra.mxu0 %vm640_vm0, %v2483_v33  ;;  %2417 = vmatmul.mubr.msk.bf16.gmra.mxu1 %vm640_vm0, %v2484_v34 }
  0xd9   : > { %v2358_v36 = vpop.f32.mrf.mxu0  ;;  %v2390_v37 = vpop.f32.mrf.mxu1 }
  0xda   : > { %v1230_v38 = vadd.f32 %v2358_v36, %v2633_v35  ;;  %v1262_v39 = vadd.f32 %v2390_v37, %v2633_v35 }
  0xdb   : > { %v771_v40 = vpop.f32.mrf.mxu0  ;;  %v899_v41 = vpop.f32.mrf.mxu1 }
  0xdc   : > { %vm1294_vm1 = vcmp.gt.f32.partialorder %v1230_v38, 0.0  ;;  %v1358_v42 = vmul.f32 0.2, %v1230_v38  ;;  %vm1326_vm2 = vcmp.gt.f32.partialorder %v1262_v39, 0.0  ;;  %v1390_v43 = vmul.f32 0.2, %v1262_v39 }
  0xdd   : > { %v1228_v44 = vadd.f32 %v2633_v35, %v771_v40  ;;  %v1260_v45 = vadd.f32 %v2633_v35, %v899_v41  ;;  %v2359_v46 = vpop.f32.mrf.mxu0  ;;  %v2391_v47 = vpop.f32.mrf.mxu1 }
  0xde   : > { %v1422_v48 = vsel %vm1294_vm1, %v1230_v38, %v1358_v42  ;;  %v1231_v49 = vadd.f32 %v2359_v46, %v2633_v35  ;;  %v1263_v50 = vadd.f32 %v2391_v47, %v2633_v35  ;;  %v1454_v51 = vsel %vm1326_vm2, %v1262_v39, %v1390_v43 }
  0xdf   : > { %vm1292_vm3 = vcmp.gt.f32.partialorder %v1228_v44, 0.0  ;;  %v1356_v52 = vmul.f32 0.2, %v1228_v44  ;;  %vm1324_vm4 = vcmp.gt.f32.partialorder %v1260_v45, 0.0  ;;  %v774_v53 = vpop.f32.mrf.mxu0  ;;  %v902_v54 = vpop.f32.mrf.mxu1  ;;  %v1388_v58 = vmul.f32 0.2, %v1260_v45 }
  0xe0   : > { %vm1295_vm5 = vcmp.gt.f32.partialorder %v1231_v49, 0.0  ;;  %v1359_v55 = vmul.f32 0.2, %v1231_v49  ;;  %vm1327_vm6 = vcmp.gt.f32.partialorder %v1263_v50, 0.0  ;;  %v1391_v56 = vmul.f32 0.2, %v1263_v50 }
  0xe1   : > { %v1420_v57 = vsel %vm1292_vm3, %v1228_v44, %v1356_v52  ;;  %v1229_v59 = vadd.f32 %v2633_v35, %v774_v53  ;;  %v1261_v60 = vadd.f32 %v2633_v35, %v902_v54  ;;  %v2362_v61 = vpop.f32.mrf.mxu0  ;;  %v2394_v62 = vpop.f32.mrf.mxu1  ;;  %v1452_v10 = vsel %vm1324_vm4, %v1260_v45, %v1388_v58 }
  0xe2   : > { %v1423_v63 = vsel %vm1295_vm5, %v1231_v49, %v1359_v55  ;;  %v1455_v0 = vsel %vm1327_vm6, %v1263_v50, %v1391_v56  ;;  %v1234_v1 = vadd.f32 %v2362_v61, %v2633_v35  ;;  %v1266_v2 = vadd.f32 %v2394_v62, %v2633_v35 }
  0xe3   : > { %v2132_v3 = vpack.c.bf16 %v1423_v63, %v1422_v48  ;;  %v2212_v4 = vpack.c.bf16 %v1455_v0, %v1454_v51  ;;  %vm1293_vm7 = vcmp.gt.f32.partialorder %v1229_v59, 0.0  ;;  %v1357_v5 = vmul.f32 0.2, %v1229_v59  ;;  %v787_v6 = vpop.f32.mrf.mxu0  ;;  %v915_v7 = vpop.f32.mrf.mxu1 }
  0xe4   : > { %vm1325_vm8 = vcmp.gt.f32.partialorder %v1261_v60, 0.0  ;;  %v1389_v8 = vmul.f32 0.2, %v1261_v60  ;;  %vm1298_vm9 = vcmp.gt.f32.partialorder %v1234_v1, 0.0  ;;  %v1362_v9 = vmul.f32 0.2, %v1234_v1 }
  0xe5   : > { %2284 = vst [vmem:[%s2648_s4 + $0x8] sm:$0xff] %v2132_v3   ;;  %2300 = vst [vmem:[%s2648_s4 + $0x88] sm:$0xff] %v2212_v4   ;;  %v1421_v11 = vsel %vm1293_vm7, %v1229_v59, %v1357_v5  ;;  %v1394_v12 = vmul.f32 0.2, %v1266_v2  ;;  %v1232_v13 = vadd.f32 %v2633_v35, %v787_v6  ;;  %v2363_v14 = vpop.f32.mrf.mxu0  ;;  %v2395_v15 = vpop.f32.mrf.mxu1  ;;  %vm1330_vm10 = vcmp.gt.f32.partialorder %v1266_v2, 0.0 }
  0xe6   : > { %v2127_v16 = vpack.c.bf16 %v1421_v11, %v1420_v57  ;;  %v1453_v17 = vsel %vm1325_vm8, %v1261_v60, %v1389_v8  ;;  %v1264_v18 = vadd.f32 %v2633_v35, %v915_v7  ;;  %v1426_v20 = vsel %vm1298_vm9, %v1234_v1, %v1362_v9 }
  0xe7   : > { %v2207_v19 = vpack.c.bf16 %v1453_v17, %v1452_v10  ;;  %vm1296_vm11 = vcmp.gt.f32.partialorder %v1232_v13, 0.0  ;;  %v1360_v21 = vmul.f32 0.2, %v1232_v13  ;;  %v790_v22 = vpop.f32.mrf.mxu0  ;;  %v918_v23 = vpop.f32.mrf.mxu1  ;;  %v1235_v25 = vadd.f32 %v2363_v14, %v2633_v35 }
  0xe8   : > { %2128 = vst [vmem:[%s2648_s4] sm:$0xff] %v2127_v16   ;;  %vm1328_vm12 = vcmp.gt.f32.partialorder %v1264_v18, 0.0  ;;  %v1392_v24 = vmul.f32 0.2, %v1264_v18  ;;  %v1267_v26 = vadd.f32 %v2395_v15, %v2633_v35  ;;  %v1458_v27 = vsel %vm1330_vm10, %v1266_v2, %v1394_v12 }
  0xe9   : > { %2299 = vst [vmem:[%s2648_s4 + $0x80] sm:$0xff] %v2207_v19   ;;  %v1424_v28 = vsel %vm1296_vm11, %v1232_v13, %v1360_v21  ;;  %v1233_v29 = vadd.f32 %v2633_v35, %v790_v22  ;;  %v1265_v30 = vadd.f32 %v2633_v35, %v918_v23  ;;  %v2366_v31 = vpop.f32.mrf.mxu0  ;;  %v2398_v32 = vpop.f32.mrf.mxu1  ;;  %vm1299_vm13 = vcmp.gt.f32.partialorder %v1235_v25, 0.0 }
  0xea   : > { %v1456_v33 = vsel %vm1328_vm12, %v1264_v18, %v1392_v24  ;;  %v1363_v34 = vmul.f32 0.2, %v1235_v25  ;;  %vm1331_vm14 = vcmp.gt.f32.partialorder %v1267_v26, 0.0  ;;  %v1395_v36 = vmul.f32 0.2, %v1267_v26 }
  0xeb   : > { %vm1297_vm15 = vcmp.gt.f32.partialorder %v1233_v29, 0.0  ;;  %v1361_v37 = vmul.f32 0.2, %v1233_v29  ;;  %vm1329_vm0 = vcmp.gt.f32.partialorder %v1265_v30, 0.0  ;;  %v803_v38 = vpop.f32.mrf.mxu0  ;;  %v931_v39 = vpop.f32.mrf.mxu1  ;;  %v1393_v41 = vmul.f32 0.2, %v1265_v30 }
  0xec   : > { %v1427_v40 = vsel %vm1299_vm13, %v1235_v25, %v1363_v34  ;;  %v1238_v42 = vadd.f32 %v2366_v31, %v2633_v35  ;;  %v1270_v43 = vadd.f32 %v2398_v32, %v2633_v35  ;;  %v1459_v45 = vsel %vm1331_vm14, %v1267_v26, %v1395_v36 }
  0xed   : > { %v2142_v44 = vpack.c.bf16 %v1427_v40, %v1426_v20  ;;  %v1425_v46 = vsel %vm1297_vm15, %v1233_v29, %v1361_v37  ;;  %v1236_v47 = vadd.f32 %v2633_v35, %v803_v38  ;;  %v2367_v48 = vpop.f32.mrf.mxu0  ;;  %v2399_v49 = vpop.f32.mrf.mxu1  ;;  %v2222_v50 = vpack.c.bf16 %v1459_v45, %v1458_v27 }
  0xee   : > { %v2137_v51 = vpack.c.bf16 %v1425_v46, %v1424_v28  ;;  %v1457_v52 = vsel %vm1329_vm0, %v1265_v30, %v1393_v41  ;;  %vm1302_vm1 = vcmp.gt.f32.partialorder %v1238_v42, 0.0  ;;  %v1366_v54 = vmul.f32 0.2, %v1238_v42 }
  0xef   : > { %2286 = vst [vmem:[%s2648_s4 + $0x18] sm:$0xff] %v2142_v44   ;;  %v2217_v53 = vpack.c.bf16 %v1457_v52, %v1456_v33  ;;  %vm1334_vm2 = vcmp.gt.f32.partialorder %v1270_v43, 0.0  ;;  %v1398_v55 = vmul.f32 0.2, %v1270_v43  ;;  %v806_v56 = vpop.f32.mrf.mxu0  ;;  %v934_v57 = vpop.f32.mrf.mxu1  ;;  %2302 = vst [vmem:[%s2648_s4 + $0x98] sm:$0xff] %v2222_v50   ;;  %vm1300_vm3 = vcmp.gt.f32.partialorder %v1236_v47, 0.0 }
  0xf0   : > { %2285 = vst [vmem:[%s2648_s4 + $0x10] sm:$0xff] %v2137_v51   ;;  %v1364_v58 = vmul.f32 0.2, %v1236_v47  ;;  %v1268_v59 = vadd.f32 %v2633_v35, %v931_v39  ;;  %v1239_v60 = vadd.f32 %v2367_v48, %v2633_v35  ;;  %v1430_v61 = vsel %vm1302_vm1, %v1238_v42, %v1366_v54 }
  0xf1   : > { %2301 = vst [vmem:[%s2648_s4 + $0x90] sm:$0xff] %v2217_v53   ;;  %v1462_v62 = vsel %vm1334_vm2, %v1270_v43, %v1398_v55  ;;  %v1271_v63 = vadd.f32 %v2399_v49, %v2633_v35  ;;  %v1237_v0 = vadd.f32 %v2633_v35, %v806_v56  ;;  %v2370_v1 = vpop.f32.mrf.mxu0  ;;  %v2402_v2 = vpop.f32.mrf.mxu1  ;;  %v1269_v11 = vadd.f32 %v2633_v35, %v934_v57 }
  0xf2   : > { %v1428_v3 = vsel %vm1300_vm3, %v1236_v47, %v1364_v58  ;;  %vm1332_vm4 = vcmp.gt.f32.partialorder %v1268_v59, 0.0  ;;  %v1396_v4 = vmul.f32 0.2, %v1268_v59  ;;  %vm1303_vm5 = vcmp.gt.f32.partialorder %v1239_v60, 0.0 }
  0xf3   : > { %v1367_v5 = vmul.f32 0.2, %v1239_v60  ;;  %vm1335_vm6 = vcmp.gt.f32.partialorder %v1271_v63, 0.0  ;;  %v1399_v6 = vmul.f32 0.2, %v1271_v63  ;;  %vm1301_vm7 = vcmp.gt.f32.partialorder %v1237_v0, 0.0  ;;  %v819_v7 = vpop.f32.mrf.mxu0  ;;  %v947_v8 = vpop.f32.mrf.mxu1 }
  0xf4   : > { %v1460_v9 = vsel %vm1332_vm4, %v1268_v59, %v1396_v4  ;;  %v1365_v10 = vmul.f32 0.2, %v1237_v0  ;;  %v1242_v12 = vadd.f32 %v2370_v1, %v2633_v35  ;;  %v1274_v15 = vadd.f32 %v2402_v2, %v2633_v35 }
  0xf5   : > { %v1431_v13 = vsel %vm1303_vm5, %v1239_v60, %v1367_v5  ;;  %v1463_v14 = vsel %vm1335_vm6, %v1271_v63, %v1399_v6  ;;  %v1240_v16 = vadd.f32 %v2633_v35, %v819_v7  ;;  %v2371_v17 = vpop.f32.mrf.mxu0  ;;  %v2403_v18 = vpop.f32.mrf.mxu1  ;;  %vm1333_vm8 = vcmp.gt.f32.partialorder %v1269_v11, 0.0 }
  0xf6   : > { %v2152_v19 = vpack.c.bf16 %v1431_v13, %v1430_v61  ;;  %v2232_v20 = vpack.c.bf16 %v1463_v14, %v1462_v62  ;;  %v1429_v21 = vsel %vm1301_vm7, %v1237_v0, %v1365_v10  ;;  %v1397_v23 = vmul.f32 0.2, %v1269_v11 }
  0xf7   : > { %v2147_v22 = vpack.c.bf16 %v1429_v21, %v1428_v3  ;;  %vm1306_vm9 = vcmp.gt.f32.partialorder %v1242_v12, 0.0  ;;  %v1370_v24 = vmul.f32 0.2, %v1242_v12  ;;  %v822_v25 = vpop.f32.mrf.mxu0  ;;  %v950_v26 = vpop.f32.mrf.mxu1  ;;  %vm1338_vm10 = vcmp.gt.f32.partialorder %v1274_v15, 0.0 }
  0xf8   : > { %2288 = vst [vmem:[%s2648_s4 + $0x28] sm:$0xff] %v2152_v19   ;;  %2304 = vst [vmem:[%s2648_s4 + $0xa8] sm:$0xff] %v2232_v20   ;;  %v1402_v27 = vmul.f32 0.2, %v1274_v15  ;;  %vm1304_vm11 = vcmp.gt.f32.partialorder %v1240_v16, 0.0  ;;  %v1461_v29 = vsel %vm1333_vm8, %v1269_v11, %v1397_v23  ;;  %v1272_v31 = vadd.f32 %v2633_v35, %v947_v8 }
  0xf9   : > { %v1368_v28 = vmul.f32 0.2, %v1240_v16  ;;  %2287 = vst [vmem:[%s2648_s4 + $0x20] sm:$0xff] %v2147_v22   ;;  %v1434_v30 = vsel %vm1306_vm9, %v1242_v12, %v1370_v24  ;;  %v1243_v32 = vadd.f32 %v2371_v17, %v2633_v35  ;;  %v2374_v33 = vpop.f32.mrf.mxu0  ;;  %v2406_v34 = vpop.f32.mrf.mxu1  ;;  %v2227_v36 = vpack.c.bf16 %v1461_v29, %v1460_v9 }
  0xfa   : > { %v1466_v37 = vsel %vm1338_vm10, %v1274_v15, %v1402_v27  ;;  %v1275_v39 = vadd.f32 %v2403_v18, %v2633_v35  ;;  %vm1336_vm12 = vcmp.gt.f32.partialorder %v1272_v31, 0.0  ;;  %v1400_v40 = vmul.f32 0.2, %v1272_v31 }
  0xfb   : > { %v1432_v38 = vsel %vm1304_vm11, %v1240_v16, %v1368_v28  ;;  %vm1307_vm13 = vcmp.gt.f32.partialorder %v1243_v32, 0.0  ;;  %v1371_v41 = vmul.f32 0.2, %v1243_v32  ;;  %v835_v42 = vpop.f32.mrf.mxu0  ;;  %v963_v43 = vpop.f32.mrf.mxu1  ;;  %2303 = vst [vmem:[%s2648_s4 + $0xa0] sm:$0xff] %v2227_v36   ;;  %v1241_v45 = vadd.f32 %v2633_v35, %v822_v25 }
  0xfc   : > { %vm1339_vm14 = vcmp.gt.f32.partialorder %v1275_v39, 0.0  ;;  %v1403_v44 = vmul.f32 0.2, %v1275_v39  ;;  %v1273_v46 = vadd.f32 %v2633_v35, %v950_v26  ;;  %v1464_v47 = vsel %vm1336_vm12, %v1272_v31, %v1400_v40 }
  0xfd   : > { %v1435_v48 = vsel %vm1307_vm13, %v1243_v32, %v1371_v41  ;;  %v1246_v49 = vadd.f32 %v2374_v33, %v2633_v35  ;;  %v1278_v50 = vadd.f32 %v2406_v34, %v2633_v35  ;;  %v2375_v51 = vpop.f32.mrf.mxu0  ;;  %v2407_v52 = vpop.f32.mrf.mxu1  ;;  %vm1305_vm15 = vcmp.gt.f32.partialorder %v1241_v45, 0.0 }
  0xfe   : > { %v2162_v53 = vpack.c.bf16 %v1435_v48, %v1434_v30  ;;  %v1467_v54 = vsel %vm1339_vm14, %v1275_v39, %v1403_v44  ;;  %v1369_v55 = vmul.f32 0.2, %v1241_v45  ;;  %vm1337_vm0 = vcmp.gt.f32.partialorder %v1273_v46, 0.0 }
  0xff   : > { %v2242_v56 = vpack.c.bf16 %v1467_v54, %v1466_v37  ;;  %v1401_v57 = vmul.f32 0.2, %v1273_v46  ;;  %vm1310_vm1 = vcmp.gt.f32.partialorder %v1246_v49, 0.0  ;;  %v838_v58 = vpop.f32.mrf.mxu0  ;;  %v966_v59 = vpop.f32.mrf.mxu1  ;;  %v1374_v61 = vmul.f32 0.2, %v1246_v49 }
 0x100   : > { %2290 = vst [vmem:[%s2648_s4 + $0x38] sm:$0xff] %v2162_v53   ;;  %v1433_v60 = vsel %vm1305_vm15, %v1241_v45, %v1369_v55  ;;  %vm1342_vm2 = vcmp.gt.f32.partialorder %v1278_v50, 0.0  ;;  %v1406_v62 = vmul.f32 0.2, %v1278_v50  ;;  %v1244_v1 = vadd.f32 %v2633_v35, %v835_v42 }
 0x101   : > { %2306 = vst [vmem:[%s2648_s4 + $0xb8] sm:$0xff] %v2242_v56   ;;  %v2157_v63 = vpack.c.bf16 %v1433_v60, %v1432_v38  ;;  %v1465_v0 = vsel %vm1337_vm0, %v1273_v46, %v1401_v57  ;;  %v1276_v2 = vadd.f32 %v2633_v35, %v963_v43  ;;  %v2378_v3 = vpop.f32.mrf.mxu0  ;;  %v2410_v4 = vpop.f32.mrf.mxu1  ;;  %v1438_v6 = vsel %vm1310_vm1, %v1246_v49, %v1374_v61 }
 0x102   : > { %v2237_v5 = vpack.c.bf16 %v1465_v0, %v1464_v47  ;;  %v1470_v7 = vsel %vm1342_vm2, %v1278_v50, %v1406_v62  ;;  %v1247_v8 = vadd.f32 %v2375_v51, %v2633_v35  ;;  %vm1308_vm3 = vcmp.gt.f32.partialorder %v1244_v1, 0.0 }
 0x103   : > { %2289 = vst [vmem:[%s2648_s4 + $0x30] sm:$0xff] %v2157_v63   ;;  %v1372_v9 = vmul.f32 0.2, %v1244_v1  ;;  %vm1340_vm4 = vcmp.gt.f32.partialorder %v1276_v2, 0.0  ;;  %v1404_v10 = vmul.f32 0.2, %v1276_v2  ;;  %v851_v11 = vpop.f32.mrf.mxu0  ;;  %v979_v12 = vpop.f32.mrf.mxu1  ;;  %v1279_v14 = vadd.f32 %v2407_v52, %v2633_v35 }
 0x104   : > { %2305 = vst [vmem:[%s2648_s4 + $0xb0] sm:$0xff] %v2237_v5   ;;  %vm1311_vm5 = vcmp.gt.f32.partialorder %v1247_v8, 0.0  ;;  %v1375_v13 = vmul.f32 0.2, %v1247_v8  ;;  %v1245_v15 = vadd.f32 %v2633_v35, %v838_v58  ;;  %v1277_v18 = vadd.f32 %v2633_v35, %v966_v59 }
 0x105   : > { %v1436_v16 = vsel %vm1308_vm3, %v1244_v1, %v1372_v9  ;;  %v1468_v17 = vsel %vm1340_vm4, %v1276_v2, %v1404_v10  ;;  %v1250_v19 = vadd.f32 %v2378_v3, %v2633_v35  ;;  %v2379_v20 = vpop.f32.mrf.mxu0  ;;  %v2411_v21 = vpop.f32.mrf.mxu1  ;;  %vm1343_vm6 = vcmp.gt.f32.partialorder %v1279_v14, 0.0 }
 0x106   : > { %v1439_v22 = vsel %vm1311_vm5, %v1247_v8, %v1375_v13  ;;  %v1407_v23 = vmul.f32 0.2, %v1279_v14  ;;  %vm1309_vm7 = vcmp.gt.f32.partialorder %v1245_v15, 0.0  ;;  %v1373_v25 = vmul.f32 0.2, %v1245_v15 }
 0x107   : > { %v2172_v24 = vpack.c.bf16 %v1439_v22, %v1438_v6  ;;  %vm1341_vm8 = vcmp.gt.f32.partialorder %v1277_v18, 0.0  ;;  %v1405_v26 = vmul.f32 0.2, %v1277_v18  ;;  %v854_v27 = vpop.f32.mrf.mxu0  ;;  %v982_v28 = vpop.f32.mrf.mxu1  ;;  %vm1314_vm9 = vcmp.gt.f32.partialorder %v1250_v19, 0.0 }
 0x108   : > { %v1471_v29 = vsel %vm1343_vm6, %v1279_v14, %v1407_v23  ;;  %v1378_v30 = vmul.f32 0.2, %v1250_v19  ;;  %v1282_v31 = vadd.f32 %v2410_v4, %v2633_v35  ;;  %v1437_v33 = vsel %vm1309_vm7, %v1245_v15, %v1373_v25 }
 0x109   : > { %2292 = vst [vmem:[%s2648_s4 + $0x48] sm:$0xff] %v2172_v24   ;;  %v2252_v32 = vpack.c.bf16 %v1471_v29, %v1470_v7  ;;  %v1469_v34 = vsel %vm1341_vm8, %v1277_v18, %v1405_v26  ;;  %v1248_v36 = vadd.f32 %v2633_v35, %v851_v11  ;;  %v2382_v37 = vpop.f32.mrf.mxu0  ;;  %v2414_v38 = vpop.f32.mrf.mxu1  ;;  %v2167_v39 = vpack.c.bf16 %v1437_v33, %v1436_v16 }
 0x10a   : > { %v2247_v40 = vpack.c.bf16 %v1469_v34, %v1468_v17  ;;  %v1442_v41 = vsel %vm1314_vm9, %v1250_v19, %v1378_v30  ;;  %vm1346_vm10 = vcmp.gt.f32.partialorder %v1282_v31, 0.0  ;;  %v1410_v42 = vmul.f32 0.2, %v1282_v31 }
 0x10b   : > { %2308 = vst [vmem:[%s2648_s4 + $0xc8] sm:$0xff] %v2252_v32   ;;  %vm1312_vm11 = vcmp.gt.f32.partialorder %v1248_v36, 0.0  ;;  %v1376_v43 = vmul.f32 0.2, %v1248_v36  ;;  %v1280_v44 = vadd.f32 %v2633_v35, %v979_v12  ;;  %v867_v45 = vpop.f32.mrf.mxu0  ;;  %v995_v46 = vpop.f32.mrf.mxu1  ;;  %2291 = vst [vmem:[%s2648_s4 + $0x40] sm:$0xff] %v2167_v39   ;;  %v1251_v47 = vadd.f32 %v2379_v20, %v2633_v35 }
 0x10c   : > { %2307 = vst [vmem:[%s2648_s4 + $0xc0] sm:$0xff] %v2247_v40   ;;  %v1283_v48 = vadd.f32 %v2411_v21, %v2633_v35  ;;  %v1249_v49 = vadd.f32 %v2633_v35, %v854_v27  ;;  %v1281_v50 = vadd.f32 %v2633_v35, %v982_v28  ;;  %v1474_v51 = vsel %vm1346_vm10, %v1282_v31, %v1410_v42 }
 0x10d   : > { %v1440_v52 = vsel %vm1312_vm11, %v1248_v36, %v1376_v43  ;;  %vm1344_vm12 = vcmp.gt.f32.partialorder %v1280_v44, 0.0  ;;  %v1408_v53 = vmul.f32 0.2, %v1280_v44  ;;  %v2383_v54 = vpop.f32.mrf.mxu0  ;;  %v2415_v55 = vpop.f32.mrf.mxu1  ;;  %vm1315_vm13 = vcmp.gt.f32.partialorder %v1251_v47, 0.0 }
 0x10e   : > { %v1379_v56 = vmul.f32 0.2, %v1251_v47  ;;  %vm1347_vm14 = vcmp.gt.f32.partialorder %v1283_v48, 0.0  ;;  %v1411_v57 = vmul.f32 0.2, %v1283_v48  ;;  %vm1313_vm15 = vcmp.gt.f32.partialorder %v1249_v49, 0.0 }
 0x10f   : > { %v1472_v58 = vsel %vm1344_vm12, %v1280_v44, %v1408_v53  ;;  %v1377_v59 = vmul.f32 0.2, %v1249_v49  ;;  %vm1345_vm0 = vcmp.gt.f32.partialorder %v1281_v50, 0.0  ;;  %v870_v60 = vpop.f32.mrf.mxu0  ;;  %v998_v61 = vpop.f32.mrf.mxu1  ;;  %v1409_v0 = vmul.f32 0.2, %v1281_v50 }
 0x110   : > { %v1443_v62 = vsel %vm1315_vm13, %v1251_v47, %v1379_v56  ;;  %v1475_v63 = vsel %vm1347_vm14, %v1283_v48, %v1411_v57  ;;  %v1254_v1 = vadd.f32 %v2382_v37, %v2633_v35  ;;  %v1286_v5 = vadd.f32 %v2414_v38, %v2633_v35 }
 0x111   : > { %v2182_v2 = vpack.c.bf16 %v1443_v62, %v1442_v41  ;;  %v2262_v3 = vpack.c.bf16 %v1475_v63, %v1474_v51  ;;  %v1441_v4 = vsel %vm1313_vm15, %v1249_v49, %v1377_v59  ;;  %v2386_v6 = vpop.f32.mrf.mxu0  ;;  %v2418_v7 = vpop.f32.mrf.mxu1  ;;  %v1473_v9 = vsel %vm1345_vm0, %v1281_v50, %v1409_v0 }
 0x112   : > { %v2177_v8 = vpack.c.bf16 %v1441_v4, %v1440_v52  ;;  %vm1318_vm1 = vcmp.gt.f32.partialorder %v1254_v1, 0.0  ;;  %v1382_v10 = vmul.f32 0.2, %v1254_v1  ;;  %v2257_v11 = vpack.c.bf16 %v1473_v9, %v1472_v58 }
 0x113   : > { %2294 = vst [vmem:[%s2648_s4 + $0x58] sm:$0xff] %v2182_v2   ;;  %2310 = vst [vmem:[%s2648_s4 + $0xd8] sm:$0xff] %v2262_v3   ;;  %vm1350_vm2 = vcmp.gt.f32.partialorder %v1286_v5, 0.0  ;;  %v1414_v12 = vmul.f32 0.2, %v1286_v5  ;;  %v1252_v13 = vadd.f32 %v2633_v35, %v867_v45  ;;  %v1284_v14 = vadd.f32 %v2633_v35, %v995_v46  ;;  %v883_v20 = vpop.f32.mrf.mxu0  ;;  %v1011_v21 = vpop.f32.mrf.mxu1 }
 0x114   : > { %2293 = vst [vmem:[%s2648_s4 + $0x50] sm:$0xff] %v2177_v8   ;;  %v1255_v15 = vadd.f32 %v2383_v54, %v2633_v35  ;;  %v1287_v16 = vadd.f32 %v2415_v55, %v2633_v35  ;;  %2309 = vst [vmem:[%s2648_s4 + $0xd0] sm:$0xff] %v2257_v11   ;;  %v1446_v17 = vsel %vm1318_vm1, %v1254_v1, %v1382_v10 }
 0x115   : > { %vm1316_vm3 = vcmp.gt.f32.partialorder %v1252_v13, 0.0  ;;  %v1380_v18 = vmul.f32 0.2, %v1252_v13  ;;  %v1253_v19 = vadd.f32 %v2633_v35, %v870_v60  ;;  %v1478_v22 = vsel %vm1350_vm2, %v1286_v5, %v1414_v12  ;;  %v2387_v34 = vpop.f32.mrf.mxu0  ;;  %v2419_v36 = vpop.f32.mrf.mxu1 }
 0x116   : > { %vm1348_vm4 = vcmp.gt.f32.partialorder %v1284_v14, 0.0  ;;  %vm1319_vm5 = vcmp.gt.f32.partialorder %v1255_v15, 0.0  ;;  %v1383_v23 = vmul.f32 0.2, %v1255_v15  ;;  %v1412_v24 = vmul.f32 0.2, %v1284_v14 }
 0x117   : > { %vm1351_vm6 = vcmp.gt.f32.partialorder %v1287_v16, 0.0  ;;  %v1415_v25 = vmul.f32 0.2, %v1287_v16  ;;  %vm1317_vm7 = vcmp.gt.f32.partialorder %v1253_v19, 0.0  ;;  %v1444_v26 = vsel %vm1316_vm3, %v1252_v13, %v1380_v18  ;;  %v886_v50 = vpop.f32.mrf.mxu0  ;;  %v1014_v51 = vpop.f32.mrf.mxu1 }
 0x118   : > { %v1447_v27 = vsel %vm1319_vm5, %v1255_v15, %v1383_v23  ;;  %v1381_v28 = vmul.f32 0.2, %v1253_v19  ;;  %v1285_v29 = vadd.f32 %v2633_v35, %v998_v61  ;;  %v1258_v32 = vadd.f32 %v2386_v6, %v2633_v35 }
 0x119   : > { %v2192_v30 = vpack.c.bf16 %v1447_v27, %v1446_v17  ;;  %v1479_v31 = vsel %vm1351_vm6, %v1287_v16, %v1415_v25  ;;  %v1290_v33 = vadd.f32 %v2418_v7, %v2633_v35  ;;  %v1476_v40 = vsel %vm1348_vm4, %v1284_v14, %v1412_v24 }
 0x11a   : > { %v2272_v37 = vpack.c.bf16 %v1479_v31, %v1478_v22  ;;  %v1445_v38 = vsel %vm1317_vm7, %v1253_v19, %v1381_v28  ;;  %vm1349_vm8 = vcmp.gt.f32.partialorder %v1285_v29, 0.0  ;;  %v1413_v39 = vmul.f32 0.2, %v1285_v29 }
 0x11b   : > { %2296 = vst [vmem:[%s2648_s4 + $0x68] sm:$0xff] %v2192_v30   ;;  %v2187_v41 = vpack.c.bf16 %v1445_v38, %v1444_v26  ;;  %vm1322_vm9 = vcmp.gt.f32.partialorder %v1258_v32, 0.0  ;;  %v1386_v42 = vmul.f32 0.2, %v1258_v32  ;;  %vm1354_vm10 = vcmp.gt.f32.partialorder %v1290_v33, 0.0 }
 0x11c   : > { %2312 = vst [vmem:[%s2648_s4 + $0xe8] sm:$0xff] %v2272_v37   ;;  %v1477_v43 = vsel %vm1349_vm8, %v1285_v29, %v1413_v39  ;;  %v1418_v44 = vmul.f32 0.2, %v1290_v33  ;;  %v1256_v45 = vadd.f32 %v2633_v35, %v883_v20  ;;  %v1288_v47 = vadd.f32 %v2633_v35, %v1011_v21 }
 0x11d   : > { %2295 = vst [vmem:[%s2648_s4 + $0x60] sm:$0xff] %v2187_v41   ;;  %v2267_v46 = vpack.c.bf16 %v1477_v43, %v1476_v40  ;;  %v1259_v48 = vadd.f32 %v2387_v34, %v2633_v35  ;;  %v1291_v49 = vadd.f32 %v2419_v36, %v2633_v35  ;;  %v1450_v52 = vsel %vm1322_vm9, %v1258_v32, %v1386_v42 }
 0x11e   : > { %v1482_v53 = vsel %vm1354_vm10, %v1290_v33, %v1418_v44  ;;  %v1384_v55 = vmul.f32 0.2, %v1256_v45  ;;  %v1257_v57 = vadd.f32 %v2633_v35, %v886_v50  ;;  %v1289_v58 = vadd.f32 %v2633_v35, %v1014_v51 }
 0x11f   : > { %2311 = vst [vmem:[%s2648_s4 + $0xe0] sm:$0xff] %v2267_v46   ;;  %vm1323_vm11 = vcmp.gt.f32.partialorder %v1259_v48, 0.0  ;;  %v1387_v54 = vmul.f32 0.2, %v1259_v48  ;;  %vm1355_vm12 = vcmp.gt.f32.partialorder %v1291_v49, 0.0  ;;  %vm1320_vm13 = vcmp.gt.f32.partialorder %v1256_v45, 0.0 }
 0x120   : > { %v1419_v56 = vmul.f32 0.2, %v1291_v49  ;;  %vm1352_vm14 = vcmp.gt.f32.partialorder %v1288_v47, 0.0  ;;  %v1416_v59 = vmul.f32 0.2, %v1288_v47  ;;  %vm1321_vm15 = vcmp.gt.f32.partialorder %v1257_v57, 0.0 }
 0x121   : > { %v1451_v60 = vsel %vm1323_vm11, %v1259_v48, %v1387_v54  ;;  %v1385_v63 = vmul.f32 0.2, %v1257_v57  ;;  %vm1353_vm0 = vcmp.gt.f32.partialorder %v1289_v58, 0.0  ;;  %v1417_v1 = vmul.f32 0.2, %v1289_v58 }
 0x122   : > { %v2202_v61 = vpack.c.bf16 %v1451_v60, %v1450_v52  ;;  %v1483_v62 = vsel %vm1355_vm12, %v1291_v49, %v1419_v56  ;;  %v1448_v2 = vsel %vm1320_vm13, %v1256_v45, %v1384_v55  ;;  %v1480_v4 = vsel %vm1352_vm14, %v1288_v47, %v1416_v59 }
 0x123   : > { %v2282_v0 = vpack.c.bf16 %v1483_v62, %v1482_v53  ;;  %v1449_v3 = vsel %vm1321_vm15, %v1257_v57, %v1385_v63  ;;  %v1481_v5 = vsel %vm1353_vm0, %v1289_v58, %v1417_v1 }
 0x124   : > { %2298 = vst [vmem:[%s2648_s4 + $0x78] sm:$0xff] %v2202_v61   ;;  %v2197_v35 = vpack.c.bf16 %v1449_v3, %v1448_v2  ;;  %v2277_v6 = vpack.c.bf16 %v1481_v5, %v1480_v4 }
 0x125   : > { %2314 = vst [vmem:[%s2648_s4 + $0xf8] sm:$0xff] %v2282_v0  }
 0x126   : > { %2297 = vst [vmem:[%s2648_s4 + $0x70] sm:$0xff] %v2197_v35   ;;  %2313 = vst [vmem:[%s2648_s4 + $0xf0] sm:$0xff] %v2277_v6  }
 0x127 PF: > { %s13_s14 = sadd.s32 1, %s2507_s14   ;;  %s2754_s12 = smov %s2503_s13 }
 0x128   : > { %p10_p5 = scmp.ge.s32.totalorder %s13_s14, 6   ;;  %s2755_s13 = smov %s2757_s15 }
 0x12a   :  { %12 = sbr.rel (!%p10_p5) target bundleno = 2 (0x2), region = 76 }

// kernel: discriminator_forward.6
= control target key start
LH: loop header
LB: loop body
LE: loop exit
PB: predicated region body
PF: predicated region fallthrough
CT: control target
= control target key end

     0   :  { %s2461_s1 = inlined_call_operand.vmem [shape: bf16[128,128], index: 1, kind: input, shape index: {}]   ;;  %s2462_s0 = inlined_call_operand.vmem [shape: bf16[512,128], index: 0, kind: input, shape index: {}]   ;;  %s2463_s2 = inlined_call_operand.vmem [shape: bf16[512,128], index: 2, kind: output, shape index: {0}]   ;;  %s2464_s3 = inlined_call_operand.vmem [shape: f32[1,1,128], index: 3, kind: output, shape index: {1}]   ;;  %s2465_s4 = inlined_call_operand.vmem [shape: f32[1,1,128], index: 4, kind: output, shape index: {2}]  }
   0x1   :  { %v1982_v0 = vld [vmem:[%s2461_s1 + $0x38] sm:$0xff]   ;;  %v1983_v1 = vld [vmem:[%s2461_s1 + $0x30] sm:$0xff]   ;;  %v1984_v2 = vld [vmem:[%s2461_s1 + $0x28] sm:$0xff]  }
   0x2   :  { %1886 = vmatprep.subr.bf16.mxu0 %v1982_v0  ;;  %1966 = vmatprep.subr.bf16.mxu1 %v1982_v0  ;;  %v1985_v3 = vld [vmem:[%s2461_s1 + $0x20] sm:$0xff]   ;;  %v1986_v5 = vld [vmem:[%s2461_s1 + $0x18] sm:$0xff]   ;;  %v1987_v6 = vld [vmem:[%s2461_s1 + $0x10] sm:$0xff]  }
   0x3   :  { %1887 = vmatpush3.bf16.msra.mxu0 %v1982_v0  ;;  %1974 = vmatpush3.bf16.msra.mxu1 %v1982_v0  ;;  %v1990_v4 = vld [vmem:[%s2462_s0] sm:$0xff]   ;;  %v1988_v7 = vld [vmem:[%s2461_s1 + $0x8] sm:$0xff]   ;;  %v1992_v11 = vld [vmem:[%s2462_s0 + $0x10] sm:$0xff]  }
   0x4   :  { %1888 = vmatprep.subr.bf16.mxu0 %v1983_v1  ;;  %1967 = vmatprep.subr.bf16.mxu1 %v1983_v1  ;;  %v1989_v8 = vld [vmem:[%s2461_s1] sm:$0xff]   ;;  %v1991_v10 = vld [vmem:[%s2462_s0 + $0x8] sm:$0xff]   ;;  %v2008_v13 = vld [vmem:[%s2462_s0 + $0x90] sm:$0xff]  }
   0x5   :  { %1902 = vmatprep.mubr.bf16.mxu0 %v1990_v4  ;;  %v2006_v9 = vld [vmem:[%s2462_s0 + $0x80] sm:$0xff]   ;;  %v2007_v12 = vld [vmem:[%s2462_s0 + $0x88] sm:$0xff]   ;;  %v1993_v14 = vld [vmem:[%s2462_s0 + $0x18] sm:$0xff]  }
   0x6   :  { %1934 = vmatprep.mubr.bf16.mxu1 %v2006_v9  ;;  %v1994_v15 = vld [vmem:[%s2462_s0 + $0x20] sm:$0xff]   ;;  %v2009_v16 = vld [vmem:[%s2462_s0 + $0x98] sm:$0xff]   ;;  %v1995_v18 = vld [vmem:[%s2462_s0 + $0x28] sm:$0xff]  }
   0x7   :  { %1889 = vmatpush3.bf16.msra.mxu0 %v1983_v1  ;;  %1975 = vmatpush3.bf16.msra.mxu1 %v1983_v1  ;;  %v2010_v17 = vld [vmem:[%s2462_s0 + $0xa0] sm:$0xff]   ;;  %v2011_v19 = vld [vmem:[%s2462_s0 + $0xa8] sm:$0xff]   ;;  %v1996_v20 = vld [vmem:[%s2462_s0 + $0x30] sm:$0xff]  }
   0x8   :  { %1890 = vmatprep.subr.bf16.mxu0 %v1984_v2  ;;  %1968 = vmatprep.subr.bf16.mxu1 %v1984_v2  ;;  %v2012_v21 = vld [vmem:[%s2462_s0 + $0xb0] sm:$0xff]   ;;  %v1997_v22 = vld [vmem:[%s2462_s0 + $0x38] sm:$0xff]   ;;  %v1998_v24 = vld [vmem:[%s2462_s0 + $0x40] sm:$0xff]  }
   0x9   :  { %v2013_v23 = vld [vmem:[%s2462_s0 + $0xb8] sm:$0xff]   ;;  %v2014_v25 = vld [vmem:[%s2462_s0 + $0xc0] sm:$0xff]   ;;  %v1999_v26 = vld [vmem:[%s2462_s0 + $0x48] sm:$0xff]  }
   0xa   :  { %v2015_v27 = vld [vmem:[%s2462_s0 + $0xc8] sm:$0xff]   ;;  %v2000_v28 = vld [vmem:[%s2462_s0 + $0x50] sm:$0xff]   ;;  %v2001_v30 = vld [vmem:[%s2462_s0 + $0x58] sm:$0xff]  }
   0xb   :  { %1891 = vmatpush3.bf16.msra.mxu0 %v1984_v2  ;;  %1976 = vmatpush3.bf16.msra.mxu1 %v1984_v2  ;;  %v2016_v29 = vld [vmem:[%s2462_s0 + $0xd0] sm:$0xff]   ;;  %v2017_v31 = vld [vmem:[%s2462_s0 + $0xd8] sm:$0xff]   ;;  %v2002_v32 = vld [vmem:[%s2462_s0 + $0x60] sm:$0xff]  }
   0xc   :  { %1892 = vmatprep.subr.bf16.mxu0 %v1985_v3  ;;  %1969 = vmatprep.subr.bf16.mxu1 %v1985_v3  ;;  %v2018_v33 = vld [vmem:[%s2462_s0 + $0xe0] sm:$0xff]   ;;  %v2003_v34 = vld [vmem:[%s2462_s0 + $0x68] sm:$0xff]   ;;  %v2004_v36 = vld [vmem:[%s2462_s0 + $0x70] sm:$0xff]  }
   0xd   :  { %v2019_v35 = vld [vmem:[%s2462_s0 + $0xe8] sm:$0xff]   ;;  %v2020_v37 = vld [vmem:[%s2462_s0 + $0xf0] sm:$0xff]   ;;  %v2005_v38 = vld [vmem:[%s2462_s0 + $0x78] sm:$0xff]  }
   0xe   :  { %v2021_v39 = vld [vmem:[%s2462_s0 + $0xf8] sm:$0xff]  }
   0xf   :  { %1893 = vmatpush3.bf16.msra.mxu0 %v1985_v3  ;;  %1977 = vmatpush3.bf16.msra.mxu1 %v1985_v3 }
  0x10   :  { %1894 = vmatprep.subr.bf16.mxu0 %v1986_v5  ;;  %1970 = vmatprep.subr.bf16.mxu1 %v1986_v5 }
  0x13   :  { %1895 = vmatpush3.bf16.msra.mxu0 %v1986_v5  ;;  %1978 = vmatpush3.bf16.msra.mxu1 %v1986_v5 }
  0x14   :  { %1896 = vmatprep.subr.bf16.mxu0 %v1987_v6  ;;  %1971 = vmatprep.subr.bf16.mxu1 %v1987_v6 }
  0x17   :  { %1897 = vmatpush3.bf16.msra.mxu0 %v1987_v6  ;;  %1979 = vmatpush3.bf16.msra.mxu1 %v1987_v6 }
  0x18   :  { %1898 = vmatprep.subr.bf16.mxu0 %v1988_v7  ;;  %1972 = vmatprep.subr.bf16.mxu1 %v1988_v7 }
  0x1b   :  { %1899 = vmatpush3.bf16.msra.mxu0 %v1988_v7  ;;  %1980 = vmatpush3.bf16.msra.mxu1 %v1988_v7 }
  0x1c   :  { %1900 = vmatprep.subr.bf16.mxu0 %v1989_v8  ;;  %1973 = vmatprep.subr.bf16.mxu1 %v1989_v8 }
  0x1f   :  { %1901 = vmatpush3.bf16.msra.mxu0 %v1989_v8  ;;  %1981 = vmatpush3.bf16.msra.mxu1 %v1989_v8 }
  0x22   :  { %1903 = vmatmul.mubr.bf16.vlgmr.msra.gmra.mxu0 %v1991_v10  ;;  %1935 = vmatmul.mubr.bf16.vlgmr.msra.gmra.mxu1 %v2007_v12 }
  0x23   :  { %1906 = vmatprep.mubr.bf16.mxu0 %v1992_v11  ;;  %1938 = vmatprep.mubr.bf16.mxu1 %v2008_v13 }
  0x2a   :  { %1907 = vmatmul.mubr.bf16.gmra.mxu0 %v1993_v14  ;;  %1939 = vmatmul.mubr.bf16.gmra.mxu1 %v2009_v16 }
  0x2b   :  { %1910 = vmatprep.mubr.bf16.mxu0 %v1994_v15  ;;  %1942 = vmatprep.mubr.bf16.mxu1 %v2010_v17 }
  0x32   :  { %1911 = vmatmul.mubr.bf16.gmra.mxu0 %v1995_v18  ;;  %1943 = vmatmul.mubr.bf16.gmra.mxu1 %v2011_v19 }
  0x33   :  { %1914 = vmatprep.mubr.bf16.mxu0 %v1996_v20  ;;  %1946 = vmatprep.mubr.bf16.mxu1 %v2012_v21 }
  0x3a   :  { %1915 = vmatmul.mubr.bf16.gmra.mxu0 %v1997_v22  ;;  %1947 = vmatmul.mubr.bf16.gmra.mxu1 %v2013_v23 }
  0x3b   :  { %1918 = vmatprep.mubr.bf16.mxu0 %v1998_v24  ;;  %1950 = vmatprep.mubr.bf16.mxu1 %v2014_v25 }
  0x42   :  { %1919 = vmatmul.mubr.bf16.gmra.mxu0 %v1999_v26  ;;  %1951 = vmatmul.mubr.bf16.gmra.mxu1 %v2015_v27 }
  0x43   :  { %1922 = vmatprep.mubr.bf16.mxu0 %v2000_v28  ;;  %1954 = vmatprep.mubr.bf16.mxu1 %v2016_v29 }
  0x4a   :  { %1923 = vmatmul.mubr.bf16.gmra.mxu0 %v2001_v30  ;;  %1955 = vmatmul.mubr.bf16.gmra.mxu1 %v2017_v31 }
  0x4b   :  { %1926 = vmatprep.mubr.bf16.mxu0 %v2002_v32  ;;  %1958 = vmatprep.mubr.bf16.mxu1 %v2018_v33 }
  0x52   :  { %1927 = vmatmul.mubr.bf16.gmra.mxu0 %v2003_v34  ;;  %1959 = vmatmul.mubr.bf16.gmra.mxu1 %v2019_v35 }
  0x53   :  { %1930 = vmatprep.mubr.bf16.mxu0 %v2004_v36  ;;  %1962 = vmatprep.mubr.bf16.mxu1 %v2020_v37 }
  0x5a   :  { %1931 = vmatmul.mubr.bf16.gmra.mxu0 %v2005_v38  ;;  %1963 = vmatmul.mubr.bf16.gmra.mxu1 %v2021_v39 }
  0xe2   :  { %v1904_v40 = vpop.f32.mrf.mxu0  ;;  %v2167_v41 = vpop.f32.mrf.mxu1 }
  0xe3   :  { %v1343_v57 = vmul.f32 %v1904_v40, %v1904_v40 }
  0xe4   :  { %v501_v42 = vpop.f32.mrf.mxu0  ;;  %v2169_v43 = vpop.f32.mrf.mxu1 }
  0xe5   :  { %v1341_v48 = vmul.f32 %v501_v42, %v501_v42 }
  0xe6   :  { %v1905_v44 = vpop.f32.mrf.mxu0  ;;  %v2171_v45 = vpop.f32.mrf.mxu1 }
  0xe7   :  { %v1663_v46 = vpack.c.bf16 %v1905_v44, %v1904_v40  ;;  %v1743_v47 = vpack.c.bf16 %v2171_v45, %v2167_v41  ;;  %v1344_v62 = vmul.f32 %v1905_v44, %v1905_v44 }
  0xe8   :  { %v504_v49 = vpop.f32.mrf.mxu0  ;;  %v2175_v50 = vpop.f32.mrf.mxu1 }
  0xe9   :  { %1815 = vst [vmem:[%s2463_s2 + $0x8] sm:$0xff] %v1663_v46   ;;  %v1658_v51 = vpack.c.bf16 %v504_v49, %v501_v42  ;;  %v1271_v52 = vadd.f32 %v504_v49, %v501_v42  ;;  %v1342_v53 = vmul.f32 %v504_v49, %v504_v49  ;;  %1831 = vst [vmem:[%s2463_s2 + $0x88] sm:$0xff] %v1743_v47  }
  0xea   :  { %v1738_v54 = vpack.c.bf16 %v2175_v50, %v2169_v43  ;;  %v1908_v55 = vpop.f32.mrf.mxu0  ;;  %v2185_v56 = vpop.f32.mrf.mxu1 }
  0xeb   :  { %1659 = vst [vmem:[%s2463_s2] sm:$0xff] %v1658_v51   ;;  %v1272_v58 = vadd.f32 %v1904_v40, %v1271_v52  ;;  %v1405_v59 = vadd.f32 %v1342_v53, %v1341_v48  ;;  %v1347_v17 = vmul.f32 %v1908_v55, %v1908_v55 }
  0xec   :  { %1830 = vst [vmem:[%s2463_s2 + $0x80] sm:$0xff] %v1738_v54   ;;  %v517_v60 = vpop.f32.mrf.mxu0  ;;  %v2193_v61 = vpop.f32.mrf.mxu1 }
  0xed   :  { %v1406_v63 = vadd.f32 %v1405_v59, %v1343_v57  ;;  %v1273_v0 = vadd.f32 %v1905_v44, %v1272_v58  ;;  %v1345_v4 = vmul.f32 %v517_v60, %v517_v60 }
  0xee   :  { %v1909_v1 = vpop.f32.mrf.mxu0  ;;  %v2195_v2 = vpop.f32.mrf.mxu1 }
  0xef   :  { %v1274_v3 = vadd.f32 %v1273_v0, %v517_v60  ;;  %v1407_v5 = vadd.f32 %v1406_v63, %v1344_v62  ;;  %v1673_v6 = vpack.c.bf16 %v1909_v1, %v1908_v55  ;;  %v1753_v8 = vpack.c.bf16 %v2195_v2, %v2185_v56 }
  0xf0   :  { %v520_v7 = vpop.f32.mrf.mxu0  ;;  %v2199_v9 = vpop.f32.mrf.mxu1  ;;  %v1348_v22 = vmul.f32 %v1909_v1, %v1909_v1 }
  0xf1   :  { %v1408_v10 = vadd.f32 %v1407_v5, %v1345_v4  ;;  %1817 = vst [vmem:[%s2463_s2 + $0x18] sm:$0xff] %v1673_v6   ;;  %v1668_v11 = vpack.c.bf16 %v520_v7, %v517_v60  ;;  %v1275_v12 = vadd.f32 %v1274_v3, %v520_v7  ;;  %v1346_v13 = vmul.f32 %v520_v7, %v520_v7 }
  0xf2   :  { %v1912_v14 = vpop.f32.mrf.mxu0  ;;  %1833 = vst [vmem:[%s2463_s2 + $0x98] sm:$0xff] %v1753_v8   ;;  %v1748_v15 = vpack.c.bf16 %v2199_v9, %v2193_v61  ;;  %v2209_v16 = vpop.f32.mrf.mxu1 }
  0xf3   :  { %1816 = vst [vmem:[%s2463_s2 + $0x10] sm:$0xff] %v1668_v11   ;;  %v1276_v18 = vadd.f32 %v1908_v55, %v1275_v12  ;;  %v1409_v19 = vadd.f32 %v1408_v10, %v1346_v13  ;;  %v1351_v42 = vmul.f32 %v1912_v14, %v1912_v14 }
  0xf4   :  { %v533_v20 = vpop.f32.mrf.mxu0  ;;  %1832 = vst [vmem:[%s2463_s2 + $0x90] sm:$0xff] %v1748_v15   ;;  %v2217_v21 = vpop.f32.mrf.mxu1 }
  0xf5   :  { %v1410_v23 = vadd.f32 %v1409_v19, %v1347_v17  ;;  %v1277_v24 = vadd.f32 %v1909_v1, %v1276_v18  ;;  %v1349_v28 = vmul.f32 %v533_v20, %v533_v20 }
  0xf6   :  { %v1913_v25 = vpop.f32.mrf.mxu0  ;;  %v2219_v26 = vpop.f32.mrf.mxu1 }
  0xf7   :  { %v1278_v27 = vadd.f32 %v1277_v24, %v533_v20  ;;  %v1411_v29 = vadd.f32 %v1410_v23, %v1348_v22  ;;  %v1683_v30 = vpack.c.bf16 %v1913_v25, %v1912_v14  ;;  %v1763_v32 = vpack.c.bf16 %v2219_v26, %v2209_v16 }
  0xf8   :  { %v536_v31 = vpop.f32.mrf.mxu0  ;;  %v2223_v33 = vpop.f32.mrf.mxu1  ;;  %v1352_v49 = vmul.f32 %v1913_v25, %v1913_v25 }
  0xf9   :  { %v1412_v34 = vadd.f32 %v1411_v29, %v1349_v28  ;;  %1819 = vst [vmem:[%s2463_s2 + $0x28] sm:$0xff] %v1683_v30   ;;  %v1678_v35 = vpack.c.bf16 %v536_v31, %v533_v20  ;;  %v1279_v36 = vadd.f32 %v1278_v27, %v536_v31  ;;  %v1350_v37 = vmul.f32 %v536_v31, %v536_v31 }
  0xfa   :  { %v1916_v38 = vpop.f32.mrf.mxu0  ;;  %1835 = vst [vmem:[%s2463_s2 + $0xa8] sm:$0xff] %v1763_v32   ;;  %v1758_v39 = vpack.c.bf16 %v2223_v33, %v2217_v21  ;;  %v2233_v40 = vpop.f32.mrf.mxu1 }
  0xfb   :  { %1818 = vst [vmem:[%s2463_s2 + $0x20] sm:$0xff] %v1678_v35   ;;  %v1280_v44 = vadd.f32 %v1912_v14, %v1279_v36  ;;  %v1413_v46 = vadd.f32 %v1412_v34, %v1350_v37  ;;  %v1355_v8 = vmul.f32 %v1916_v38, %v1916_v38 }
  0xfc   :  { %v549_v47 = vpop.f32.mrf.mxu0  ;;  %1834 = vst [vmem:[%s2463_s2 + $0xa0] sm:$0xff] %v1758_v39   ;;  %v2241_v48 = vpop.f32.mrf.mxu1 }
  0xfd   :  { %v1414_v51 = vadd.f32 %v1413_v46, %v1351_v42  ;;  %v1281_v52 = vadd.f32 %v1913_v25, %v1280_v44  ;;  %v1353_v57 = vmul.f32 %v549_v47, %v549_v47 }
  0xfe   :  { %v1917_v53 = vpop.f32.mrf.mxu0  ;;  %v2243_v54 = vpop.f32.mrf.mxu1 }
  0xff   :  { %v1282_v55 = vadd.f32 %v1281_v52, %v549_v47  ;;  %v1415_v58 = vadd.f32 %v1414_v51, %v1352_v49  ;;  %v1693_v59 = vpack.c.bf16 %v1917_v53, %v1916_v38  ;;  %v1773_v62 = vpack.c.bf16 %v2243_v54, %v2233_v40 }
 0x100   :  { %v552_v60 = vpop.f32.mrf.mxu0  ;;  %v2247_v63 = vpop.f32.mrf.mxu1  ;;  %v1356_v14 = vmul.f32 %v1917_v53, %v1917_v53 }
 0x101   :  { %v1416_v0 = vadd.f32 %v1415_v58, %v1353_v57  ;;  %1821 = vst [vmem:[%s2463_s2 + $0x38] sm:$0xff] %v1693_v59   ;;  %v1688_v1 = vpack.c.bf16 %v552_v60, %v549_v47  ;;  %v1283_v3 = vadd.f32 %v1282_v55, %v552_v60  ;;  %v1354_v4 = vmul.f32 %v552_v60, %v552_v60 }
 0x102   :  { %v1920_v5 = vpop.f32.mrf.mxu0  ;;  %1837 = vst [vmem:[%s2463_s2 + $0xb8] sm:$0xff] %v1773_v62   ;;  %v1768_v6 = vpack.c.bf16 %v2247_v63, %v2241_v48  ;;  %v2257_v7 = vpop.f32.mrf.mxu1 }
 0x103   :  { %1820 = vst [vmem:[%s2463_s2 + $0x30] sm:$0xff] %v1688_v1   ;;  %v1284_v10 = vadd.f32 %v1916_v38, %v1283_v3  ;;  %v1417_v11 = vadd.f32 %v1416_v0, %v1354_v4  ;;  %v1359_v37 = vmul.f32 %v1920_v5, %v1920_v5 }
 0x104   :  { %v565_v12 = vpop.f32.mrf.mxu0  ;;  %1836 = vst [vmem:[%s2463_s2 + $0xb0] sm:$0xff] %v1768_v6   ;;  %v2265_v13 = vpop.f32.mrf.mxu1 }
 0x105   :  { %v1418_v15 = vadd.f32 %v1417_v11, %v1355_v8  ;;  %v1285_v17 = vadd.f32 %v1917_v53, %v1284_v10  ;;  %v1357_v22 = vmul.f32 %v565_v12, %v565_v12 }
 0x106   :  { %v1921_v18 = vpop.f32.mrf.mxu0  ;;  %v2267_v19 = vpop.f32.mrf.mxu1 }
 0x107   :  { %v1286_v20 = vadd.f32 %v1285_v17, %v565_v12  ;;  %v1419_v23 = vadd.f32 %v1418_v15, %v1356_v14  ;;  %v1703_v24 = vpack.c.bf16 %v1921_v18, %v1920_v5  ;;  %v1783_v27 = vpack.c.bf16 %v2267_v19, %v2257_v7 }
 0x108   :  { %v568_v25 = vpop.f32.mrf.mxu0  ;;  %v2271_v28 = vpop.f32.mrf.mxu1  ;;  %v1360_v46 = vmul.f32 %v1921_v18, %v1921_v18 }
 0x109   :  { %v1420_v29 = vadd.f32 %v1419_v23, %v1357_v22  ;;  %1823 = vst [vmem:[%s2463_s2 + $0x48] sm:$0xff] %v1703_v24   ;;  %v1698_v30 = vpack.c.bf16 %v568_v25, %v565_v12  ;;  %v1287_v31 = vadd.f32 %v1286_v20, %v568_v25  ;;  %v1358_v32 = vmul.f32 %v568_v25, %v568_v25 }
 0x10a   :  { %v1924_v34 = vpop.f32.mrf.mxu0  ;;  %1839 = vst [vmem:[%s2463_s2 + $0xc8] sm:$0xff] %v1783_v27   ;;  %v1778_v35 = vpack.c.bf16 %v2271_v28, %v2265_v13  ;;  %v2281_v36 = vpop.f32.mrf.mxu1 }
 0x10b   :  { %1822 = vst [vmem:[%s2463_s2 + $0x40] sm:$0xff] %v1698_v30   ;;  %v1288_v38 = vadd.f32 %v1920_v5, %v1287_v31  ;;  %v1421_v39 = vadd.f32 %v1420_v29, %v1358_v32  ;;  %v1363_v10 = vmul.f32 %v1924_v34, %v1924_v34 }
 0x10c   :  { %v581_v42 = vpop.f32.mrf.mxu0  ;;  %1838 = vst [vmem:[%s2463_s2 + $0xc0] sm:$0xff] %v1778_v35   ;;  %v2289_v44 = vpop.f32.mrf.mxu1 }
 0x10d   :  { %v1422_v47 = vadd.f32 %v1421_v39, %v1359_v37  ;;  %v1289_v49 = vadd.f32 %v1921_v18, %v1288_v38  ;;  %v1361_v55 = vmul.f32 %v581_v42, %v581_v42 }
 0x10e   :  { %v1925_v51 = vpop.f32.mrf.mxu0  ;;  %v2291_v52 = vpop.f32.mrf.mxu1 }
 0x10f   :  { %v1290_v53 = vadd.f32 %v1289_v49, %v581_v42  ;;  %v1423_v57 = vadd.f32 %v1422_v47, %v1360_v46  ;;  %v1713_v58 = vpack.c.bf16 %v1925_v51, %v1924_v34  ;;  %v1793_v60 = vpack.c.bf16 %v2291_v52, %v2281_v36 }
 0x110   :  { %v584_v59 = vpop.f32.mrf.mxu0  ;;  %v2295_v62 = vpop.f32.mrf.mxu1  ;;  %v1364_v17 = vmul.f32 %v1925_v51, %v1925_v51 }
 0x111   :  { %v1424_v0 = vadd.f32 %v1423_v57, %v1361_v55  ;;  %1825 = vst [vmem:[%s2463_s2 + $0x58] sm:$0xff] %v1713_v58   ;;  %v1708_v1 = vpack.c.bf16 %v584_v59, %v581_v42  ;;  %v1291_v3 = vadd.f32 %v1290_v53, %v584_v59  ;;  %v1362_v4 = vmul.f32 %v584_v59, %v584_v59 }
 0x112   :  { %v1928_v5 = vpop.f32.mrf.mxu0  ;;  %1841 = vst [vmem:[%s2463_s2 + $0xd8] sm:$0xff] %v1793_v60   ;;  %v1788_v6 = vpack.c.bf16 %v2295_v62, %v2289_v44  ;;  %v2305_v8 = vpop.f32.mrf.mxu1 }
 0x113   :  { %1824 = vst [vmem:[%s2463_s2 + $0x50] sm:$0xff] %v1708_v1   ;;  %v1292_v11 = vadd.f32 %v1924_v34, %v1291_v3  ;;  %v1425_v12 = vadd.f32 %v1424_v0, %v1362_v4  ;;  %v1367_v47 = vmul.f32 %v1928_v5, %v1928_v5 }
 0x114   :  { %v597_v14 = vpop.f32.mrf.mxu0  ;;  %1840 = vst [vmem:[%s2463_s2 + $0xd0] sm:$0xff] %v1788_v6   ;;  %v2313_v15 = vpop.f32.mrf.mxu1 }
 0x115   :  { %v1426_v18 = vadd.f32 %v1425_v12, %v1363_v10  ;;  %v1293_v20 = vadd.f32 %v1925_v51, %v1292_v11  ;;  %v1365_v25 = vmul.f32 %v597_v14, %v597_v14 }
 0x116   :  { %v1929_v22 = vpop.f32.mrf.mxu0  ;;  %v2315_v23 = vpop.f32.mrf.mxu1 }
 0x117   :  { %v1294_v24 = vadd.f32 %v1293_v20, %v597_v14  ;;  %v1427_v27 = vadd.f32 %v1426_v18, %v1364_v17  ;;  %v1723_v29 = vpack.c.bf16 %v1929_v22, %v1928_v5  ;;  %v1803_v31 = vpack.c.bf16 %v2315_v23, %v2305_v8 }
 0x118   :  { %v600_v30 = vpop.f32.mrf.mxu0  ;;  %v2319_v32 = vpop.f32.mrf.mxu1  ;;  %v1368_v57 = vmul.f32 %v1929_v22, %v1929_v22 }
 0x119   :  { %v1428_v34 = vadd.f32 %v1427_v27, %v1365_v25  ;;  %1827 = vst [vmem:[%s2463_s2 + $0x68] sm:$0xff] %v1723_v29   ;;  %v1718_v35 = vpack.c.bf16 %v600_v30, %v597_v14  ;;  %v1295_v37 = vadd.f32 %v1294_v24, %v600_v30  ;;  %v1366_v38 = vmul.f32 %v600_v30, %v600_v30 }
 0x11a   :  { %v1932_v39 = vpop.f32.mrf.mxu0  ;;  %1843 = vst [vmem:[%s2463_s2 + $0xe8] sm:$0xff] %v1803_v31   ;;  %v1798_v42 = vpack.c.bf16 %v2319_v32, %v2313_v15  ;;  %v2329_v46 = vpop.f32.mrf.mxu1  ;;  %v1373_v31 = vmul.f32 %v2169_v43, %v2169_v43 }
 0x11b   :  { %1826 = vst [vmem:[%s2463_s2 + $0x60] sm:$0xff] %v1718_v35   ;;  %v1296_v49 = vadd.f32 %v1928_v5, %v1295_v37  ;;  %v1429_v51 = vadd.f32 %v1428_v34, %v1366_v38  ;;  %v1374_v38 = vmul.f32 %v2175_v50, %v2175_v50 }
 0x11c   :  { %v613_v53 = vpop.f32.mrf.mxu0  ;;  %1842 = vst [vmem:[%s2463_s2 + $0xe0] sm:$0xff] %v1798_v42   ;;  %v2337_v55 = vpop.f32.mrf.mxu1  ;;  %v1375_v42 = vmul.f32 %v2167_v41, %v2167_v41 }
 0x11d   :  { %v1430_v58 = vadd.f32 %v1429_v51, %v1367_v47  ;;  %v1297_v59 = vadd.f32 %v1929_v22, %v1296_v49  ;;  %v1369_v3 = vmul.f32 %v613_v53, %v613_v53  ;;  %v1371_v22 = vmul.f32 %v1932_v39, %v1932_v39 }
 0x11e   :  { %v1933_v60 = vpop.f32.mrf.mxu0  ;;  %v2339_v0 = vpop.f32.mrf.mxu1  ;;  %v1376_v51 = vmul.f32 %v2171_v45, %v2171_v45 }
 0x11f   :  { %v1298_v1 = vadd.f32 %v1297_v59, %v613_v53  ;;  %v1431_v4 = vadd.f32 %v1430_v58, %v1368_v57  ;;  %v1733_v6 = vpack.c.bf16 %v1933_v60, %v1932_v39  ;;  %v1813_v5 = vpack.c.bf16 %v2339_v0, %v2329_v46 }
 0x120   :  { %v616_v10 = vpop.f32.mrf.mxu0  ;;  %v2343_v11 = vpop.f32.mrf.mxu1  ;;  %v1372_v27 = vmul.f32 %v1933_v60, %v1933_v60  ;;  %v1377_v58 = vmul.f32 %v2193_v61, %v2193_v61 }
 0x121   :  { %v1432_v12 = vadd.f32 %v1431_v4, %v1369_v3  ;;  %1829 = vst [vmem:[%s2463_s2 + $0x78] sm:$0xff] %v1733_v6   ;;  %v1728_v14 = vpack.c.bf16 %v616_v10, %v613_v53  ;;  %v1299_v17 = vadd.f32 %v1298_v1, %v616_v10  ;;  %v1370_v18 = vmul.f32 %v616_v10, %v616_v10 }
 0x122   :  { %1845 = vst [vmem:[%s2463_s2 + $0xf8] sm:$0xff] %v1813_v5   ;;  %v1808_v20 = vpack.c.bf16 %v2343_v11, %v2337_v55  ;;  %v1378_v1 = vmul.f32 %v2199_v9, %v2199_v9  ;;  %v1381_v5 = vmul.f32 %v2217_v21, %v2217_v21 }
 0x123   :  { %1828 = vst [vmem:[%s2463_s2 + $0x70] sm:$0xff] %v1728_v14   ;;  %v1300_v24 = vadd.f32 %v1932_v39, %v1299_v17  ;;  %v1433_v25 = vadd.f32 %v1432_v12, %v1370_v18  ;;  %v1382_v17 = vmul.f32 %v2223_v33, %v2223_v33 }
 0x124   :  { %1844 = vst [vmem:[%s2463_s2 + $0xf0] sm:$0xff] %v1808_v20  }
 0x125   :  { %v1301_v29 = vadd.f32 %v1933_v60, %v1300_v24  ;;  %v1434_v30 = vadd.f32 %v1433_v25, %v1371_v22  ;;  %v1385_v25 = vmul.f32 %v2241_v48, %v2241_v48 }
 0x127   :  { %v1435_v34 = vadd.f32 %v1434_v30, %v1372_v27  ;;  %v1302_v35 = vadd.f32 %v1301_v29, %v2169_v43  ;;  %v1386_v30 = vmul.f32 %v2247_v63, %v2247_v63 }
 0x129   :  { %v1303_v37 = vadd.f32 %v1302_v35, %v2175_v50  ;;  %v1436_v39 = vadd.f32 %v1435_v34, %v1373_v31 }
 0x12b   :  { %v1304_v47 = vadd.f32 %v2167_v41, %v1303_v37  ;;  %v1437_v49 = vadd.f32 %v1436_v39, %v1374_v38  ;;  %v1379_v41 = vmul.f32 %v2185_v56, %v2185_v56  ;;  %v1389_v38 = vmul.f32 %v2265_v13, %v2265_v13 }
 0x12d   :  { %v1438_v53 = vadd.f32 %v1437_v49, %v1375_v42  ;;  %v1305_v57 = vadd.f32 %v2171_v45, %v1304_v47  ;;  %v1380_v45 = vmul.f32 %v2195_v2, %v2195_v2  ;;  %v1390_v47 = vmul.f32 %v2271_v28, %v2271_v28 }
 0x12f   :  { %v1306_v43 = vadd.f32 %v1305_v57, %v2193_v61  ;;  %v1439_v59 = vadd.f32 %v1438_v53, %v1376_v51 }
 0x131   :  { %v1440_v50 = vadd.f32 %v1439_v59, %v1377_v58  ;;  %v1307_v60 = vadd.f32 %v1306_v43, %v2199_v9  ;;  %v1393_v43 = vmul.f32 %v2289_v44, %v2289_v44 }
 0x133   :  { %v1308_v3 = vadd.f32 %v2185_v56, %v1307_v60  ;;  %v1441_v4 = vadd.f32 %v1440_v50, %v1378_v1  ;;  %v1383_v56 = vmul.f32 %v2209_v16, %v2209_v16  ;;  %v1394_v50 = vmul.f32 %v2295_v62, %v2295_v62 }
 0x135   :  { %v1442_v6 = vadd.f32 %v1441_v4, %v1379_v41  ;;  %v1309_v10 = vadd.f32 %v2195_v2, %v1308_v3  ;;  %v1384_v2 = vmul.f32 %v2219_v26, %v2219_v26  ;;  %v1397_v4 = vmul.f32 %v2313_v15, %v2313_v15 }
 0x137   :  { %v1310_v61 = vadd.f32 %v1309_v10, %v2217_v21  ;;  %v1443_v12 = vadd.f32 %v1442_v6, %v1380_v45  ;;  %v1398_v10 = vmul.f32 %v2319_v32, %v2319_v32 }
 0x139   :  { %v1444_v14 = vadd.f32 %v1443_v12, %v1381_v5  ;;  %v1311_v9 = vadd.f32 %v1310_v61, %v2223_v33 }
 0x13b   :  { %v1312_v18 = vadd.f32 %v2209_v16, %v1311_v9  ;;  %v1445_v20 = vadd.f32 %v1444_v14, %v1382_v17  ;;  %v1387_v16 = vmul.f32 %v2233_v40, %v2233_v40  ;;  %v1401_v9 = vmul.f32 %v2337_v55, %v2337_v55 }
 0x13d   :  { %v1446_v22 = vadd.f32 %v1445_v20, %v1383_v56  ;;  %v1313_v24 = vadd.f32 %v2219_v26, %v1312_v18  ;;  %v1388_v26 = vmul.f32 %v2243_v54, %v2243_v54  ;;  %v1402_v18 = vmul.f32 %v2343_v11, %v2343_v11 }
 0x13f   :  { %v1314_v21 = vadd.f32 %v1313_v24, %v2241_v48  ;;  %v1447_v27 = vadd.f32 %v1446_v22, %v1384_v2 }
 0x141   :  { %v1448_v29 = vadd.f32 %v1447_v27, %v1385_v25  ;;  %v1315_v33 = vadd.f32 %v1314_v21, %v2247_v63 }
 0x143   :  { %v1316_v31 = vadd.f32 %v2233_v40, %v1315_v33  ;;  %v1449_v34 = vadd.f32 %v1448_v29, %v1386_v30  ;;  %v1391_v40 = vmul.f32 %v2257_v7, %v2257_v7 }
 0x145   :  { %v1450_v35 = vadd.f32 %v1449_v34, %v1387_v16  ;;  %v1317_v37 = vadd.f32 %v2243_v54, %v1316_v31  ;;  %v1392_v54 = vmul.f32 %v2267_v19, %v2267_v19 }
 0x147   :  { %v1318_v48 = vadd.f32 %v1317_v37, %v2265_v13  ;;  %v1451_v39 = vadd.f32 %v1450_v35, %v1388_v26 }
 0x149   :  { %v1452_v42 = vadd.f32 %v1451_v39, %v1389_v38  ;;  %v1319_v63 = vadd.f32 %v1318_v48, %v2271_v28 }
 0x14b   :  { %v1320_v49 = vadd.f32 %v2257_v7, %v1319_v63  ;;  %v1453_v51 = vadd.f32 %v1452_v42, %v1390_v47  ;;  %v1395_v7 = vmul.f32 %v2281_v36, %v2281_v36 }
 0x14d   :  { %v1454_v53 = vadd.f32 %v1453_v51, %v1391_v40  ;;  %v1321_v57 = vadd.f32 %v2267_v19, %v1320_v49  ;;  %v1396_v19 = vmul.f32 %v2291_v52, %v2291_v52 }
 0x14f   :  { %v1322_v13 = vadd.f32 %v1321_v57, %v2289_v44  ;;  %v1455_v58 = vadd.f32 %v1454_v53, %v1392_v54 }
 0x151   :  { %v1456_v59 = vadd.f32 %v1455_v58, %v1393_v43  ;;  %v1323_v28 = vadd.f32 %v1322_v13, %v2295_v62 }
 0x153   :  { %v1324_v60 = vadd.f32 %v2281_v36, %v1323_v28  ;;  %v1457_v1 = vadd.f32 %v1456_v59, %v1394_v50  ;;  %v1399_v36 = vmul.f32 %v2305_v8, %v2305_v8 }
 0x155   :  { %v1458_v41 = vadd.f32 %v1457_v1, %v1395_v7  ;;  %v1325_v3 = vadd.f32 %v2291_v52, %v1324_v60  ;;  %v1400_v52 = vmul.f32 %v2315_v23, %v2315_v23 }
 0x157   :  { %v1326_v44 = vadd.f32 %v1325_v3, %v2313_v15  ;;  %v1459_v45 = vadd.f32 %v1458_v41, %v1396_v19 }
 0x159   :  { %v1460_v6 = vadd.f32 %v1459_v45, %v1397_v4  ;;  %v1327_v62 = vadd.f32 %v1326_v44, %v2319_v32 }
 0x15b   :  { %v1328_v61 = vadd.f32 %v2305_v8, %v1327_v62  ;;  %v1461_v5 = vadd.f32 %v1460_v6, %v1398_v10  ;;  %v1403_v8 = vmul.f32 %v2329_v46, %v2329_v46 }
 0x15d   :  { %v1462_v12 = vadd.f32 %v1461_v5, %v1399_v36  ;;  %v1329_v14 = vadd.f32 %v2315_v23, %v1328_v61  ;;  %v1404_v23 = vmul.f32 %v2339_v0, %v2339_v0 }
 0x15f   :  { %v1330_v15 = vadd.f32 %v1329_v14, %v2337_v55  ;;  %v1463_v17 = vadd.f32 %v1462_v12, %v1400_v52 }
 0x161   :  { %v1464_v56 = vadd.f32 %v1463_v17, %v1401_v9  ;;  %v1331_v32 = vadd.f32 %v1330_v15, %v2343_v11 }
 0x163   :  { %v1332_v20 = vadd.f32 %v2329_v46, %v1331_v32  ;;  %v1465_v2 = vadd.f32 %v1464_v56, %v1402_v18 }
 0x165   :  { %v1333_v22 = vadd.f32 %v2339_v0, %v1332_v20  ;;  %v1466_v24 = vadd.f32 %v1465_v2, %v1403_v8 }
 0x167   :  { %v1334_v55 = vrot.slane %v1333_v22, 4  ;;  %v1467_v21 = vadd.f32 %v1466_v24, %v1404_v23 }
 0x169   :  { %v1335_v25 = vadd.f32 %v1334_v55, %v1333_v22  ;;  %v1468_v27 = vrot.slane %v1467_v21, 4 }
 0x16b   :  { %v1336_v29 = vrot.slane %v1335_v25, 2  ;;  %v1469_v33 = vadd.f32 %v1468_v27, %v1467_v21 }
 0x16d   :  { %v1337_v30 = vadd.f32 %v1336_v29, %v1335_v25  ;;  %v1470_v11 = vrot.slane %v1469_v33, 2 }
 0x16f   :  { %v1338_v16 = vrot.slane %v1337_v30, 1  ;;  %v1471_v31 = vadd.f32 %v1470_v11, %v1469_v33 }
 0x171   :  { %v1339_v34 = vadd.f32 %v1338_v16, %v1337_v30  ;;  %v1472_v26 = vrot.slane %v1471_v31, 1 }
 0x173   :  { %1340 = vst [vmem:[%s2464_s3] sm:$0x1] %v1339_v34  ;;  %v1473_v46 = vadd.f32 %v1472_v26, %v1471_v31 }
 0x175   :  { %1474 = vst [vmem:[%s2465_s4] sm:$0x1] %v1473_v46 }

// kernel: tile.33
= control target key start
LH: loop header
LB: loop body
LE: loop exit
PB: predicated region body
PF: predicated region fallthrough
CT: control target
= control target key end

     0   :  { %s28_s0 = inlined_call_operand.vmem [shape: f32[16], index: 0, kind: input, shape index: {}]   ;;  %s29_s1 = inlined_call_operand.vmem [shape: f32[16,16], index: 1, kind: output, shape index: {}]  }
   0x1   :  { %v4_v0 = vld [vmem:[%s28_s0] ss:$0 sm:$0xff] }
   0x2   :  { %5 = vst [vmem:[%s29_s1] sm:$0xff] %v4_v0  ;;  %8 = vst [vmem:[%s29_s1 + $0x8] sm:$0xff] %v4_v0 }

// kernel: tile.34
= control target key start
LH: loop header
LB: loop body
LE: loop exit
PB: predicated region body
PF: predicated region fallthrough
CT: control target
= control target key end

     0   :  { %s7_s6 = smov 3  ;;  %s21_s9 = smov 3  ;;  %vm4_vm0 = vcmask 130048   ;;  %vm11_vm1 = vcmask 1048448   ;;  %vm18_vm2 = vcmask 917248   ;;  %vm25_vm3 = vcmask 786048   ;;  %s131_s0 = inlined_call_operand.vmem [shape: f32[16,16], index: 0, kind: input, shape index: {}]   ;;  %s132_s1 = inlined_call_operand.vmem [shape: f32[1,256], index: 1, kind: output, shape index: {}]  }
   0x1   :  { %v69_v0 = vld [vmem:[%s131_s0 + $0x7] ss:$8 sm:%s7_s6]   ;;  %s84_s10 = smov 112   ;;  %v71_v1 = vld [vmem:[%s131_s0 + $0x5] ss:$8 sm:%s21_s9]   ;;  %s14_s13 = smov 3 }
   0x2   :  { %9 = vrot.lane.b32.xlu0 %v69_v0, %s84_s10  ;;  %s85_s14 = smov 80   ;;  %v70_v2 = vld [vmem:[%s131_s0 + $0x6] ss:$8 sm:%s14_s13]   ;;  %s28_s17 = smov 3  ;;  %vm32_vm4 = vcmask 654848   ;;  %vm39_vm5 = vcmask 523648  }
   0x3   :  { %23 = vrot.lane.b32.xlu1 %v71_v1, %s85_s14  ;;  %v72_v3 = vld [vmem:[%s131_s0 + $0x4] ss:$8 sm:%s28_s17]   ;;  %s35_s20 = smov 3  ;;  %s42_s21 = smov 3  ;;  %vm46_vm6 = vcmask 392448   ;;  %vm53_vm7 = vcmask 261248  }
   0x4   :  { %s86_s22 = smov 96   ;;  %s87_s23 = smov 64   ;;  %v73_v4 = vld [vmem:[%s131_s0 + $0x3] ss:$8 sm:%s35_s20]   ;;  %v74_v5 = vld [vmem:[%s131_s0 + $0x2] ss:$8 sm:%s42_s21]  }
   0x5   :  { %s2_s26 = smov 3  ;;  %s49_s29 = smov 3 }
   0x6   :  { %16 = vrot.lane.b32.xlu0 %v70_v2, %s86_s22  ;;  %v3_v6 = vld [vmem:[%s131_s0] ss:$8 sm:%s2_s26]   ;;  %s88_s3 = smov 48   ;;  %s89_s4 = smov 32  }
   0x7   :  { %30 = vrot.lane.b32.xlu1 %v72_v3, %s87_s23  ;;  %5 = vst.msk [vmem:[#allocation0] ss:$8 sm:$0x3] %vm4_vm0, %v3_v6   ;;  %v75_v7 = vld [vmem:[%s131_s0 + $0x1] ss:$8 sm:%s49_s29]   ;;  %s90_s0 = smov 16  }
   0xa   :  { %37 = vrot.lane.b32.xlu0 %v73_v4, %s88_s3 }
   0xb   :  { %44 = vrot.lane.b32.xlu1 %v74_v5, %s89_s4 }
   0xe   :  { %51 = vrot.lane.b32.xlu0 %v75_v7, %s90_s0 }
  0x74   :  { %v10_v8 = vpop.permute.xlu0 %9  }
  0x75   :  { %12 = vst.msk [vmem:[#allocation0] ss:$8 sm:$0x3] %vm11_vm1, %v10_v8   ;;  %v24_v9 = vpop.permute.xlu1 %23  }
  0x78   :  { %v17_v10 = vpop.permute.xlu0 %16  }
  0x79   :  { %19 = vst.msk [vmem:[#allocation0] ss:$8 sm:$0x3] %vm18_vm2, %v17_v10   ;;  %v31_v11 = vpop.permute.xlu1 %30  }
  0x7a   :  { %26 = vst.msk [vmem:[#allocation0] ss:$8 sm:$0x3] %vm25_vm3, %v24_v9  }
  0x7b   :  { %33 = vst.msk [vmem:[#allocation0] ss:$8 sm:$0x3] %vm32_vm4, %v31_v11  }
  0x7c   :  { %v38_v12 = vpop.permute.xlu0 %37  }
  0x7d   :  { %40 = vst.msk [vmem:[#allocation0] ss:$8 sm:$0x3] %vm39_vm5, %v38_v12   ;;  %v45_v13 = vpop.permute.xlu1 %44  }
  0x7e   :  { %47 = vst.msk [vmem:[#allocation0] ss:$8 sm:$0x3] %vm46_vm6, %v45_v13  }
  0x80   :  { %v52_v14 = vpop.permute.xlu0 %51  }
  0x81   :  { %54 = vst.msk [vmem:[#allocation0] ss:$8 sm:$0x3] %vm53_vm7, %v52_v14  }
  0x88   :  { %v59_v15 = vld [vmem:[#allocation0] sm:$0x1]  ;;  %v64_v16 = vld [vmem:[#allocation0 + $0x8] sm:$0x1] }
  0x89   :  { %62 = vst [vmem:[%s132_s1] sm:$0x1] %v59_v15  ;;  %76 = vst [vmem:[%s132_s1 + $0x1] sm:$0x1] %v64_v16 }

// kernel: discriminator_forward.7
= control target key start
LH: loop header
LB: loop body
LE: loop exit
PB: predicated region body
PF: predicated region fallthrough
CT: control target
= control target key end

     0   :  { %v91_v5 = vlaneseq  ;;  %s1171_s1 = inlined_call_operand.vmem [shape: bf16[256,128], index: 1, kind: input, shape index: {}]   ;;  %s1172_s0 = inlined_call_operand.vmem [shape: bf16[128,256], index: 0, kind: input, shape index: {}]   ;;  %s1173_s2 = inlined_call_operand.vmem [shape: f32[1,256], index: 2, kind: input, shape index: {}]   ;;  %s1174_s3 = inlined_call_operand.vmem [shape: f32[1,256], index: 3, kind: input, shape index: {}]   ;;  %s1175_s4 = inlined_call_operand.vmem [shape: bf16[128,128], index: 4, kind: output, shape index: {0}]   ;;  %s1176_s5 = inlined_call_operand.vmem [shape: f32[1,1,128], index: 5, kind: output, shape index: {1}]   ;;  %s1177_s6 = inlined_call_operand.vmem [shape: f32[1,1,128], index: 6, kind: output, shape index: {2}]  }
   0x1   :  { %v908_v0 = vld [vmem:[%s1171_s1 + $0x78] sm:$0xff]   ;;  %v910_v2 = vld [vmem:[%s1171_s1 + $0x70] sm:$0xff]   ;;  %v912_v4 = vld [vmem:[%s1171_s1 + $0x68] sm:$0xff]  }
   0x2   :  { %v909_v1 = vld [vmem:[%s1171_s1 + $0x38] sm:$0xff]   ;;  %828 = vmatprep.subr.bf16.mxu0 %v908_v0  ;;  %892 = vmatprep.subr.bf16.mxu1 %v908_v0  ;;  %v911_v3 = vld [vmem:[%s1171_s1 + $0x30] sm:$0xff]   ;;  %v913_v6 = vld [vmem:[%s1171_s1 + $0x28] sm:$0xff]   ;;  %v92_v8 = vshrl.u32 %v91_v5, 7 }
   0x3   :  { %829 = vmatpush3.bf16.msra.mxu0 %v909_v1  ;;  %900 = vmatpush3.bf16.msra.mxu1 %v909_v1  ;;  %v914_v7 = vld [vmem:[%s1171_s1 + $0x60] sm:$0xff]   ;;  %v916_v10 = vld [vmem:[%s1171_s1 + $0x58] sm:$0xff]   ;;  %v918_v14 = vld [vmem:[%s1171_s1 + $0x50] sm:$0xff]  }
   0x4   :  { %830 = vmatprep.subr.bf16.mxu0 %v910_v2  ;;  %893 = vmatprep.subr.bf16.mxu1 %v910_v2  ;;  %v915_v9 = vld [vmem:[%s1171_s1 + $0x20] sm:$0xff]   ;;  %v93_v11 = vsub.s32 0, %v92_v8  ;;  %v917_v12 = vld [vmem:[%s1171_s1 + $0x18] sm:$0xff]   ;;  %v97_v13 = vsub.s32 1, %v92_v8  ;;  %v42_v16 = vld [vmem:[%s1172_s0 + $0x8] sm:$0xff] }
   0x5   :  { %v41_v15 = vld [vmem:[%s1172_s0] sm:$0xff]  ;;  %v59_v20 = vunpack.c.l.bf16 %v42_v16  ;;  %v60_v21 = vunpack.c.h.bf16 %v42_v16  ;;  %v43_v23 = vld [vmem:[%s1172_s0 + $0x10] sm:$0xff]  ;;  %v44_v24 = vld [vmem:[%s1172_s0 + $0x18] sm:$0xff] }
   0x6   :  { %v89_v17 = vld [vmem:[%s1173_s2] sm:$0x3]  ;;  %v57_v18 = vunpack.c.l.bf16 %v41_v15  ;;  %v58_v19 = vunpack.c.h.bf16 %v41_v15  ;;  %v919_v30 = vld [vmem:[%s1171_s1 + $0x10] sm:$0xff]   ;;  %v62_v31 = vunpack.c.h.bf16 %v43_v23  ;;  %v64_v32 = vunpack.c.h.bf16 %v44_v24  ;;  %v920_v35 = vld [vmem:[%s1171_s1 + $0x48] sm:$0xff]  }
   0x7   :  { %831 = vmatpush3.bf16.msra.mxu0 %v911_v3  ;;  %901 = vmatpush3.bf16.msra.mxu1 %v911_v3  ;;  %v133_v22 = vld [vmem:[%s1174_s3] sm:$0x3]  ;;  %v1010_v25 = vrot.slane %v89_v17, %v93_v11  ;;  %v1012_v26 = vrot.slane %v89_v17, %v97_v13  ;;  %v61_v33 = vunpack.c.l.bf16 %v43_v23  ;;  %v63_v34 = vunpack.c.l.bf16 %v44_v24  ;;  %v921_v48 = vld [vmem:[%s1171_s1 + $0x8] sm:$0xff]  }
   0x8   :  { %832 = vmatprep.subr.bf16.mxu0 %v912_v4  ;;  %894 = vmatprep.subr.bf16.mxu1 %v912_v4  ;;  %v1014_v27 = vrot.slane %v133_v22, %v93_v11  ;;  %v1016_v28 = vrot.slane %v133_v22, %v97_v13  ;;  %v1021_v29 = vld [vmem:[%s1172_s0 + $0x40] sm:$0xff]  ;;  %v50_v60 = vld [vmem:[%s1172_s0 + $0x48] sm:$0xff] }
   0x9   :  { %v102_v36 = vmul.f32 %v1012_v26, %v58_v19  ;;  %v104_v37 = vmul.f32 %v1012_v26, %v60_v21  ;;  %v101_v38 = vmul.f32 %v1010_v25, %v57_v18  ;;  %v73_v39 = vunpack.c.l.bf16 %v1021_v29  ;;  %v922_v49 = vld [vmem:[%s1171_s1 + $0x40] sm:$0xff]   ;;  %v46_v17 = vld [vmem:[%s1172_s0 + $0x28] sm:$0xff] }
   0xa   :  { %v103_v40 = vmul.f32 %v1010_v25, %v59_v20  ;;  %v106_v41 = vmul.f32 %v1012_v26, %v62_v31  ;;  %v108_v42 = vmul.f32 %v1012_v26, %v64_v32  ;;  %v105_v43 = vmul.f32 %v1010_v25, %v61_v33  ;;  %v923_v61 = vld [vmem:[%s1171_s1] sm:$0xff]  }
   0xb   :  { %833 = vmatpush3.bf16.msra.mxu0 %v913_v6  ;;  %902 = vmatpush3.bf16.msra.mxu1 %v913_v6  ;;  %v146_v44 = vadd.f32 %v1016_v28, %v102_v36  ;;  %v148_v45 = vadd.f32 %v1016_v28, %v104_v37  ;;  %v145_v46 = vadd.f32 %v1014_v27, %v101_v38  ;;  %v74_v53 = vunpack.c.h.bf16 %v1021_v29 }
   0xc   :  { %834 = vmatprep.subr.bf16.mxu0 %v914_v7  ;;  %895 = vmatprep.subr.bf16.mxu1 %v914_v7  ;;  %v107_v47 = vmul.f32 %v1010_v25, %v63_v34  ;;  %v147_v50 = vadd.f32 %v1014_v27, %v103_v40  ;;  %v150_v51 = vadd.f32 %v1016_v28, %v106_v41  ;;  %v75_v7 = vunpack.c.l.bf16 %v50_v60 }
   0xd   :  { %v152_v52 = vadd.f32 %v1016_v28, %v108_v42  ;;  %vm178_vm0 = vcmp.gt.f32.partialorder %v146_v44, 0.0  ;;  %vm180_vm1 = vcmp.gt.f32.partialorder %v148_v45, 0.0  ;;  %v210_v54 = vmul.f32 0.2, %v146_v44  ;;  %v51_v42 = vld [vmem:[%s1172_s0 + $0x50] sm:$0xff] }
   0xe   :  { %v212_v55 = vmul.f32 0.2, %v148_v45  ;;  %vm177_vm2 = vcmp.gt.f32.partialorder %v145_v46, 0.0  ;;  %vm179_vm3 = vcmp.gt.f32.partialorder %v147_v50, 0.0  ;;  %v209_v56 = vmul.f32 0.2, %v145_v46 }
   0xf   :  { %835 = vmatpush3.bf16.msra.mxu0 %v915_v9  ;;  %903 = vmatpush3.bf16.msra.mxu1 %v915_v9  ;;  %v211_v57 = vmul.f32 0.2, %v147_v50  ;;  %v242_v58 = vsel %vm178_vm0, %v146_v44, %v210_v54  ;;  %vm182_vm4 = vcmp.gt.f32.partialorder %v150_v51, 0.0  ;;  %vm184_vm5 = vcmp.gt.f32.partialorder %v152_v52, 0.0 }
  0x10   :  { %836 = vmatprep.subr.bf16.mxu0 %v916_v10  ;;  %896 = vmatprep.subr.bf16.mxu1 %v916_v10  ;;  %v244_v59 = vsel %vm180_vm1, %v148_v45, %v212_v55  ;;  %v241_v63 = vsel %vm177_vm2, %v145_v46, %v209_v56  ;;  %v214_v1 = vmul.f32 0.2, %v150_v51  ;;  %v216_v3 = vmul.f32 0.2, %v152_v52  ;;  %v45_v10 = vld [vmem:[%s1172_s0 + $0x20] sm:$0xff]  ;;  %v47_v55 = vld [vmem:[%s1172_s0 + $0x30] sm:$0xff] }
  0x11   :  { %v274_v62 = vpack.c.bf16 %v244_v59, %v242_v58  ;;  %v243_v0 = vsel %vm179_vm3, %v147_v50, %v211_v57  ;;  %v149_v4 = vadd.f32 %v1014_v27, %v105_v43  ;;  %v151_v5 = vadd.f32 %v1014_v27, %v107_v47  ;;  %v52_v43 = vld [vmem:[%s1172_s0 + $0x58] sm:$0xff] }
  0x12   :  { %v273_v2 = vpack.c.bf16 %v243_v0, %v241_v63  ;;  %v246_v6 = vsel %vm182_vm4, %v150_v51, %v214_v1  ;;  %v76_v8 = vunpack.c.h.bf16 %v50_v60  ;;  %v118_v9 = vmul.f32 %v1012_v26, %v74_v53 }
  0x13   :  { %837 = vmatpush3.bf16.msra.mxu0 %v917_v12  ;;  %904 = vmatpush3.bf16.msra.mxu1 %v917_v12  ;;  %v248_v11 = vsel %vm184_vm5, %v152_v52, %v216_v3  ;;  %vm181_vm6 = vcmp.gt.f32.partialorder %v149_v4, 0.0  ;;  %vm183_vm7 = vcmp.gt.f32.partialorder %v151_v5, 0.0  ;;  %v213_v12 = vmul.f32 0.2, %v149_v4 }
  0x14   :  { %838 = vmatprep.subr.bf16.mxu0 %v918_v14  ;;  %897 = vmatprep.subr.bf16.mxu1 %v918_v14  ;;  %v276_v13 = vpack.c.bf16 %v248_v11, %v246_v6  ;;  %v215_v14 = vmul.f32 0.2, %v151_v5  ;;  %v120_v15 = vmul.f32 %v1012_v26, %v76_v8  ;;  %v162_v16 = vadd.f32 %v1016_v28, %v118_v9 }
  0x15   :  { %465 = vmatprep.mubr.bf16.mxu0 %v274_v62  ;;  %v245_v18 = vsel %vm181_vm6, %v149_v4, %v213_v12  ;;  %v117_v19 = vmul.f32 %v1010_v25, %v73_v39  ;;  %v119_v20 = vmul.f32 %v1010_v25, %v75_v7  ;;  %v66_v21 = vunpack.c.h.bf16 %v45_v10 }
  0x16   :  { %v247_v22 = vsel %vm183_vm7, %v151_v5, %v215_v14  ;;  %v164_v23 = vadd.f32 %v1016_v28, %v120_v15  ;;  %vm194_vm8 = vcmp.gt.f32.partialorder %v162_v16, 0.0  ;;  %v226_v24 = vmul.f32 0.2, %v162_v16 }
  0x17   :  { %839 = vmatpush3.bf16.msra.mxu0 %v919_v30  ;;  %905 = vmatpush3.bf16.msra.mxu1 %v919_v30  ;;  %v275_v30 = vpack.c.bf16 %v247_v22, %v245_v18  ;;  %v161_v31 = vadd.f32 %v1014_v27, %v117_v19  ;;  %v163_v32 = vadd.f32 %v1014_v27, %v119_v20  ;;  %v68_v33 = vunpack.c.h.bf16 %v46_v17 }
  0x18   :  { %840 = vmatprep.subr.bf16.mxu0 %v920_v35  ;;  %898 = vmatprep.subr.bf16.mxu1 %v920_v35  ;;  %vm196_vm9 = vcmp.gt.f32.partialorder %v164_v23, 0.0  ;;  %v228_v29 = vmul.f32 0.2, %v164_v23  ;;  %v258_v34 = vsel %vm194_vm8, %v162_v16, %v226_v24  ;;  %v110_v35 = vmul.f32 %v1012_v26, %v66_v21 }
  0x19   :  { %vm193_vm10 = vcmp.gt.f32.partialorder %v161_v31, 0.0  ;;  %vm195_vm11 = vcmp.gt.f32.partialorder %v163_v32, 0.0  ;;  %v225_v36 = vmul.f32 0.2, %v161_v31  ;;  %v227_v37 = vmul.f32 0.2, %v163_v32 }
  0x1a   :  { %v260_v38 = vsel %vm196_vm9, %v164_v23, %v228_v29  ;;  %v112_v39 = vmul.f32 %v1012_v26, %v68_v33  ;;  %v154_v40 = vadd.f32 %v1016_v28, %v110_v35  ;;  %v65_v41 = vunpack.c.l.bf16 %v45_v10 }
  0x1b   :  { %841 = vmatpush3.bf16.msra.mxu0 %v921_v48  ;;  %906 = vmatpush3.bf16.msra.mxu1 %v921_v48  ;;  %v282_v44 = vpack.c.bf16 %v260_v38, %v258_v34  ;;  %v257_v45 = vsel %vm193_vm10, %v161_v31, %v225_v36  ;;  %v259_v46 = vsel %vm195_vm11, %v163_v32, %v227_v37  ;;  %v67_v47 = vunpack.c.l.bf16 %v46_v17  ;;  %v53_v31 = vld [vmem:[%s1172_s0 + $0x60] sm:$0xff]  ;;  %v54_v34 = vld [vmem:[%s1172_s0 + $0x68] sm:$0xff] }
  0x1c   :  { %842 = vmatprep.subr.bf16.mxu0 %v922_v49  ;;  %899 = vmatprep.subr.bf16.mxu1 %v922_v49  ;;  %v281_v48 = vpack.c.bf16 %v259_v46, %v257_v45  ;;  %v156_v49 = vadd.f32 %v1016_v28, %v112_v39  ;;  %vm186_vm12 = vcmp.gt.f32.partialorder %v154_v40, 0.0  ;;  %v218_v50 = vmul.f32 0.2, %v154_v40 }
  0x1d   :  { %497 = vmatprep.mubr.bf16.mxu1 %v282_v44  ;;  %v109_v51 = vmul.f32 %v1010_v25, %v65_v41  ;;  %v111_v52 = vmul.f32 %v1010_v25, %v67_v47  ;;  %v78_v53 = vunpack.c.h.bf16 %v51_v42  ;;  %v80_v54 = vunpack.c.h.bf16 %v52_v43 }
  0x1e   :  { %vm188_vm13 = vcmp.gt.f32.partialorder %v156_v49, 0.0  ;;  %v220_v56 = vmul.f32 0.2, %v156_v49  ;;  %v250_v57 = vsel %vm186_vm12, %v154_v40, %v218_v50  ;;  %v77_v58 = vunpack.c.l.bf16 %v51_v42  ;;  %v55_v50 = vld [vmem:[%s1172_s0 + $0x70] sm:$0xff] }
  0x1f   :  { %843 = vmatpush3.bf16.msra.mxu0 %v923_v61  ;;  %907 = vmatpush3.bf16.msra.mxu1 %v923_v61  ;;  %v153_v59 = vadd.f32 %v1014_v27, %v109_v51  ;;  %v155_v60 = vadd.f32 %v1014_v27, %v111_v52  ;;  %v122_v61 = vmul.f32 %v1012_v26, %v78_v53  ;;  %v79_v0 = vunpack.c.l.bf16 %v52_v43 }
  0x20   :  { %v124_v62 = vmul.f32 %v1012_v26, %v80_v54  ;;  %v252_v63 = vsel %vm188_vm13, %v156_v49, %v220_v56  ;;  %v121_v1 = vmul.f32 %v1010_v25, %v77_v58  ;;  %v70_v3 = vunpack.c.h.bf16 %v47_v55  ;;  %v56_v58 = vld [vmem:[%s1172_s0 + $0x78] sm:$0xff] }
  0x21   :  { %v278_v4 = vpack.c.bf16 %v252_v63, %v250_v57  ;;  %vm185_vm14 = vcmp.gt.f32.partialorder %v153_v59, 0.0  ;;  %vm187_vm15 = vcmp.gt.f32.partialorder %v155_v60, 0.0  ;;  %v217_v5 = vmul.f32 0.2, %v153_v59 }
  0x22   :  { %466 = vmatmul.mubr.bf16.vlgmr.msra.gmra.mxu0 %v273_v2  ;;  %498 = vmatmul.mubr.bf16.vlgmr.msra.gmra.mxu1 %v281_v48  ;;  %v48_v2 = vld [vmem:[%s1172_s0 + $0x38] sm:$0xff]  ;;  %v219_v6 = vmul.f32 0.2, %v155_v60  ;;  %v166_v7 = vadd.f32 %v1016_v28, %v122_v61  ;;  %v168_v8 = vadd.f32 %v1016_v28, %v124_v62  ;;  %v123_v9 = vmul.f32 %v1010_v25, %v79_v0 }
  0x23   :  { %473 = vmatprep.mubr.bf16.mxu0 %v276_v13  ;;  %v249_v10 = vsel %vm185_vm14, %v153_v59, %v217_v5  ;;  %v165_v11 = vadd.f32 %v1014_v27, %v121_v1  ;;  %v72_v12 = vunpack.c.h.bf16 %v48_v2  ;;  %v114_v13 = vmul.f32 %v1012_v26, %v70_v3 }
  0x24   :  { %v251_v14 = vsel %vm187_vm15, %v155_v60, %v219_v6  ;;  %vm198_vm0 = vcmp.gt.f32.partialorder %v166_v7, 0.0  ;;  %vm200_vm1 = vcmp.gt.f32.partialorder %v168_v8, 0.0  ;;  %v230_v15 = vmul.f32 0.2, %v166_v7 }
  0x25   :  { %v277_v16 = vpack.c.bf16 %v251_v14, %v249_v10  ;;  %v232_v17 = vmul.f32 0.2, %v168_v8  ;;  %v167_v18 = vadd.f32 %v1014_v27, %v123_v9  ;;  %vm197_vm2 = vcmp.gt.f32.partialorder %v165_v11, 0.0 }
  0x26   :  { %v262_v19 = vsel %vm198_vm0, %v166_v7, %v230_v15  ;;  %v229_v20 = vmul.f32 0.2, %v165_v11  ;;  %v116_v21 = vmul.f32 %v1012_v26, %v72_v12  ;;  %v158_v22 = vadd.f32 %v1016_v28, %v114_v13 }
  0x27   :  { %v264_v23 = vsel %vm200_vm1, %v168_v8, %v232_v17  ;;  %vm199_vm3 = vcmp.gt.f32.partialorder %v167_v18, 0.0  ;;  %v231_v24 = vmul.f32 0.2, %v167_v18  ;;  %v71_v37 = vunpack.c.l.bf16 %v48_v2 }
  0x28   :  { %v284_v32 = vpack.c.bf16 %v264_v23, %v262_v19  ;;  %v261_v33 = vsel %vm197_vm2, %v165_v11, %v229_v20  ;;  %v160_v29 = vadd.f32 %v1016_v28, %v116_v21  ;;  %vm190_vm4 = vcmp.gt.f32.partialorder %v158_v22, 0.0 }
  0x29   :  { %v263_v35 = vsel %vm199_vm3, %v167_v18, %v231_v24  ;;  %v222_v36 = vmul.f32 0.2, %v158_v22  ;;  %v82_v41 = vunpack.c.h.bf16 %v53_v31  ;;  %v115_v43 = vmul.f32 %v1010_v25, %v71_v37 }
  0x2a   :  { %474 = vmatmul.mubr.bf16.gmra.mxu0 %v275_v30  ;;  %v69_v30 = vunpack.c.l.bf16 %v47_v55  ;;  %505 = vmatprep.mubr.bf16.mxu1 %v284_v32  ;;  %v283_v39 = vpack.c.bf16 %v263_v35, %v261_v33  ;;  %vm192_vm5 = vcmp.gt.f32.partialorder %v160_v29, 0.0  ;;  %v224_v40 = vmul.f32 0.2, %v160_v29 }
  0x2b   :  { %481 = vmatprep.mubr.bf16.mxu0 %v278_v4  ;;  %v254_v42 = vsel %vm190_vm4, %v158_v22, %v222_v36  ;;  %v84_v45 = vunpack.c.h.bf16 %v54_v34  ;;  %v126_v47 = vmul.f32 %v1012_v26, %v82_v41  ;;  %v81_v48 = vunpack.c.l.bf16 %v53_v31 }
  0x2c   :  { %v113_v38 = vmul.f32 %v1010_v25, %v69_v30  ;;  %506 = vmatmul.mubr.bf16.gmra.mxu1 %v283_v39  ;;  %v256_v46 = vsel %vm192_vm5, %v160_v29, %v224_v40  ;;  %v83_v49 = vunpack.c.l.bf16 %v54_v34  ;;  %v159_v52 = vadd.f32 %v1014_v27, %v115_v43 }
  0x2d   :  { %v280_v51 = vpack.c.bf16 %v256_v46, %v254_v42  ;;  %v128_v54 = vmul.f32 %v1012_v26, %v84_v45  ;;  %v170_v55 = vadd.f32 %v1016_v28, %v126_v47  ;;  %v125_v56 = vmul.f32 %v1010_v25, %v81_v48 }
  0x2e   :  { %v157_v44 = vadd.f32 %v1014_v27, %v113_v38  ;;  %v127_v57 = vmul.f32 %v1010_v25, %v83_v49  ;;  %vm191_vm7 = vcmp.gt.f32.partialorder %v159_v52, 0.0  ;;  %v223_v59 = vmul.f32 0.2, %v159_v52 }
  0x2f   :  { %v86_v61 = vunpack.c.h.bf16 %v55_v50  ;;  %v172_v62 = vadd.f32 %v1016_v28, %v128_v54  ;;  %vm202_vm8 = vcmp.gt.f32.partialorder %v170_v55, 0.0  ;;  %v234_v63 = vmul.f32 0.2, %v170_v55 }
  0x30   :  { %vm189_vm6 = vcmp.gt.f32.partialorder %v157_v44, 0.0  ;;  %v221_v53 = vmul.f32 0.2, %v157_v44  ;;  %v169_v0 = vadd.f32 %v1014_v27, %v125_v56  ;;  %v255_v1 = vsel %vm191_vm7, %v159_v52, %v223_v59 }
  0x31   :  { %v171_v2 = vadd.f32 %v1014_v27, %v127_v57  ;;  %v88_v3 = vunpack.c.h.bf16 %v56_v58  ;;  %v130_v4 = vmul.f32 %v1012_v26, %v86_v61  ;;  %vm204_vm9 = vcmp.gt.f32.partialorder %v172_v62, 0.0 }
  0x32   :  { %482 = vmatmul.mubr.bf16.gmra.mxu0 %v277_v16  ;;  %v253_v60 = vsel %vm189_vm6, %v157_v44, %v221_v53  ;;  %v236_v6 = vmul.f32 0.2, %v172_v62  ;;  %v266_v7 = vsel %vm202_vm8, %v170_v55, %v234_v63  ;;  %vm201_vm10 = vcmp.gt.f32.partialorder %v169_v0, 0.0 }
  0x33   :  { %489 = vmatprep.mubr.bf16.mxu0 %v280_v51  ;;  %v279_v5 = vpack.c.bf16 %v255_v1, %v253_v60  ;;  %vm203_vm11 = vcmp.gt.f32.partialorder %v171_v2, 0.0  ;;  %v233_v8 = vmul.f32 0.2, %v169_v0  ;;  %v235_v9 = vmul.f32 0.2, %v171_v2 }
  0x34   :  { %v268_v10 = vsel %vm204_vm9, %v172_v62, %v236_v6  ;;  %v132_v11 = vmul.f32 %v1012_v26, %v88_v3  ;;  %v174_v12 = vadd.f32 %v1016_v28, %v130_v4  ;;  %v85_v13 = vunpack.c.l.bf16 %v55_v50 }
  0x35   :  { %v286_v14 = vpack.c.bf16 %v268_v10, %v266_v7  ;;  %v265_v15 = vsel %vm201_vm10, %v169_v0, %v233_v8  ;;  %v267_v16 = vsel %vm203_vm11, %v171_v2, %v235_v9  ;;  %v87_v17 = vunpack.c.l.bf16 %v56_v58 }
  0x36   :  { %v285_v18 = vpack.c.bf16 %v267_v16, %v265_v15  ;;  %v176_v19 = vadd.f32 %v1016_v28, %v132_v11  ;;  %vm206_vm12 = vcmp.gt.f32.partialorder %v174_v12, 0.0  ;;  %v238_v20 = vmul.f32 0.2, %v174_v12 }
  0x37   :  { %513 = vmatprep.mubr.bf16.mxu1 %v286_v14  ;;  %v129_v21 = vmul.f32 %v1010_v25, %v85_v13  ;;  %v131_v22 = vmul.f32 %v1010_v25, %v87_v17 }
  0x38   :  { %514 = vmatmul.mubr.bf16.gmra.mxu1 %v285_v18  ;;  %vm208_vm13 = vcmp.gt.f32.partialorder %v176_v19, 0.0  ;;  %v240_v26 = vmul.f32 0.2, %v176_v19  ;;  %v270_v23 = vsel %vm206_vm12, %v174_v12, %v238_v20 }
  0x39   :  { %v173_v24 = vadd.f32 %v1014_v27, %v129_v21  ;;  %v175_v30 = vadd.f32 %v1014_v27, %v131_v22 }
  0x3a   :  { %490 = vmatmul.mubr.bf16.gmra.mxu0 %v279_v5  ;;  %v272_v31 = vsel %vm208_vm13, %v176_v19, %v240_v26 }
  0x3b   :  { %v288_v32 = vpack.c.bf16 %v272_v31, %v270_v23  ;;  %vm205_vm14 = vcmp.gt.f32.partialorder %v173_v24, 0.0  ;;  %vm207_vm15 = vcmp.gt.f32.partialorder %v175_v30, 0.0  ;;  %v237_v28 = vmul.f32 0.2, %v173_v24 }
  0x3c   :  { %v239_v33 = vmul.f32 0.2, %v175_v30 }
  0x3d   :  { %521 = vmatprep.mubr.bf16.mxu1 %v288_v32  ;;  %v269_v29 = vsel %vm205_vm14, %v173_v24, %v237_v28 }
  0x3e   :  { %v271_v34 = vsel %vm207_vm15, %v175_v30, %v239_v33 }
  0x3f   :  { %v287_v35 = vpack.c.bf16 %v271_v34, %v269_v29 }
  0x41   :  { %522 = vmatmul.mubr.bf16.gmra.mxu1 %v287_v35 }
  0xe2   :  { %v844_v25 = vpop.f32.mrf.mxu0  ;;  %v868_v41 = vpop.f32.mrf.mxu1 }
  0xe4   :  { %v845_v36 = vpop.f32.mrf.mxu0  ;;  %v869_v43 = vpop.f32.mrf.mxu1 }
  0xe5   :  { %v846_v39 = vadd.f32 %v845_v36, %v844_v25  ;;  %v870_v47 = vadd.f32 %v869_v43, %v868_v41 }
  0xe6   :  { %v847_v37 = vpop.f32.mrf.mxu0  ;;  %v871_v45 = vpop.f32.mrf.mxu1 }
  0xe7   :  { %v683_v0 = vmul.f32 %v846_v39, %v846_v39 }
  0xe8   :  { %v848_v38 = vpop.f32.mrf.mxu0  ;;  %v872_v48 = vpop.f32.mrf.mxu1 }
  0xe9   :  { %v849_v40 = vadd.f32 %v848_v38, %v847_v37  ;;  %v873_v50 = vadd.f32 %v872_v48, %v871_v45 }
  0xea   :  { %v850_v42 = vpop.f32.mrf.mxu0 }
  0xeb   :  { %v784_v27 = vpack.c.bf16 %v849_v40, %v846_v39  ;;  %v804_v54 = vpack.c.bf16 %v873_v50, %v870_v47  ;;  %v684_v60 = vmul.f32 %v849_v40, %v849_v40  ;;  %v661_v4 = vadd.f32 %v849_v40, %v846_v39 }
  0xec   :  { %v851_v44 = vpop.f32.mrf.mxu0  ;;  %v874_v58 = vpop.f32.mrf.mxu1  ;;  %v691_v39 = vmul.f32 %v870_v47, %v870_v47 }
  0xed   :  { %785 = vst [vmem:[%s1175_s4] sm:$0xff] %v784_v27   ;;  %v852_v51 = vadd.f32 %v851_v44, %v850_v42  ;;  %824 = vst [vmem:[%s1175_s4 + $0x20] sm:$0xff] %v804_v54   ;;  %v699_v6 = vadd.f32 %v684_v60, %v683_v0  ;;  %v692_v27 = vmul.f32 %v873_v50, %v873_v50 }
  0xee   :  { %v853_v46 = vpop.f32.mrf.mxu0  ;;  %v875_v62 = vpop.f32.mrf.mxu1 }
  0xef   :  { %v685_v1 = vmul.f32 %v852_v51, %v852_v51  ;;  %v876_v5 = vadd.f32 %v875_v62, %v874_v58  ;;  %v662_v9 = vadd.f32 %v852_v51, %v661_v4 }
  0xf0   :  { %v854_v49 = vpop.f32.mrf.mxu0  ;;  %v877_v3 = vpop.f32.mrf.mxu1 }
  0xf1   :  { %v855_v52 = vadd.f32 %v854_v49, %v853_v46  ;;  %v700_v11 = vadd.f32 %v699_v6, %v685_v1  ;;  %v693_v48 = vmul.f32 %v876_v5, %v876_v5 }
  0xf2   :  { %v856_v53 = vpop.f32.mrf.mxu0  ;;  %v878_v8 = vpop.f32.mrf.mxu1 }
  0xf3   :  { %v789_v55 = vpack.c.bf16 %v855_v52, %v852_v51  ;;  %v686_v7 = vmul.f32 %v855_v52, %v855_v52  ;;  %v879_v10 = vadd.f32 %v878_v8, %v877_v3  ;;  %v663_v14 = vadd.f32 %v855_v52, %v662_v9 }
  0xf4   :  { %v857_v56 = vpop.f32.mrf.mxu0 }
  0xf5   :  { %821 = vst [vmem:[%s1175_s4 + $0x8] sm:$0xff] %v789_v55   ;;  %v858_v61 = vadd.f32 %v857_v56, %v856_v53  ;;  %v809_v15 = vpack.c.bf16 %v879_v10, %v876_v5  ;;  %v701_v16 = vadd.f32 %v700_v11, %v686_v7  ;;  %v694_v53 = vmul.f32 %v879_v10, %v879_v10 }
  0xf6   :  { %v859_v57 = vpop.f32.mrf.mxu0 }
  0xf7   :  { %v687_v12 = vmul.f32 %v858_v61, %v858_v61  ;;  %v664_v19 = vadd.f32 %v858_v61, %v663_v14  ;;  %825 = vst [vmem:[%s1175_s4 + $0x28] sm:$0xff] %v809_v15  }
  0xf8   :  { %v860_v59 = vpop.f32.mrf.mxu0  ;;  %v880_v22 = vpop.f32.mrf.mxu1 }
  0xf9   :  { %v861_v63 = vadd.f32 %v860_v59, %v859_v57  ;;  %v702_v21 = vadd.f32 %v701_v16, %v687_v12 }
  0xfa   :  { %v862_v13 = vpop.f32.mrf.mxu0  ;;  %v881_v31 = vpop.f32.mrf.mxu1 }
  0xfb   :  { %v794_v2 = vpack.c.bf16 %v861_v63, %v858_v61  ;;  %v688_v17 = vmul.f32 %v861_v63, %v861_v63  ;;  %v665_v23 = vadd.f32 %v861_v63, %v664_v19  ;;  %v882_v35 = vadd.f32 %v881_v31, %v880_v22 }
  0xfc   :  { %v863_v18 = vpop.f32.mrf.mxu0  ;;  %v883_v34 = vpop.f32.mrf.mxu1 }
  0xfd   :  { %822 = vst [vmem:[%s1175_s4 + $0x10] sm:$0xff] %v794_v2   ;;  %v864_v20 = vadd.f32 %v863_v18, %v862_v13  ;;  %v703_v30 = vadd.f32 %v702_v21, %v688_v17  ;;  %v695_v57 = vmul.f32 %v882_v35, %v882_v35 }
  0xfe   :  { %v865_v26 = vpop.f32.mrf.mxu0  ;;  %v884_v38 = vpop.f32.mrf.mxu1 }
  0xff   :  { %v689_v24 = vmul.f32 %v864_v20, %v864_v20  ;;  %v666_v28 = vadd.f32 %v864_v20, %v665_v23  ;;  %v885_v42 = vadd.f32 %v884_v38, %v883_v34 }
 0x100   :  { %v866_v32 = vpop.f32.mrf.mxu0 }
 0x101   :  { %v867_v33 = vadd.f32 %v866_v32, %v865_v26  ;;  %v704_v29 = vadd.f32 %v703_v30, %v689_v24  ;;  %v814_v45 = vpack.c.bf16 %v885_v42, %v882_v35  ;;  %v886_v46 = vpop.f32.mrf.mxu1  ;;  %v696_v62 = vmul.f32 %v885_v42, %v885_v42 }
 0x103   :  { %v799_v25 = vpack.c.bf16 %v867_v33, %v864_v20  ;;  %v667_v36 = vadd.f32 %v867_v33, %v666_v28  ;;  %v690_v37 = vmul.f32 %v867_v33, %v867_v33  ;;  %826 = vst [vmem:[%s1175_s4 + $0x30] sm:$0xff] %v814_v45   ;;  %v887_v52 = vpop.f32.mrf.mxu1 }
 0x105   :  { %823 = vst [vmem:[%s1175_s4 + $0x18] sm:$0xff] %v799_v25   ;;  %v668_v40 = vadd.f32 %v870_v47, %v667_v36  ;;  %v705_v41 = vadd.f32 %v704_v29, %v690_v37  ;;  %v889_v56 = vpop.f32.mrf.mxu1  ;;  %v888_v47 = vadd.f32 %v887_v52, %v886_v46 }
 0x107   :  { %v669_v43 = vadd.f32 %v873_v50, %v668_v40  ;;  %v706_v44 = vadd.f32 %v705_v41, %v691_v39  ;;  %v890_v50 = vpop.f32.mrf.mxu1  ;;  %v697_v3 = vmul.f32 %v888_v47, %v888_v47 }
 0x108   :  { %v891_v60 = vadd.f32 %v890_v50, %v889_v56 }
 0x109   :  { %v707_v49 = vadd.f32 %v706_v44, %v692_v27  ;;  %v670_v51 = vadd.f32 %v876_v5, %v669_v43 }
 0x10a   :  { %v819_v0 = vpack.c.bf16 %v891_v60, %v888_v47  ;;  %v698_v6 = vmul.f32 %v891_v60, %v891_v60 }
 0x10b   :  { %v671_v54 = vadd.f32 %v879_v10, %v670_v51  ;;  %v708_v55 = vadd.f32 %v707_v49, %v693_v48 }
 0x10c   :  { %827 = vst [vmem:[%s1175_s4 + $0x38] sm:$0xff] %v819_v0  }
 0x10d   :  { %v672_v58 = vadd.f32 %v882_v35, %v671_v54  ;;  %v709_v59 = vadd.f32 %v708_v55, %v694_v53 }
 0x10f   :  { %v673_v61 = vadd.f32 %v885_v42, %v672_v58  ;;  %v710_v63 = vadd.f32 %v709_v59, %v695_v57 }
 0x111   :  { %v711_v1 = vadd.f32 %v710_v63, %v696_v62  ;;  %v674_v2 = vadd.f32 %v888_v47, %v673_v61 }
 0x113   :  { %v712_v4 = vadd.f32 %v711_v1, %v697_v3  ;;  %v675_v5 = vadd.f32 %v891_v60, %v674_v2 }
 0x115   :  { %v676_v7 = vrot.slane %v675_v5, 4  ;;  %v713_v8 = vadd.f32 %v712_v4, %v698_v6 }
 0x117   :  { %v677_v9 = vadd.f32 %v676_v7, %v675_v5  ;;  %v714_v10 = vrot.slane %v713_v8, 4 }
 0x119   :  { %v678_v11 = vrot.slane %v677_v9, 2  ;;  %v715_v12 = vadd.f32 %v714_v10, %v713_v8 }
 0x11b   :  { %v679_v13 = vadd.f32 %v678_v11, %v677_v9  ;;  %v716_v14 = vrot.slane %v715_v12, 2 }
 0x11d   :  { %v680_v15 = vrot.slane %v679_v13, 1  ;;  %v717_v16 = vadd.f32 %v716_v14, %v715_v12 }
 0x11f   :  { %v681_v17 = vadd.f32 %v680_v15, %v679_v13  ;;  %v718_v18 = vrot.slane %v717_v16, 1 }
 0x121   :  { %682 = vst [vmem:[%s1176_s5] sm:$0x1] %v681_v17  ;;  %v719_v19 = vadd.f32 %v718_v18, %v717_v16 }
 0x123   :  { %720 = vst [vmem:[%s1177_s6] sm:$0x1] %v719_v19 }

// kernel: tile.43
= control target key start
LH: loop header
LB: loop body
LE: loop exit
PB: predicated region body
PF: predicated region fallthrough
CT: control target
= control target key end

     0   :  { %s28_s0 = inlined_call_operand.vmem [shape: f32[32], index: 0, kind: input, shape index: {}]   ;;  %s29_s1 = inlined_call_operand.vmem [shape: f32[16,32], index: 1, kind: output, shape index: {}]  }
   0x1   :  { %v4_v0 = vld [vmem:[%s28_s0] ss:$0 sm:$0xff] }
   0x2   :  { %5 = vst [vmem:[%s29_s1] sm:$0xff] %v4_v0  ;;  %8 = vst [vmem:[%s29_s1 + $0x8] sm:$0xff] %v4_v0 }

// kernel: tile.44
= control target key start
LH: loop header
LB: loop body
LE: loop exit
PB: predicated region body
PF: predicated region fallthrough
CT: control target
= control target key end

     0   :  { %s62_s8 = smov 96   ;;  %vm3_vm0 = vcmask 261120   ;;  %s64_s15 = smov 64   ;;  %vm9_vm1 = vcmask 1048320   ;;  %vm15_vm2 = vcmask 785920   ;;  %vm21_vm3 = vcmask 523520   ;;  %s99_s0 = inlined_call_operand.vmem [shape: f32[16,32], index: 0, kind: input, shape index: {}]   ;;  %s100_s1 = inlined_call_operand.vmem [shape: f32[1,512], index: 1, kind: output, shape index: {}]  }
   0x1   :  { %v53_v0 = vld [vmem:[%s99_s0 + $0x3] ss:$4 sm:$0xf]   ;;  %v54_v1 = vld [vmem:[%s99_s0 + $0x2] ss:$4 sm:$0xf]  }
   0x2   :  { %7 = vrot.lane.b32.xlu0 %v53_v0, %s62_s8  ;;  %v55_v2 = vld [vmem:[%s99_s0 + $0x1] ss:$4 sm:$0xf]   ;;  %v2_v3 = vld [vmem:[%s99_s0] ss:$4 sm:$0xf]  }
   0x3   :  { %s63_s0 = smov 32   ;;  %4 = vst.msk [vmem:[#allocation0] ss:$8 sm:$0xf] %vm3_vm0, %v2_v3  }
   0x4   :  { %19 = vrot.lane.b32.xlu1 %v55_v2, %s63_s0 }
   0x6   :  { %13 = vrot.lane.b32.xlu0 %v54_v1, %s64_s15 }
  0x74   :  { %v8_v4 = vpop.permute.xlu0 %7  }
  0x75   :  { %10 = vst.msk [vmem:[#allocation0] ss:$8 sm:$0xf] %vm9_vm1, %v8_v4  }
  0x76   :  { %v20_v5 = vpop.permute.xlu1 %19  }
  0x78   :  { %v14_v6 = vpop.permute.xlu0 %13  }
  0x79   :  { %16 = vst.msk [vmem:[#allocation0] ss:$8 sm:$0xf] %vm15_vm2, %v14_v6  }
  0x7a   :  { %22 = vst.msk [vmem:[#allocation0] ss:$8 sm:$0xf] %vm21_vm3, %v20_v5  }
  0x81   :  { %v27_v7 = vld [vmem:[#allocation0] sm:$0x1]  ;;  %v32_v8 = vld [vmem:[#allocation0 + $0x8] sm:$0x1]  ;;  %v38_v9 = vld [vmem:[#allocation0 + $0x10] sm:$0x1] }
  0x82   :  { %30 = vst [vmem:[%s100_s1] sm:$0x1] %v27_v7  ;;  %56 = vst [vmem:[%s100_s1 + $0x1] sm:$0x1] %v32_v8  ;;  %v45_v10 = vld [vmem:[#allocation0 + $0x18] sm:$0x1] }
  0x83   :  { %57 = vst [vmem:[%s100_s1 + $0x2] sm:$0x1] %v38_v9  ;;  %58 = vst [vmem:[%s100_s1 + $0x3] sm:$0x1] %v45_v10 }

// kernel: tile.53
= control target key start
LH: loop header
LB: loop body
LE: loop exit
PB: predicated region body
PF: predicated region fallthrough
CT: control target
= control target key end

     0   :  { %s28_s0 = inlined_call_operand.vmem [shape: f32[64], index: 0, kind: input, shape index: {}]   ;;  %s29_s1 = inlined_call_operand.vmem [shape: f32[16,64], index: 1, kind: output, shape index: {}]  }
   0x1   :  { %v4_v0 = vld [vmem:[%s28_s0] ss:$0 sm:$0xff] }
   0x2   :  { %5 = vst [vmem:[%s29_s1] sm:$0xff] %v4_v0  ;;  %8 = vst [vmem:[%s29_s1 + $0x8] sm:$0xff] %v4_v0 }

// kernel: tile.54
= control target key start
LH: loop header
LB: loop body
LE: loop exit
PB: predicated region body
PF: predicated region fallthrough
CT: control target
= control target key end

     0   :  { %vm3_vm0 = vcmask 523264   ;;  %vm10_vm1 = vcmask 1048064   ;;  %s125_s0 = inlined_call_operand.vmem [shape: f32[16,64], index: 0, kind: input, shape index: {}]   ;;  %s126_s1 = inlined_call_operand.vmem [shape: f32[1,1024], index: 1, kind: output, shape index: {}]  }
   0x1   :  { %v75_v0 = vld [vmem:[%s125_s0 + $0x1] ss:$2 sm:$0xff]   ;;  %v2_v1 = vld [vmem:[%s125_s0] ss:$2 sm:$0xff]   ;;  %s84_s0 = smov 64  }
   0x2   :  { %8 = vrot.lane.b32.xlu0 %v75_v0, %s84_s0  ;;  %4 = vst.msk [vmem:[#allocation0] ss:$8 sm:$0xf] %vm3_vm0, %v2_v1   ;;  %5 = vst.msk [vmem:[#allocation0] ss:$8 sm:$0xf0] %vm3_vm0, %v2_v1  }
  0x74   :  { %v9_v2 = vpop.permute.xlu0 %8  }
  0x75   :  { %11 = vst.msk [vmem:[#allocation0] ss:$8 sm:$0xf] %vm10_vm1, %v9_v2   ;;  %12 = vst.msk [vmem:[#allocation0] ss:$8 sm:$0xf0] %vm10_vm1, %v9_v2  }
  0x7c   :  { %v17_v3 = vld [vmem:[#allocation0] sm:$0x1]  ;;  %v22_v4 = vld [vmem:[#allocation0 + $0x8] sm:$0x1]  ;;  %v28_v5 = vld [vmem:[#allocation0 + $0x10] sm:$0x1] }
  0x7d   :  { %20 = vst [vmem:[%s126_s1] sm:$0x1] %v17_v3  ;;  %76 = vst [vmem:[%s126_s1 + $0x1] sm:$0x1] %v22_v4  ;;  %v35_v6 = vld [vmem:[#allocation0 + $0x18] sm:$0x1] }
  0x7e   :  { %77 = vst [vmem:[%s126_s1 + $0x2] sm:$0x1] %v28_v5  ;;  %v42_v7 = vld [vmem:[#allocation0 + $0x20] sm:$0x1]  ;;  %v49_v8 = vld [vmem:[#allocation0 + $0x28] sm:$0x1] }
  0x7f   :  { %78 = vst [vmem:[%s126_s1 + $0x3] sm:$0x1] %v35_v6  ;;  %79 = vst [vmem:[%s126_s1 + $0x4] sm:$0x1] %v42_v7  ;;  %v56_v9 = vld [vmem:[#allocation0 + $0x30] sm:$0x1] }
  0x80   :  { %80 = vst [vmem:[%s126_s1 + $0x5] sm:$0x1] %v49_v8  ;;  %v63_v10 = vld [vmem:[#allocation0 + $0x38] sm:$0x1]  ;;  %81 = vst [vmem:[%s126_s1 + $0x6] sm:$0x1] %v56_v9 }
  0x81   :  { %82 = vst [vmem:[%s126_s1 + $0x7] sm:$0x1] %v63_v10 }

// kernel: discriminator_forward.8
= control target key start
LH: loop header
LB: loop body
LE: loop exit
PB: predicated region body
PF: predicated region fallthrough
CT: control target
= control target key end

     0   :  { %v55_v23 = vlaneseq  ;;  %s974_s1 = inlined_call_operand.vmem [shape: bf16[512,128], index: 1, kind: input, shape index: {}]   ;;  %s975_s0 = inlined_call_operand.vmem [shape: bf16[32,512], index: 0, kind: input, shape index: {}]   ;;  %s976_s2 = inlined_call_operand.vmem [shape: f32[1,512], index: 2, kind: input, shape index: {}]   ;;  %s977_s3 = inlined_call_operand.vmem [shape: f32[1,512], index: 3, kind: input, shape index: {}]   ;;  %s978_s4 = inlined_call_operand.vmem [shape: bf16[32,128], index: 4, kind: output, shape index: {0}]   ;;  %s979_s5 = inlined_call_operand.vmem [shape: f32[1,1,128], index: 5, kind: output, shape index: {1}]   ;;  %s980_s6 = inlined_call_operand.vmem [shape: f32[1,1,128], index: 6, kind: output, shape index: {2}]  }
   0x1   :  { %v721_v0 = vld [vmem:[%s974_s1 + $0x78] sm:$0xff]   ;;  %v725_v4 = vld [vmem:[%s974_s1 + $0x70] sm:$0xff]   ;;  %v729_v8 = vld [vmem:[%s974_s1 + $0x68] sm:$0xff]  }
   0x2   :  { %v722_v1 = vld [vmem:[%s974_s1 + $0xf8] sm:$0xff]   ;;  %665 = vmatprep.subr.bf16.mxu0 %v721_v0  ;;  %v726_v5 = vld [vmem:[%s974_s1 + $0xf0] sm:$0xff]   ;;  %v730_v9 = vld [vmem:[%s974_s1 + $0xe8] sm:$0xff]   ;;  %v56_v28 = vshrl.u32 %v55_v23, 7 }
   0x3   :  { %v723_v2 = vld [vmem:[%s974_s1 + $0x38] sm:$0xff]   ;;  %693 = vmatprep.subr.bf16.mxu1 %v722_v1  ;;  %v727_v6 = vld [vmem:[%s974_s1 + $0x30] sm:$0xff]   ;;  %v731_v10 = vld [vmem:[%s974_s1 + $0x28] sm:$0xff]  }
   0x4   :  { %v724_v3 = vld [vmem:[%s974_s1 + $0xb8] sm:$0xff]   ;;  %666 = vmatpush3.bf16.msra.mxu0 %v723_v2  ;;  %v728_v7 = vld [vmem:[%s974_s1 + $0xb0] sm:$0xff]   ;;  %v732_v11 = vld [vmem:[%s974_s1 + $0xa8] sm:$0xff]   ;;  %v61_v33 = vsub.s32 1, %v56_v28  ;;  %v69_v35 = vsub.s32 3, %v56_v28  ;;  %v57_v39 = vsub.s32 0, %v56_v28 }
   0x5   :  { %694 = vmatpush3.bf16.msra.mxu1 %v724_v3  ;;  %667 = vmatprep.subr.bf16.mxu0 %v725_v4  ;;  %v733_v12 = vld [vmem:[%s974_s1 + $0x60] sm:$0xff]   ;;  %v737_v16 = vld [vmem:[%s974_s1 + $0x58] sm:$0xff]   ;;  %v741_v20 = vld [vmem:[%s974_s1 + $0x50] sm:$0xff]   ;;  %v65_v40 = vsub.s32 2, %v56_v28 }
   0x6   :  { %695 = vmatprep.subr.bf16.mxu1 %v726_v5  ;;  %v734_v13 = vld [vmem:[%s974_s1 + $0xe0] sm:$0xff]   ;;  %v738_v17 = vld [vmem:[%s974_s1 + $0xd8] sm:$0xff]   ;;  %v742_v21 = vld [vmem:[%s974_s1 + $0xd0] sm:$0xff]  }
   0x7   :  { %v735_v14 = vld [vmem:[%s974_s1 + $0x20] sm:$0xff]   ;;  %v739_v18 = vld [vmem:[%s974_s1 + $0x18] sm:$0xff]   ;;  %v743_v22 = vld [vmem:[%s974_s1 + $0x10] sm:$0xff]  }
   0x8   :  { %668 = vmatpush3.bf16.msra.mxu0 %v727_v6  ;;  %v736_v15 = vld [vmem:[%s974_s1 + $0xa0] sm:$0xff]   ;;  %v740_v19 = vld [vmem:[%s974_s1 + $0x98] sm:$0xff]   ;;  %v744_v24 = vld [vmem:[%s974_s1 + $0x90] sm:$0xff]  }
   0x9   :  { %696 = vmatpush3.bf16.msra.mxu1 %v728_v7  ;;  %669 = vmatprep.subr.bf16.mxu0 %v729_v8  ;;  %v745_v25 = vld [vmem:[%s974_s1 + $0x48] sm:$0xff]   ;;  %v749_v30 = vld [vmem:[%s974_s1 + $0x40] sm:$0xff]   ;;  %v31_v37 = vld [vmem:[%s975_s0 + $0x10] sm:$0xff] }
   0xa   :  { %697 = vmatprep.subr.bf16.mxu1 %v730_v9  ;;  %v746_v26 = vld [vmem:[%s974_s1 + $0xc8] sm:$0xff]   ;;  %v750_v31 = vld [vmem:[%s974_s1 + $0xc0] sm:$0xff]   ;;  %v41_v43 = vunpack.c.l.bf16 %v31_v37  ;;  %v42_v44 = vunpack.c.h.bf16 %v31_v37  ;;  %v32_v47 = vld [vmem:[%s975_s0 + $0x18] sm:$0xff] }
   0xb   :  { %v747_v27 = vld [vmem:[%s974_s1 + $0x8] sm:$0xff]   ;;  %v751_v32 = vld [vmem:[%s974_s1] sm:$0xff]   ;;  %v43_v52 = vunpack.c.l.bf16 %v32_v47  ;;  %v44_v53 = vunpack.c.h.bf16 %v32_v47  ;;  %v36_v28 = vld [vmem:[%s975_s0 + $0x38] sm:$0xff] }
   0xc   :  { %670 = vmatpush3.bf16.msra.mxu0 %v731_v10  ;;  %v748_v29 = vld [vmem:[%s974_s1 + $0x88] sm:$0xff]   ;;  %v752_v34 = vld [vmem:[%s974_s1 + $0x80] sm:$0xff]  }
   0xd   :  { %698 = vmatpush3.bf16.msra.mxu1 %v732_v11  ;;  %671 = vmatprep.subr.bf16.mxu0 %v733_v12  ;;  %v29_v36 = vld [vmem:[%s975_s0] sm:$0xff]  ;;  %v30_v46 = vld [vmem:[%s975_s0 + $0x8] sm:$0xff] }
   0xe   :  { %699 = vmatprep.subr.bf16.mxu1 %v734_v13  ;;  %v53_v38 = vld [vmem:[%s976_s2] sm:$0xf]  ;;  %v37_v41 = vunpack.c.l.bf16 %v29_v36  ;;  %v38_v42 = vunpack.c.h.bf16 %v29_v36  ;;  %v39_v50 = vunpack.c.l.bf16 %v30_v46  ;;  %v40_v51 = vunpack.c.h.bf16 %v30_v46 }
   0xf   :  { %v91_v45 = vld [vmem:[%s977_s3] sm:$0xf]  ;;  %v902_v48 = vrot.slane %v53_v38, %v61_v33  ;;  %v906_v54 = vrot.slane %v53_v38, %v69_v35  ;;  %v912_v58 = vrot.slane %v53_v38, %v57_v39  ;;  %v918_v62 = vrot.slane %v53_v38, %v65_v40 }
  0x10   :  { %672 = vmatpush3.bf16.msra.mxu0 %v735_v14  ;;  %v904_v49 = vrot.slane %v91_v45, %v61_v33  ;;  %v908_v55 = vrot.slane %v91_v45, %v69_v35  ;;  %v914_v59 = vrot.slane %v91_v45, %v57_v39  ;;  %v920_v63 = vrot.slane %v91_v45, %v65_v40 }
  0x11   :  { %700 = vmatpush3.bf16.msra.mxu1 %v736_v15  ;;  %673 = vmatprep.subr.bf16.mxu0 %v737_v16  ;;  %v76_v56 = vmul.f32 %v902_v48, %v38_v42  ;;  %v80_v57 = vmul.f32 %v902_v48, %v42_v44  ;;  %v78_v60 = vmul.f32 %v906_v54, %v40_v51  ;;  %v52_v39 = vunpack.c.h.bf16 %v36_v28 }
  0x12   :  { %701 = vmatprep.subr.bf16.mxu1 %v738_v17  ;;  %v82_v61 = vmul.f32 %v906_v54, %v44_v53  ;;  %v75_v2 = vmul.f32 %v912_v58, %v37_v41  ;;  %v79_v3 = vmul.f32 %v912_v58, %v41_v43  ;;  %v77_v6 = vmul.f32 %v918_v62, %v39_v50 }
  0x13   :  { %v114_v0 = vadd.f32 %v904_v49, %v76_v56  ;;  %v118_v1 = vadd.f32 %v904_v49, %v80_v57  ;;  %v116_v4 = vadd.f32 %v908_v55, %v78_v60  ;;  %v81_v7 = vmul.f32 %v918_v62, %v43_v52 }
  0x14   :  { %674 = vmatpush3.bf16.msra.mxu0 %v739_v18  ;;  %v120_v5 = vadd.f32 %v908_v55, %v82_v61  ;;  %v113_v14 = vadd.f32 %v914_v59, %v75_v2  ;;  %v117_v15 = vadd.f32 %v914_v59, %v79_v3  ;;  %v90_v47 = vmul.f32 %v906_v54, %v52_v39 }
  0x15   :  { %702 = vmatpush3.bf16.msra.mxu1 %v740_v19  ;;  %675 = vmatprep.subr.bf16.mxu0 %v741_v20  ;;  %vm130_vm0 = vcmp.gt.f32.partialorder %v114_v0, 0.0  ;;  %vm134_vm1 = vcmp.gt.f32.partialorder %v118_v1, 0.0  ;;  %v146_v8 = vmul.f32 0.2, %v114_v0  ;;  %v150_v9 = vmul.f32 0.2, %v118_v1 }
  0x16   :  { %703 = vmatprep.subr.bf16.mxu1 %v742_v21  ;;  %vm132_vm2 = vcmp.gt.f32.partialorder %v116_v4, 0.0  ;;  %vm136_vm3 = vcmp.gt.f32.partialorder %v120_v5, 0.0  ;;  %v148_v10 = vmul.f32 0.2, %v116_v4  ;;  %v152_v11 = vmul.f32 0.2, %v120_v5 }
  0x17   :  { %v162_v12 = vsel %vm130_vm0, %v114_v0, %v146_v8  ;;  %v166_v13 = vsel %vm134_vm1, %v118_v1, %v150_v9  ;;  %v115_v19 = vadd.f32 %v920_v63, %v77_v6  ;;  %v33_v20 = vld [vmem:[%s975_s0 + $0x20] sm:$0xff]  ;;  %v35_v21 = vld [vmem:[%s975_s0 + $0x30] sm:$0xff]  ;;  %vm129_vm4 = vcmp.gt.f32.partialorder %v113_v14, 0.0 }
  0x18   :  { %676 = vmatpush3.bf16.msra.mxu0 %v743_v22  ;;  %v178_v16 = vpack.c.bf16 %v166_v13, %v162_v12  ;;  %v164_v17 = vsel %vm132_vm2, %v116_v4, %v148_v10  ;;  %v168_v18 = vsel %vm136_vm3, %v120_v5, %v152_v11  ;;  %v34_v22 = vld [vmem:[%s975_s0 + $0x28] sm:$0xff]  ;;  %vm133_vm5 = vcmp.gt.f32.partialorder %v117_v15, 0.0 }
  0x19   :  { %704 = vmatpush3.bf16.msra.mxu1 %v744_v24  ;;  %677 = vmatprep.subr.bf16.mxu0 %v745_v25  ;;  %v180_v23 = vpack.c.bf16 %v168_v18, %v164_v17  ;;  %v145_v24 = vmul.f32 0.2, %v113_v14  ;;  %v149_v25 = vmul.f32 0.2, %v117_v15  ;;  %vm131_vm6 = vcmp.gt.f32.partialorder %v115_v19, 0.0 }
  0x1a   :  { %705 = vmatprep.subr.bf16.mxu1 %v746_v26  ;;  %477 = vmatprep.mubr.bf16.mxu0 %v178_v16  ;;  %v119_v26 = vadd.f32 %v920_v63, %v81_v7  ;;  %v45_v42 = vunpack.c.l.bf16 %v33_v20  ;;  %v49_v43 = vunpack.c.l.bf16 %v35_v21  ;;  %v47_v52 = vunpack.c.l.bf16 %v34_v22 }
  0x1b   :  { %526 = vmatprep.mubr.bf16.mxu1 %v180_v23  ;;  %v165_v33 = vsel %vm133_vm5, %v117_v15, %v149_v25  ;;  %v128_v57 = vadd.f32 %v908_v55, %v90_v47  ;;  %v51_v1 = vunpack.c.l.bf16 %v36_v28 }
  0x1c   :  { %678 = vmatpush3.bf16.msra.mxu0 %v747_v27  ;;  %v147_v27 = vmul.f32 0.2, %v115_v19  ;;  %vm135_vm7 = vcmp.gt.f32.partialorder %v119_v26, 0.0  ;;  %v83_v51 = vmul.f32 %v912_v58, %v45_v42 }
  0x1d   :  { %706 = vmatpush3.bf16.msra.mxu1 %v748_v29  ;;  %679 = vmatprep.subr.bf16.mxu0 %v749_v30  ;;  %v161_v29 = vsel %vm129_vm4, %v113_v14, %v145_v24  ;;  %v46_v30 = vunpack.c.h.bf16 %v33_v20  ;;  %vm144_vm11 = vcmp.gt.f32.partialorder %v128_v57, 0.0  ;;  %v89_v7 = vmul.f32 %v918_v62, %v51_v1 }
  0x1e   :  { %707 = vmatprep.subr.bf16.mxu1 %v750_v31  ;;  %v50_v31 = vunpack.c.h.bf16 %v35_v21  ;;  %v163_v35 = vsel %vm131_vm6, %v115_v19, %v147_v27  ;;  %v177_v36 = vpack.c.bf16 %v165_v33, %v161_v29 }
  0x1f   :  { %v84_v37 = vmul.f32 %v902_v48, %v46_v30  ;;  %v127_v12 = vadd.f32 %v920_v63, %v89_v7 }
  0x20   :  { %680 = vmatpush3.bf16.msra.mxu0 %v751_v32  ;;  %v48_v32 = vunpack.c.h.bf16 %v34_v22  ;;  %v88_v38 = vmul.f32 %v902_v48, %v50_v31  ;;  %v87_v48 = vmul.f32 %v912_v58, %v49_v43  ;;  %v160_v58 = vmul.f32 0.2, %v128_v57 }
  0x21   :  { %708 = vmatpush3.bf16.msra.mxu1 %v752_v34  ;;  %v151_v34 = vmul.f32 0.2, %v119_v26  ;;  %v122_v45 = vadd.f32 %v904_v49, %v84_v37  ;;  %vm143_vm15 = vcmp.gt.f32.partialorder %v127_v12, 0.0  ;;  %v159_v14 = vmul.f32 0.2, %v127_v12 }
  0x22   :  { %v86_v41 = vmul.f32 %v906_v54, %v48_v32  ;;  %v126_v46 = vadd.f32 %v904_v49, %v88_v38  ;;  %v121_v49 = vadd.f32 %v914_v59, %v83_v51  ;;  %v125_v0 = vadd.f32 %v914_v59, %v87_v48 }
  0x23   :  { %v167_v40 = vsel %vm135_vm7, %v119_v26, %v151_v34  ;;  %478 = vmatmul.mubr.bf16.vlgmr.msra.gmra.mxu0 %v177_v36  ;;  %vm138_vm8 = vcmp.gt.f32.partialorder %v122_v45, 0.0  ;;  %v154_v53 = vmul.f32 0.2, %v122_v45  ;;  %v176_v6 = vsel %vm144_vm11, %v128_v57, %v160_v58 }
  0x24   :  { %v179_v44 = vpack.c.bf16 %v167_v40, %v163_v35  ;;  %v124_v50 = vadd.f32 %v908_v55, %v86_v41  ;;  %vm142_vm9 = vcmp.gt.f32.partialorder %v126_v46, 0.0  ;;  %v158_v56 = vmul.f32 0.2, %v126_v46 }
  0x25   :  { %v170_v61 = vsel %vm138_vm8, %v122_v45, %v154_v53  ;;  %vm137_vm12 = vcmp.gt.f32.partialorder %v121_v49, 0.0  ;;  %vm141_vm13 = vcmp.gt.f32.partialorder %v125_v0, 0.0  ;;  %v153_v4 = vmul.f32 0.2, %v121_v49 }
  0x26   :  { %527 = vmatmul.mubr.bf16.vlgmr.msra.gmra.mxu1 %v179_v44  ;;  %vm140_vm10 = vcmp.gt.f32.partialorder %v124_v50, 0.0  ;;  %v156_v60 = vmul.f32 0.2, %v124_v50  ;;  %v174_v54 = vsel %vm142_vm9, %v126_v46, %v158_v56  ;;  %v157_v5 = vmul.f32 0.2, %v125_v0 }
  0x27   :  { %v182_v2 = vpack.c.bf16 %v174_v54, %v170_v61  ;;  %v85_v55 = vmul.f32 %v918_v62, %v47_v52  ;;  %v169_v9 = vsel %vm137_vm12, %v121_v49, %v153_v4  ;;  %v175_v16 = vsel %vm143_vm15, %v127_v12, %v159_v14 }
  0x28   :  { %v172_v3 = vsel %vm140_vm10, %v124_v50, %v156_v60  ;;  %v173_v10 = vsel %vm141_vm13, %v125_v0, %v157_v5 }
  0x29   :  { %485 = vmatprep.mubr.bf16.mxu0 %v182_v2  ;;  %v184_v8 = vpack.c.bf16 %v176_v6, %v172_v3  ;;  %v181_v11 = vpack.c.bf16 %v173_v10, %v169_v9  ;;  %v123_v59 = vadd.f32 %v920_v63, %v85_v55 }
  0x2b   :  { %534 = vmatprep.mubr.bf16.mxu1 %v184_v8  ;;  %486 = vmatmul.mubr.bf16.gmra.mxu0 %v181_v11  ;;  %vm139_vm14 = vcmp.gt.f32.partialorder %v123_v59, 0.0  ;;  %v155_v13 = vmul.f32 0.2, %v123_v59 }
  0x2d   :  { %v171_v15 = vsel %vm139_vm14, %v123_v59, %v155_v13 }
  0x2e   :  { %v183_v17 = vpack.c.bf16 %v175_v16, %v171_v15 }
  0x30   :  { %535 = vmatmul.mubr.bf16.gmra.mxu1 %v183_v17 }
  0xe3   :  { %v681_v18 = vpop.f32.mrf.mxu0 }
  0xe5   :  { %v682_v19 = vpop.f32.mrf.mxu0 }
  0xe6   :  { %v709_v62 = vpop.f32.mrf.mxu1  ;;  %v683_v24 = vadd.f32 %v682_v19, %v681_v18 }
  0xe7   :  { %v684_v21 = vpop.f32.mrf.mxu0 }
  0xe8   :  { %v710_v20 = vpop.f32.mrf.mxu1 }
  0xe9   :  { %v685_v23 = vpop.f32.mrf.mxu0  ;;  %v711_v25 = vadd.f32 %v710_v20, %v709_v62 }
  0xea   :  { %v712_v22 = vpop.f32.mrf.mxu1  ;;  %v686_v63 = vadd.f32 %v685_v23, %v684_v21 }
  0xeb   :  { %v529_v28 = vadd.f32 %v711_v25, %v683_v24  ;;  %v687_v30 = vpop.f32.mrf.mxu0 }
  0xec   :  { %v713_v26 = vpop.f32.mrf.mxu1 }
  0xed   :  { %v714_v27 = vadd.f32 %v713_v26, %v712_v22  ;;  %v688_v32 = vpop.f32.mrf.mxu0  ;;  %v588_v44 = vmul.f32 %v529_v28, %v529_v28 }
  0xee   :  { %v689_v35 = vadd.f32 %v688_v32, %v687_v30 }
  0xef   :  { %v532_v29 = vadd.f32 %v714_v27, %v686_v63  ;;  %v690_v33 = vpop.f32.mrf.mxu0 }
  0xf0   :  { %v715_v34 = vpop.f32.mrf.mxu1 }
  0xf1   :  { %v657_v31 = vpack.c.bf16 %v532_v29, %v529_v28  ;;  %v691_v37 = vpop.f32.mrf.mxu0  ;;  %v589_v40 = vmul.f32 %v532_v29, %v532_v29  ;;  %v578_v45 = vadd.f32 %v532_v29, %v529_v28 }
  0xf2   :  { %v716_v36 = vpop.f32.mrf.mxu1  ;;  %v692_v42 = vadd.f32 %v691_v37, %v690_v33 }
  0xf3   :  { %658 = vst [vmem:[%s978_s4] sm:$0xff] %v657_v31   ;;  %v717_v38 = vadd.f32 %v716_v36, %v715_v34  ;;  %v592_v50 = vadd.f32 %v589_v40, %v588_v44 }
  0xf4   :  { %v718_v39 = vpop.f32.mrf.mxu1 }
  0xf5   :  { %v537_v41 = vadd.f32 %v717_v38, %v689_v35 }
  0xf6   :  { %v719_v43 = vpop.f32.mrf.mxu1 }
  0xf7   :  { %v590_v46 = vmul.f32 %v537_v41, %v537_v41  ;;  %v720_v47 = vadd.f32 %v719_v43, %v718_v39  ;;  %v579_v51 = vadd.f32 %v578_v45, %v537_v41 }
  0xf9   :  { %v540_v48 = vadd.f32 %v720_v47, %v692_v42  ;;  %v593_v52 = vadd.f32 %v592_v50, %v590_v46 }
  0xfb   :  { %v662_v53 = vpack.c.bf16 %v540_v48, %v537_v41  ;;  %v580_v56 = vadd.f32 %v579_v51, %v540_v48  ;;  %v591_v57 = vmul.f32 %v540_v48, %v540_v48 }
  0xfd   :  { %664 = vst [vmem:[%s978_s4 + $0x8] sm:$0xff] %v662_v53   ;;  %v581_v60 = vrot.slane %v580_v56, 4  ;;  %v594_v49 = vadd.f32 %v593_v52, %v591_v57 }
  0xff   :  { %v582_v61 = vadd.f32 %v581_v60, %v580_v56  ;;  %v595_v54 = vrot.slane %v594_v49, 4 }
 0x101   :  { %v583_v0 = vrot.slane %v582_v61, 2  ;;  %v596_v1 = vadd.f32 %v595_v54, %v594_v49 }
 0x103   :  { %v584_v2 = vadd.f32 %v583_v0, %v582_v61  ;;  %v597_v58 = vrot.slane %v596_v1, 2 }
 0x105   :  { %v585_v3 = vrot.slane %v584_v2, 1  ;;  %v598_v4 = vadd.f32 %v597_v58, %v596_v1 }
 0x107   :  { %v586_v5 = vadd.f32 %v585_v3, %v584_v2  ;;  %v599_v6 = vrot.slane %v598_v4, 1 }
 0x109   :  { %587 = vst [vmem:[%s979_s5] sm:$0x1] %v586_v5  ;;  %v600_v55 = vadd.f32 %v599_v6, %v598_v4 }
 0x10b   :  { %601 = vst [vmem:[%s980_s6] sm:$0x1] %v600_v55 }

// kernel: discriminator_forward.9
= control target key start
LH: loop header
LB: loop body
LE: loop exit
PB: predicated region body
PF: predicated region fallthrough
CT: control target
= control target key end

     0   :  { %v53_v23 = vlaneseq  ;;  %s1454_s1 = inlined_call_operand.vmem [shape: bf16[1024,128], index: 1, kind: input, shape index: {}]   ;;  %s1455_s0 = inlined_call_operand.vmem [shape: bf16[16,1024], index: 0, kind: input, shape index: {}]   ;;  %s1456_s2 = inlined_call_operand.vmem [shape: f32[1,1024], index: 2, kind: input, shape index: {}]   ;;  %s1457_s3 = inlined_call_operand.vmem [shape: f32[1,1024], index: 3, kind: input, shape index: {}]   ;;  %s1458_s4 = inlined_call_operand.vmem [shape: f32[1,128], index: 4, kind: input, shape index: {}]   ;;  %s1459_s5 = inlined_call_operand.vmem [shape: f32[16,128], index: 5, kind: output, shape index: {}]  }
   0x1   :  { %v1090_v0 = vld [vmem:[%s1454_s1 + $0x78] sm:$0xff]   ;;  %v1094_v4 = vld [vmem:[%s1454_s1 + $0x70] sm:$0xff]   ;;  %v1098_v8 = vld [vmem:[%s1454_s1 + $0x68] sm:$0xff]  }
   0x2   :  { %v1091_v1 = vld [vmem:[%s1454_s1 + $0xf8] sm:$0xff]   ;;  %1002 = vmatprep.subr.bf16.mxu0 %v1090_v0  ;;  %v1095_v5 = vld [vmem:[%s1454_s1 + $0xf0] sm:$0xff]   ;;  %v1099_v9 = vld [vmem:[%s1454_s1 + $0xe8] sm:$0xff]   ;;  %v1273_v28 = vshrl.u32 %v53_v23, 7 }
   0x3   :  { %v1092_v2 = vld [vmem:[%s1454_s1 + $0x38] sm:$0xff]   ;;  %1024 = vmatprep.subr.bf16.mxu1 %v1091_v1  ;;  %v1096_v6 = vld [vmem:[%s1454_s1 + $0x30] sm:$0xff]   ;;  %v1100_v10 = vld [vmem:[%s1454_s1 + $0x28] sm:$0xff]  }
   0x4   :  { %v1093_v3 = vld [vmem:[%s1454_s1 + $0xb8] sm:$0xff]   ;;  %1003 = vmatpush3.bf16.msra.mxu0 %v1092_v2  ;;  %v1097_v7 = vld [vmem:[%s1454_s1 + $0xb0] sm:$0xff]   ;;  %v1101_v11 = vld [vmem:[%s1454_s1 + $0xa8] sm:$0xff]   ;;  %v59_v33 = vsub.s32 1, %v1273_v28  ;;  %v67_v35 = vsub.s32 3, %v1273_v28  ;;  %v55_v39 = vsub.s32 0, %v1273_v28 }
   0x5   :  { %1025 = vmatpush3.bf16.msra.mxu1 %v1093_v3  ;;  %1004 = vmatprep.subr.bf16.mxu0 %v1094_v4  ;;  %v1102_v12 = vld [vmem:[%s1454_s1 + $0x60] sm:$0xff]   ;;  %v1106_v16 = vld [vmem:[%s1454_s1 + $0x58] sm:$0xff]   ;;  %v1110_v20 = vld [vmem:[%s1454_s1 + $0x50] sm:$0xff]   ;;  %v63_v40 = vsub.s32 2, %v1273_v28 }
   0x6   :  { %1026 = vmatprep.subr.bf16.mxu1 %v1095_v5  ;;  %v1103_v13 = vld [vmem:[%s1454_s1 + $0xe0] sm:$0xff]   ;;  %v1107_v17 = vld [vmem:[%s1454_s1 + $0xd8] sm:$0xff]   ;;  %v1111_v21 = vld [vmem:[%s1454_s1 + $0xd0] sm:$0xff]  }
   0x7   :  { %v1104_v14 = vld [vmem:[%s1454_s1 + $0x20] sm:$0xff]   ;;  %v1108_v18 = vld [vmem:[%s1454_s1 + $0x18] sm:$0xff]   ;;  %v1112_v22 = vld [vmem:[%s1454_s1 + $0x10] sm:$0xff]  }
   0x8   :  { %1005 = vmatpush3.bf16.msra.mxu0 %v1096_v6  ;;  %v1105_v15 = vld [vmem:[%s1454_s1 + $0xa0] sm:$0xff]   ;;  %v1109_v19 = vld [vmem:[%s1454_s1 + $0x98] sm:$0xff]   ;;  %v1113_v24 = vld [vmem:[%s1454_s1 + $0x90] sm:$0xff]  }
   0x9   :  { %1027 = vmatpush3.bf16.msra.mxu1 %v1097_v7  ;;  %1006 = vmatprep.subr.bf16.mxu0 %v1098_v8  ;;  %v1114_v25 = vld [vmem:[%s1454_s1 + $0x48] sm:$0xff]   ;;  %v1118_v30 = vld [vmem:[%s1454_s1 + $0x40] sm:$0xff]   ;;  %v1122_v52 = vld [vmem:[%s1454_s1 + $0x178] sm:$0xff]  }
   0xa   :  { %1028 = vmatprep.subr.bf16.mxu1 %v1099_v9  ;;  %v1115_v26 = vld [vmem:[%s1454_s1 + $0xc8] sm:$0xff]   ;;  %v1119_v31 = vld [vmem:[%s1454_s1 + $0xc0] sm:$0xff]   ;;  %v1123_v57 = vld [vmem:[%s1454_s1 + $0x1f8] sm:$0xff]  }
   0xb   :  { %v1116_v27 = vld [vmem:[%s1454_s1 + $0x8] sm:$0xff]   ;;  %v1120_v32 = vld [vmem:[%s1454_s1] sm:$0xff]  }
   0xc   :  { %1007 = vmatpush3.bf16.msra.mxu0 %v1100_v10  ;;  %v1117_v29 = vld [vmem:[%s1454_s1 + $0x88] sm:$0xff]   ;;  %v1121_v34 = vld [vmem:[%s1454_s1 + $0x80] sm:$0xff]  }
   0xd   :  { %1029 = vmatpush3.bf16.msra.mxu1 %v1101_v11  ;;  %1008 = vmatprep.subr.bf16.mxu0 %v1102_v12  ;;  %v27_v36 = vld [vmem:[%s1455_s0] sm:$0xff]  ;;  %v28_v46 = vld [vmem:[%s1455_s0 + $0x8] sm:$0xff] }
   0xe   :  { %1030 = vmatprep.subr.bf16.mxu1 %v1103_v13  ;;  %v31_v37 = vld [vmem:[%s1455_s0 + $0x20] sm:$0xff]  ;;  %v35_v41 = vunpack.c.l.bf16 %v27_v36  ;;  %v36_v42 = vunpack.c.h.bf16 %v27_v36  ;;  %v32_v47 = vld [vmem:[%s1455_s0 + $0x28] sm:$0xff]  ;;  %v37_v50 = vunpack.c.l.bf16 %v28_v46  ;;  %v38_v51 = vunpack.c.h.bf16 %v28_v46 }
   0xf   :  { %v1301_v38 = vld [vmem:[%s1456_s2] sm:$0xff]  ;;  %v43_v43 = vunpack.c.l.bf16 %v31_v37  ;;  %v44_v44 = vunpack.c.h.bf16 %v31_v37  ;;  %v45_v53 = vunpack.c.l.bf16 %v32_v47  ;;  %v46_v54 = vunpack.c.h.bf16 %v32_v47  ;;  %v1127_v37 = vld [vmem:[%s1454_s1 + $0x1f0] sm:$0xff]   ;;  %v1133_v46 = vld [vmem:[%s1454_s1 + $0x1a8] sm:$0xff]  }
  0x10   :  { %1009 = vmatpush3.bf16.msra.mxu0 %v1104_v14  ;;  %v1308_v45 = vld [vmem:[%s1457_s3] sm:$0xff]  ;;  %v60_v48 = vrot.slane %v1301_v38, %v59_v33  ;;  %v68_v55 = vrot.slane %v1301_v38, %v67_v35  ;;  %v56_v60 = vrot.slane %v1301_v38, %v55_v39  ;;  %v64_v0 = vrot.slane %v1301_v38, %v63_v40 }
  0x11   :  { %1031 = vmatpush3.bf16.msra.mxu1 %v1105_v15  ;;  %1010 = vmatprep.subr.bf16.mxu0 %v1106_v16  ;;  %v118_v49 = vrot.slane %v1308_v45, %v59_v33  ;;  %v126_v56 = vrot.slane %v1308_v45, %v67_v35  ;;  %v114_v61 = vrot.slane %v1308_v45, %v55_v39  ;;  %v1125_v33 = vld [vmem:[%s1454_s1 + $0x1b8] sm:$0xff]   ;;  %v1126_v35 = vld [vmem:[%s1454_s1 + $0x170] sm:$0xff]   ;;  %v1134_v47 = vld [vmem:[%s1454_s1 + $0x160] sm:$0xff]  }
  0x12   :  { %1032 = vmatprep.subr.bf16.mxu1 %v1107_v17  ;;  %v94_v58 = vmul.f32 %v60_v48, %v36_v42  ;;  %v102_v59 = vmul.f32 %v60_v48, %v44_v44  ;;  %v96_v62 = vmul.f32 %v68_v55, %v38_v51  ;;  %v104_v63 = vmul.f32 %v68_v55, %v46_v54  ;;  %v1130_v42 = vld [vmem:[%s1454_s1 + $0x168] sm:$0xff]   ;;  %v1135_v48 = vld [vmem:[%s1454_s1 + $0x1e0] sm:$0xff]   ;;  %v1138_v51 = vld [vmem:[%s1454_s1 + $0x158] sm:$0xff]  }
  0x13   :  { %v122_v1 = vrot.slane %v1308_v45, %v63_v40  ;;  %v93_v4 = vmul.f32 %v56_v60, %v35_v41  ;;  %v101_v5 = vmul.f32 %v56_v60, %v43_v43  ;;  %v95_v8 = vmul.f32 %v64_v0, %v37_v50  ;;  %v1128_v40 = vld [vmem:[%s1454_s1 + $0x130] sm:$0xff]   ;;  %v1131_v43 = vld [vmem:[%s1454_s1 + $0x1e8] sm:$0xff]   ;;  %v1137_v50 = vld [vmem:[%s1454_s1 + $0x1a0] sm:$0xff]  }
  0x14   :  { %1011 = vmatpush3.bf16.msra.mxu0 %v1108_v18  ;;  %v152_v2 = vadd.f32 %v118_v49, %v94_v58  ;;  %v160_v3 = vadd.f32 %v118_v49, %v102_v59  ;;  %v154_v6 = vadd.f32 %v126_v56, %v96_v62  ;;  %v162_v7 = vadd.f32 %v126_v56, %v104_v63  ;;  %v1129_v41 = vld [vmem:[%s1454_s1 + $0x1b0] sm:$0xff]   ;;  %v1132_v44 = vld [vmem:[%s1454_s1 + $0x128] sm:$0xff]   ;;  %v1136_v49 = vld [vmem:[%s1454_s1 + $0x120] sm:$0xff]  }
  0x15   :  { %1033 = vmatpush3.bf16.msra.mxu1 %v1109_v19  ;;  %1012 = vmatprep.subr.bf16.mxu0 %v1110_v20  ;;  %v103_v9 = vmul.f32 %v64_v0, %v45_v53  ;;  %v151_v16 = vadd.f32 %v114_v61, %v93_v4  ;;  %v159_v17 = vadd.f32 %v114_v61, %v101_v5  ;;  %v1140_v53 = vld [vmem:[%s1454_s1 + $0x118] sm:$0xff]   ;;  %v75_v54 = vsub.s32 5, %v1273_v28  ;;  %v1143_v59 = vld [vmem:[%s1454_s1 + $0x1d0] sm:$0xff]   ;;  %v1146_v63 = vld [vmem:[%s1454_s1 + $0x148] sm:$0xff]  }
  0x16   :  { %1034 = vmatprep.subr.bf16.mxu1 %v1111_v21  ;;  %vm168_vm0 = vcmp.gt.f32.partialorder %v152_v2, 0.0  ;;  %vm176_vm1 = vcmp.gt.f32.partialorder %v160_v3, 0.0  ;;  %v184_v10 = vmul.f32 0.2, %v152_v2  ;;  %v192_v11 = vmul.f32 0.2, %v160_v3 }
  0x17   :  { %vm170_vm2 = vcmp.gt.f32.partialorder %v154_v6, 0.0  ;;  %vm178_vm3 = vcmp.gt.f32.partialorder %v162_v7, 0.0  ;;  %v186_v12 = vmul.f32 0.2, %v154_v6  ;;  %v194_v13 = vmul.f32 0.2, %v162_v7 }
  0x18   :  { %1013 = vmatpush3.bf16.msra.mxu0 %v1112_v22  ;;  %v200_v14 = vsel %vm168_vm0, %v152_v2, %v184_v10  ;;  %v208_v15 = vsel %vm176_vm1, %v160_v3, %v192_v11  ;;  %v153_v21 = vadd.f32 %v122_v1, %v95_v8  ;;  %vm167_vm4 = vcmp.gt.f32.partialorder %v151_v16, 0.0  ;;  %v1141_v55 = vld [vmem:[%s1454_s1 + $0x198] sm:$0xff]   ;;  %v1144_v61 = vld [vmem:[%s1454_s1 + $0x110] sm:$0xff]  }
  0x19   :  { %1035 = vmatpush3.bf16.msra.mxu1 %v1113_v24  ;;  %1014 = vmatprep.subr.bf16.mxu0 %v1114_v25  ;;  %v216_v18 = vpack.c.bf16 %v208_v15, %v200_v14  ;;  %v202_v19 = vsel %vm170_vm2, %v154_v6, %v186_v12  ;;  %v210_v20 = vsel %vm178_vm3, %v162_v7, %v194_v13  ;;  %vm175_vm5 = vcmp.gt.f32.partialorder %v159_v17, 0.0  ;;  %v1145_v62 = vld [vmem:[%s1454_s1 + $0x190] sm:$0xff]   ;;  %v30_v10 = vld [vmem:[%s1455_s0 + $0x18] sm:$0xff] }
  0x1a   :  { %1036 = vmatprep.subr.bf16.mxu1 %v1115_v26  ;;  %v218_v22 = vpack.c.bf16 %v210_v20, %v202_v19  ;;  %v183_v23 = vmul.f32 0.2, %v151_v16  ;;  %v191_v24 = vmul.f32 0.2, %v159_v17  ;;  %v161_v25 = vadd.f32 %v122_v1, %v103_v9  ;;  %v29_v2 = vld [vmem:[%s1455_s0 + $0x10] sm:$0xff]  ;;  %v34_v11 = vld [vmem:[%s1455_s0 + $0x38] sm:$0xff] }
  0x1b   :  { %769 = vmatprep.mubr.bf16.mxu0 %v216_v18  ;;  %vm169_vm6 = vcmp.gt.f32.partialorder %v153_v21, 0.0  ;;  %v185_v26 = vmul.f32 0.2, %v153_v21  ;;  %v83_v56 = vsub.s32 7, %v1273_v28  ;;  %v71_v58 = vsub.s32 4, %v1273_v28  ;;  %v33_v7 = vld [vmem:[%s1455_s0 + $0x30] sm:$0xff] }
  0x1c   :  { %1015 = vmatpush3.bf16.msra.mxu0 %v1116_v27  ;;  %v1124_v27 = vld [vmem:[%s1454_s1 + $0x138] sm:$0xff]   ;;  %810 = vmatprep.mubr.bf16.mxu1 %v218_v22  ;;  %vm177_vm7 = vcmp.gt.f32.partialorder %v161_v25, 0.0  ;;  %v79_v60 = vsub.s32 6, %v1273_v28  ;;  %v76_v0 = vrot.slane %v1301_v38, %v75_v54  ;;  %v1147_v28 = vld [vmem:[%s1454_s1 + $0x1c8] sm:$0xff]   ;;  %v134_v3 = vrot.slane %v1308_v45, %v75_v54  ;;  %v1150_v18 = vld [vmem:[%s1454_s1 + $0x140] sm:$0xff]  }
  0x1d   :  { %1037 = vmatpush3.bf16.msra.mxu1 %v1117_v29  ;;  %1016 = vmatprep.subr.bf16.mxu0 %v1118_v30  ;;  %v199_v29 = vsel %vm167_vm4, %v151_v16, %v183_v23  ;;  %v207_v30 = vsel %vm175_vm5, %v159_v17, %v191_v24  ;;  %v72_v1 = vrot.slane %v1301_v38, %v71_v58  ;;  %v39_v8 = vunpack.c.l.bf16 %v29_v2 }
  0x1e   :  { %1038 = vmatprep.subr.bf16.mxu1 %v1119_v31  ;;  %v193_v31 = vmul.f32 0.2, %v161_v25  ;;  %v84_v4 = vrot.slane %v1301_v38, %v83_v56  ;;  %v142_v5 = vrot.slane %v1308_v45, %v83_v56  ;;  %v80_v6 = vrot.slane %v1301_v38, %v79_v60  ;;  %v1148_v38 = vld [vmem:[%s1454_s1 + $0x108] sm:$0xff]  }
  0x1f   :  { %v40_v9 = vunpack.c.h.bf16 %v29_v2  ;;  %v130_v12 = vrot.slane %v1308_v45, %v71_v58  ;;  %v138_v13 = vrot.slane %v1308_v45, %v79_v60  ;;  %v47_v14 = vunpack.c.l.bf16 %v33_v7  ;;  %v1149_v45 = vld [vmem:[%s1454_s1 + $0x188] sm:$0xff]  }
  0x20   :  { %1017 = vmatpush3.bf16.msra.mxu0 %v1120_v32  ;;  %v201_v32 = vsel %vm169_vm6, %v153_v21, %v185_v26  ;;  %v209_v36 = vsel %vm177_vm7, %v161_v25, %v193_v31  ;;  %v48_v15 = vunpack.c.h.bf16 %v33_v7  ;;  %v41_v16 = vunpack.c.l.bf16 %v30_v10 }
  0x21   :  { %1039 = vmatpush3.bf16.msra.mxu1 %v1121_v34  ;;  %1046 = vmatprep.subr.bf16.mxu0 %v1122_v52  ;;  %v215_v34 = vpack.c.bf16 %v207_v30, %v199_v29  ;;  %v217_v39 = vpack.c.bf16 %v209_v36, %v201_v32  ;;  %v1139_v52 = vld [vmem:[%s1454_s1 + $0x1d8] sm:$0xff]   ;;  %v42_v17 = vunpack.c.h.bf16 %v30_v10  ;;  %v98_v19 = vmul.f32 %v76_v0, %v40_v9 }
  0x22   :  { %1068 = vmatprep.subr.bf16.mxu1 %v1123_v57  ;;  %v1142_v57 = vld [vmem:[%s1454_s1 + $0x150] sm:$0xff]   ;;  %v49_v20 = vunpack.c.l.bf16 %v34_v11  ;;  %v50_v21 = vunpack.c.h.bf16 %v34_v11  ;;  %v97_v22 = vmul.f32 %v72_v1, %v39_v8  ;;  %v106_v23 = vmul.f32 %v76_v0, %v48_v15 }
  0x23   :  { %770 = vmatmul.mubr.bf16.vlgmr.msra.gmra.mxu0 %v215_v34  ;;  %v100_v24 = vmul.f32 %v84_v4, %v42_v17  ;;  %v105_v25 = vmul.f32 %v72_v1, %v47_v14  ;;  %v99_v26 = vmul.f32 %v80_v6, %v41_v16  ;;  %v156_v29 = vadd.f32 %v134_v3, %v98_v19 }
  0x24   :  { %1047 = vmatpush3.bf16.msra.mxu0 %v1124_v27  ;;  %811 = vmatmul.mubr.bf16.vlgmr.msra.gmra.mxu1 %v217_v39  ;;  %v1151_v27 = vld [vmem:[%s1454_s1 + $0x1c0] sm:$0xff]   ;;  %v108_v30 = vmul.f32 %v84_v4, %v50_v21  ;;  %v155_v31 = vadd.f32 %v130_v12, %v97_v22  ;;  %v107_v32 = vmul.f32 %v80_v6, %v49_v20 }
  0x25   :  { %1048 = vmatprep.subr.bf16.mxu0 %v1126_v35  ;;  %1069 = vmatpush3.bf16.msra.mxu1 %v1125_v33  ;;  %v1152_v33 = vld [vmem:[%s1454_s1 + $0x100] sm:$0xff]   ;;  %v164_v34 = vadd.f32 %v134_v3, %v106_v23  ;;  %v158_v35 = vadd.f32 %v142_v5, %v100_v24  ;;  %v163_v36 = vadd.f32 %v130_v12, %v105_v25  ;;  %vm172_vm8 = vcmp.gt.f32.partialorder %v156_v29, 0.0 }
  0x26   :  { %1070 = vmatprep.subr.bf16.mxu1 %v1127_v37  ;;  %v157_v37 = vadd.f32 %v138_v13, %v99_v26  ;;  %v1153_v39 = vld [vmem:[%s1454_s1 + $0x180] sm:$0xff]   ;;  %vm171_vm9 = vcmp.gt.f32.partialorder %v155_v31, 0.0 }
  0x27   :  { %vm180_vm10 = vcmp.gt.f32.partialorder %v164_v34, 0.0  ;;  %vm174_vm11 = vcmp.gt.f32.partialorder %v158_v35, 0.0  ;;  %vm179_vm13 = vcmp.gt.f32.partialorder %v163_v36, 0.0  ;;  %v1001_v20 = vld [vmem:[%s1458_s4] ss:$0 sm:$0xff] }
  0x28   :  { %1049 = vmatpush3.bf16.msra.mxu0 %v1128_v40  ;;  %v188_v40 = vmul.f32 0.2, %v156_v29  ;;  %vm173_vm14 = vcmp.gt.f32.partialorder %v157_v37, 0.0 }
  0x29   :  { %1050 = vmatprep.subr.bf16.mxu0 %v1130_v42  ;;  %1071 = vmatpush3.bf16.msra.mxu1 %v1129_v41  ;;  %v166_v41 = vadd.f32 %v142_v5, %v108_v30  ;;  %v196_v42 = vmul.f32 0.2, %v164_v34 }
  0x2a   :  { %1072 = vmatprep.subr.bf16.mxu1 %v1131_v43  ;;  %v190_v43 = vmul.f32 0.2, %v158_v35 }
  0x2b   :  { %vm182_vm12 = vcmp.gt.f32.partialorder %v166_v41, 0.0 }
  0x2c   :  { %1051 = vmatpush3.bf16.msra.mxu0 %v1132_v44  ;;  %v204_v44 = vsel %vm172_vm8, %v156_v29, %v188_v40 }
  0x2d   :  { %1052 = vmatprep.subr.bf16.mxu0 %v1134_v47  ;;  %1073 = vmatpush3.bf16.msra.mxu1 %v1133_v46  ;;  %v198_v46 = vmul.f32 0.2, %v166_v41  ;;  %v212_v47 = vsel %vm180_vm10, %v164_v34, %v196_v42 }
  0x2e   :  { %1074 = vmatprep.subr.bf16.mxu1 %v1135_v48  ;;  %v206_v48 = vsel %vm174_vm11, %v158_v35, %v190_v43 }
  0x30   :  { %1053 = vmatpush3.bf16.msra.mxu0 %v1136_v49  ;;  %v187_v49 = vmul.f32 0.2, %v155_v31 }
  0x31   :  { %1054 = vmatprep.subr.bf16.mxu0 %v1138_v51  ;;  %1075 = vmatpush3.bf16.msra.mxu1 %v1137_v50  ;;  %v195_v50 = vmul.f32 0.2, %v163_v36  ;;  %v220_v51 = vpack.c.bf16 %v212_v47, %v204_v44 }
  0x32   :  { %1076 = vmatprep.subr.bf16.mxu1 %v1139_v52  ;;  %v214_v52 = vsel %vm182_vm12, %v166_v41, %v198_v46 }
  0x33   :  { %v222_v54 = vpack.c.bf16 %v214_v52, %v206_v48  ;;  %v211_v56 = vsel %vm179_vm13, %v163_v36, %v195_v50  ;;  %851 = vmatprep.mubr.bf16.mxu0 %v220_v51 }
  0x34   :  { %1055 = vmatpush3.bf16.msra.mxu0 %v1140_v53  ;;  %v165_v53 = vadd.f32 %v138_v13, %v107_v32 }
  0x35   :  { %1056 = vmatprep.subr.bf16.mxu0 %v1142_v57  ;;  %1077 = vmatpush3.bf16.msra.mxu1 %v1141_v55  ;;  %v203_v55 = vsel %vm171_vm9, %v155_v31, %v187_v49  ;;  %v189_v57 = vmul.f32 0.2, %v157_v37 }
  0x36   :  { %1078 = vmatprep.subr.bf16.mxu1 %v1143_v59  ;;  %v219_v58 = vpack.c.bf16 %v211_v56, %v203_v55  ;;  %vm181_vm15 = vcmp.gt.f32.partialorder %v165_v53, 0.0  ;;  %v197_v59 = vmul.f32 0.2, %v165_v53  ;;  %892 = vmatprep.mubr.bf16.mxu1 %v222_v54 }
  0x37   :  { %v205_v60 = vsel %vm173_vm14, %v157_v37, %v189_v57 }
  0x38   :  { %1057 = vmatpush3.bf16.msra.mxu0 %v1144_v61  ;;  %v213_v61 = vsel %vm181_vm15, %v165_v53, %v197_v59 }
  0x39   :  { %1058 = vmatprep.subr.bf16.mxu0 %v1146_v63  ;;  %1079 = vmatpush3.bf16.msra.mxu1 %v1145_v62  ;;  %v221_v62 = vpack.c.bf16 %v213_v61, %v205_v60 }
  0x3a   :  { %1080 = vmatprep.subr.bf16.mxu1 %v1147_v28 }
  0x3c   :  { %1059 = vmatpush3.bf16.msra.mxu0 %v1148_v38 }
  0x3d   :  { %1060 = vmatprep.subr.bf16.mxu0 %v1150_v18  ;;  %1081 = vmatpush3.bf16.msra.mxu1 %v1149_v45 }
  0x3e   :  { %1082 = vmatprep.subr.bf16.mxu1 %v1151_v27 }
  0x40   :  { %1061 = vmatpush3.bf16.msra.mxu0 %v1152_v33 }
  0x41   :  { %1083 = vmatpush3.bf16.msra.mxu1 %v1153_v39 }
  0x43   :  { %852 = vmatmul.mubr.bf16.vlgmr.msra.gmra.mxu0 %v219_v58 }
  0x44   :  { %893 = vmatmul.mubr.bf16.vlgmr.msra.gmra.mxu1 %v221_v62 }
  0xe3   :  { %v1018_v63 = vpop.f32.mrf.mxu0 }
  0xe4   :  { %v1040_v0 = vpop.f32.mrf.mxu1 }
  0xe5   :  { %v1019_v1 = vpop.f32.mrf.mxu0 }
  0xe6   :  { %v1041_v28 = vpop.f32.mrf.mxu1  ;;  %v1020_v5 = vadd.f32 %v1019_v1, %v1018_v63 }
  0xe7   :  { %v1021_v2 = vpop.f32.mrf.mxu0  ;;  %v1042_v6 = vadd.f32 %v1041_v28, %v1040_v0 }
  0xe8   :  { %v1043_v3 = vpop.f32.mrf.mxu1 }
  0xe9   :  { %v1022_v4 = vpop.f32.mrf.mxu0  ;;  %v813_v10 = vadd.f32 %v1042_v6, %v1020_v5 }
  0xea   :  { %v1044_v7 = vpop.f32.mrf.mxu1  ;;  %v1023_v11 = vadd.f32 %v1022_v4, %v1021_v2 }
  0xeb   :  { %v1045_v12 = vadd.f32 %v1044_v7, %v1043_v3 }
  0xed   :  { %v816_v19 = vadd.f32 %v1045_v12, %v1023_v11 }
 0x103   :  { %v1062_v8 = vpop.f32.mrf.mxu0 }
 0x104   :  { %v1084_v13 = vpop.f32.mrf.mxu1 }
 0x105   :  { %v1063_v9 = vpop.f32.mrf.mxu0 }
 0x106   :  { %v1064_v38 = vadd.f32 %v1063_v9, %v1062_v8  ;;  %v1085_v16 = vpop.f32.mrf.mxu1 }
 0x107   :  { %v1065_v14 = vpop.f32.mrf.mxu0  ;;  %v1086_v17 = vadd.f32 %v1085_v16, %v1084_v13 }
 0x108   :  { %v854_v15 = vadd.f32 %v1064_v38, %v813_v10  ;;  %v1087_v21 = vpop.f32.mrf.mxu1 }
 0x109   :  { %v1066_v18 = vpop.f32.mrf.mxu0 }
 0x10a   :  { %v1067_v22 = vadd.f32 %v1066_v18, %v1065_v14  ;;  %v895_v45 = vadd.f32 %v1086_v17, %v854_v15  ;;  %v1088_v24 = vpop.f32.mrf.mxu1 }
 0x10b   :  { %v1089_v26 = vadd.f32 %v1088_v24, %v1087_v21 }
 0x10c   :  { %v857_v23 = vadd.f32 %v1067_v22, %v816_v19  ;;  %v917_v25 = vadd.f32 %v1001_v20, %v895_v45 }
 0x10e   :  { %v919_v27 = vsub.f32 0.0, %v917_v25  ;;  %v898_v29 = vadd.f32 %v1089_v26, %v857_v23 }
 0x110   :  { %v921_v30 = vmul.f32 1.442695, %v919_v27  ;;  %v918_v31 = vadd.f32 %v1001_v20, %v898_v29 }
 0x112   :  { %1154 = vpow2.f32 %v921_v30  ;;  %v920_v32 = vsub.f32 0.0, %v918_v31 }
 0x114   :  { %v923_v33 = vmul.f32 1.442695, %v920_v32 }
 0x116   :  { %1156 = vpow2.f32 %v923_v33 }
 0x11f   :  { %v1155_v34 = vpop.eup %1154 }
 0x120   :  { %v925_v35 = vadd.f32 1.0, %v1155_v34 }
 0x122   :  { %1158 = vrcp.f32 %v925_v35 }
 0x123   :  { %v1157_v36 = vpop.eup %1156 }
 0x124   :  { %v926_v37 = vadd.f32 1.0, %v1157_v36 }
 0x126   :  { %1160 = vrcp.f32 %v926_v37 }
 0x12f   :  { %v1159_v39 = vpop.eup %1158 }
 0x130   :  { %931 = vst [vmem:[%s1459_s5] sm:$0xff] %v1159_v39 }
 0x133   :  { %v1161_v40 = vpop.eup %1160 }
 0x134   :  { %932 = vst [vmem:[%s1459_s5 + $0x8] sm:$0xff] %v1161_v40 }

</bundles_post_ra>
